<compile_context>
chip_gen: v5e
topology: v5e:2x2
jax: 0.10.0
libtpu: 0.0.40
codegen_flags: <defaults>
</compile_context>

<pallas_src>
import jax
import jax.numpy as jnp
from jax.experimental import pallas as pl
from jax.experimental.pallas import tpu as pltpu

# ------------------------- config (small synthetic shapes) -------------------------
BATCH = 2
TRG_LEN = 8
SRC_LEN = 8
HIDDEN = 32
NUM_HEADS = 4
HEAD_DIM = HIDDEN // NUM_HEADS
PF_DIM = 64
OUTPUT_DIM = 16
NUM_LAYERS = 2
MAX_LEN = 100
LN_EPS = 1e-5
NEG_INF = -1e10


# ================================= fused decoder kernel =================================

def decoder_kernel(x_ref, enc_ref, trg_bias_ref, src_bias_ref,
                   sa_w_ref, sa_b_ref, ea_w_ref, ea_b_ref,
                   ff_w1_ref, ff_b1_ref, ff_w2_ref, ff_b2_ref,
                   ln_g_ref, ln_b_ref, w_out_ref, b_out_ref,
                   out_ref, attn_ref, ctx_sc):
    """Whole decoder forward for the full (folded) batch in one invocation.

    x_ref    : (B*Lt, H)   embedded target tokens
    enc_ref  : (B*Ls, H)   encoder outputs
    trg_bias : (B, Lt, Lt) additive attention bias (0 / NEG_INF)
    src_bias : (B, 1, Ls)  additive attention bias (0 / NEG_INF)
    *_w/_b   : weights stacked over layers (and over q/k/v/o for attention)
    out_ref  : (B*Lt, OUTPUT_DIM)
    attn_ref : (B*Lt, NUM_HEADS*Ls)  lane-dense last-layer encoder-attention probs
    ctx_sc   : (B*Lt, H) VMEM scratch for per-head context writes
    """
    B, Lt, Ls, H, nh, hd = BATCH, TRG_LEN, SRC_LEN, HIDDEN, NUM_HEADS, HEAD_DIM
    inv_scale = 1.0 / (hd ** 0.5)

    def mha(x_q, x_kv, Lk, get_bias, w_ref, b_ref, l, write_attn):
        # Full-batch QKV projections (single matmuls over the folded batch).
        Q = jnp.dot(x_q, w_ref[l, 0], preferred_element_type=jnp.float32) + b_ref[l, 0]
        K = jnp.dot(x_kv, w_ref[l, 1], preferred_element_type=jnp.float32) + b_ref[l, 1]
        V = jnp.dot(x_kv, w_ref[l, 2], preferred_element_type=jnp.float32) + b_ref[l, 2]
        for b in range(B):                       # static unroll, B = 2
            qb = Q[b * Lt:(b + 1) * Lt, :]       # (Lt, H)
            kb = K[b * Lk:(b + 1) * Lk, :]       # (Lk, H)
            vb = V[b * Lk:(b + 1) * Lk, :]       # (Lk, H)
            bias_b = get_bias(b)                 # (Lt, Lk) or (1, Lk) -> broadcasts
            for h in range(nh):                  # static unroll over heads
                lo = h * hd
                # q @ k^T without an explicit transpose (MXU handles transposed RHS).
                e = jax.lax.dot_general(
                    qb[:, lo:lo + hd], kb[:, lo:lo + hd],
                    dimension_numbers=(((1,), (1,)), ((), ())),
                    preferred_element_type=jnp.float32) * inv_scale + bias_b
                e = e - jnp.max(e, axis=-1, keepdims=True)
                p = jnp.exp(e)
                a = p * pl.reciprocal(jnp.sum(p, axis=-1, keepdims=True), approx=False)
                # Write head context straight into the scratch slice (no concatenate).
                ctx_sc[b * Lt:(b + 1) * Lt, lo:lo + hd] = jnp.dot(
                    a, vb[:, lo:lo + hd], preferred_element_type=jnp.float32)
                if write_attn:   # only the last layer's encoder attention is returned
                    attn_ref[b * Lt:(b + 1) * Lt, h * Lk:(h + 1) * Lk] = a
        # Output projection over the full folded batch.
        return jnp.dot(ctx_sc[...], w_ref[l, 3],
                       preferred_element_type=jnp.float32) + b_ref[l, 3]

    def add_ln(y, res, g, b):
        s = y + res
        mu = jnp.mean(s, axis=-1, keepdims=True)
        d = s - mu
        var = jnp.mean(d * d, axis=-1, keepdims=True)
        return d * jax.lax.rsqrt(var + LN_EPS) * g + b

    x = x_ref[...]        # (B*Lt, H)
    enc = enc_ref[...]    # (B*Ls, H)

    for l in range(NUM_LAYERS):                  # static unroll over layers
        last = (l == NUM_LAYERS - 1)
        # --- self attention + residual + LN ---
        sa = mha(x, x, Lt, lambda b: trg_bias_ref[b], sa_w_ref, sa_b_ref, l, False)
        x = add_ln(sa, x, ln_g_ref[l, 0], ln_b_ref[l, 0])
        # --- encoder attention + residual + LN ---
        ea = mha(x, enc, Ls, lambda b: src_bias_ref[b], ea_w_ref, ea_b_ref, l, last)
        x = add_ln(ea, x, ln_g_ref[l, 1], ln_b_ref[l, 1])
        # --- position-wise feedforward + residual + LN ---
        h1 = jnp.maximum(
            jnp.dot(x, ff_w1_ref[l], preferred_element_type=jnp.float32) + ff_b1_ref[l], 0.0)
        ff = jnp.dot(h1, ff_w2_ref[l], preferred_element_type=jnp.float32) + ff_b2_ref[l]
        x = add_ln(ff, x, ln_g_ref[l, 2], ln_b_ref[l, 2])

    out_ref[...] = jnp.dot(x, w_out_ref[...],
                           preferred_element_type=jnp.float32) + b_out_ref[...]


# ==================================== JAX wrapper ====================================

def decoder_forward(params, trg_ids, enc_src, trg_mask, src_mask):
    """trg_ids (B, Lt) int32; enc_src (B, Ls, H); trg_mask (B,1,Lt,Lt); src_mask (B,1,1,Ls)."""
    B, Lt = trg_ids.shape
    Ls = enc_src.shape[1]

    # --- embedding (glue: gather in plain JAX) ---
    # TODO(synk): embedding gather done in plain JAX; dropout layers are identity (eval mode).
    pos = jnp.arange(Lt)[None, :]
    scale = jnp.sqrt(jnp.float32(HIDDEN))
    trg = params["tok_emb"][trg_ids] * scale + params["pos_emb"][pos]   # (B, Lt, H)

    # Fold batch into sublanes; convert 0/1 masks to compact additive biases.
    trg_x = trg.reshape(B * Lt, HIDDEN)
    enc_x = enc_src.reshape(B * Ls, HIDDEN)
    trg_bias = jnp.where(trg_mask[:, 0] == 0, NEG_INF, 0.0).astype(jnp.float32)   # (B, Lt, Lt)
    src_bias = jnp.where(src_mask[:, 0] == 0, NEG_INF, 0.0).astype(jnp.float32)   # (B, 1, Ls)

    out_flat, attn_flat = pl.pallas_call(
        decoder_kernel,
        out_shape=(
            jax.ShapeDtypeStruct((B * Lt, OUTPUT_DIM), jnp.float32),
            jax.ShapeDtypeStruct((B * Lt, NUM_HEADS * Ls), jnp.float32),
        ),
        scratch_shapes=[pltpu.VMEM((B * Lt, HIDDEN), jnp.float32)],
    )(trg_x, enc_x, trg_bias, src_bias,
      params["sa_w"], params["sa_b"], params["ea_w"], params["ea_b"],
      params["ff_w1"], params["ff_b1"], params["ff_w2"], params["ff_b2"],
      params["ln_g"], params["ln_b"], params["w_out"], params["b_out"])

    out = out_flat.reshape(B, Lt, OUTPUT_DIM)
    attn = attn_flat.reshape(B, Lt, NUM_HEADS, Ls).transpose(0, 2, 1, 3)
    return out, attn


# ================================ pure-JAX reference ================================

def _ref_mha(q, kv, mask, w, b):
    B, Lq, H = q.shape
    Lk = kv.shape[1]
    Q = q @ w[0] + b[0]
    K = kv @ w[1] + b[1]
    V = kv @ w[2] + b[2]
    Qh = Q.reshape(B, Lq, NUM_HEADS, HEAD_DIM).transpose(0, 2, 1, 3)
    Kh = K.reshape(B, Lk, NUM_HEADS, HEAD_DIM).transpose(0, 2, 1, 3)
    Vh = V.reshape(B, Lk, NUM_HEADS, HEAD_DIM).transpose(0, 2, 1, 3)
    e = Qh @ Kh.transpose(0, 1, 3, 2) / jnp.sqrt(jnp.float32(HEAD_DIM))
    e = jnp.where(mask == 0, NEG_INF, e)          # mask broadcasts over the head axis
    a = jax.nn.softmax(e, axis=-1)
    ctx = (a @ Vh).transpose(0, 2, 1, 3).reshape(B, Lq, H)
    return ctx @ w[3] + b[3], a


def _ref_ln(x, g, b):
    mu = jnp.mean(x, axis=-1, keepdims=True)
    var = jnp.mean((x - mu) ** 2, axis=-1, keepdims=True)
    return (x - mu) * jax.lax.rsqrt(var + LN_EPS) * g + b


def decoder_reference(params, trg_ids, enc_src, trg_mask, src_mask):
    B, Lt = trg_ids.shape
    pos = jnp.arange(Lt)[None, :]
    x = params["tok_emb"][trg_ids] * jnp.sqrt(jnp.float32(HIDDEN)) + params["pos_emb"][pos]
    attention = None
    for l in range(NUM_LAYERS):
        _x, _ = _ref_mha(x, x, trg_mask, params["sa_w"][l], params["sa_b"][l])
        x = _ref_ln(x + _x, params["ln_g"][l, 0], params["ln_b"][l, 0])
        _x, attention = _ref_mha(x, enc_src, src_mask, params["ea_w"][l], params["ea_b"][l])
        x = _ref_ln(x + _x, params["ln_g"][l, 1], params["ln_b"][l, 1])
        h = jnp.maximum(x @ params["ff_w1"][l] + params["ff_b1"][l], 0.0)
        _x = h @ params["ff_w2"][l] + params["ff_b2"][l]
        x = _ref_ln(x + _x, params["ln_g"][l, 2], params["ln_b"][l, 2])
    return x @ params["w_out"] + params["b_out"], attention


# ==================================== param init ====================================

def init_params(key):
    keys = iter(jax.random.split(key, 128))

    def lin(din, dout):
        k1, k2 = next(keys), next(keys)
        w = jax.random.normal(k1, (din, dout), jnp.float32) / jnp.sqrt(jnp.float32(din))
        b = 0.01 * jax.random.normal(k2, (1, dout), jnp.float32)
        return w, b

    tok_emb = 0.1 * jax.random.normal(next(keys), (OUTPUT_DIM, HIDDEN), jnp.float32)
    pos_emb = 0.1 * jax.random.normal(next(keys), (MAX_LEN, HIDDEN), jnp.float32)

    sa_w, sa_b, ea_w, ea_b = [], [], [], []
    ff_w1, ff_b1, ff_w2, ff_b2 = [], [], [], []
    ln_g, ln_b = [], []
    for _ in range(NUM_LAYERS):
        ws, bs = zip(*[lin(HIDDEN, HIDDEN) for _ in range(4)])        # q, k, v, o
        sa_w.append(jnp.stack(ws)); sa_b.append(jnp.stack(bs))
        ws, bs = zip(*[lin(HIDDEN, HIDDEN) for _ in range(4)])
        ea_w.append(jnp.stack(ws)); ea_b.append(jnp.stack(bs))
        w1, b1 = lin(HIDDEN, PF_DIM)
        w2, b2 = lin(PF_DIM, HIDDEN)
        ff_w1.append(w1); ff_b1.append(b1); ff_w2.append(w2); ff_b2.append(b2)
        ln_g.append(jnp.ones((3, 1, HIDDEN), jnp.float32))            # ln1, ln2, ln3
        ln_b.append(jnp.zeros((3, 1, HIDDEN), jnp.float32))
    w_out, b_out = lin(HIDDEN, OUTPUT_DIM)

    return {
        "tok_emb": tok_emb, "pos_emb": pos_emb,
        "sa_w": jnp.stack(sa_w), "sa_b": jnp.stack(sa_b),
        "ea_w": jnp.stack(ea_w), "ea_b": jnp.stack(ea_b),
        "ff_w1": jnp.stack(ff_w1), "ff_b1": jnp.stack(ff_b1),
        "ff_w2": jnp.stack(ff_w2), "ff_b2": jnp.stack(ff_b2),
        "ln_g": jnp.stack(ln_g), "ln_b": jnp.stack(ln_b),
        "w_out": w_out, "b_out": b_out,
    }


# ======================================= main =======================================

if __name__ == "__main__":
    root = jax.random.PRNGKey(0)
    k_param, k_trg, k_enc = jax.random.split(root, 3)

    params = init_params(k_param)

    trg_ids = jax.random.randint(k_trg, (BATCH, TRG_LEN), 0, OUTPUT_DIM, dtype=jnp.int32)
    enc_src = jax.random.normal(k_enc, (BATCH, SRC_LEN, HIDDEN), jnp.float32)

    # causal target mask (B,1,Lt,Lt); source mask (B,1,1,Ls) with last key of batch 1 masked
    trg_mask = jnp.broadcast_to(
        jnp.tril(jnp.ones((TRG_LEN, TRG_LEN), jnp.float32))[None, None],
        (BATCH, 1, TRG_LEN, TRG_LEN))
    src_mask = jnp.ones((BATCH, 1, 1, SRC_LEN), jnp.float32).at[1, 0, 0, SRC_LEN - 1].set(0.0)

    fwd = jax.jit(decoder_forward)
    out, attn = fwd(params, trg_ids, enc_src, trg_mask, src_mask)
    out = jax.block_until_ready(out)
    attn = jax.block_until_ready(attn)

    ref_out, ref_attn = decoder_reference(params, trg_ids, enc_src, trg_mask, src_mask)

    assert out.shape == (BATCH, TRG_LEN, OUTPUT_DIM)
    assert attn.shape == (BATCH, NUM_HEADS, TRG_LEN, SRC_LEN)
    assert jnp.allclose(out, ref_out, atol=1e-3, rtol=1e-3), "output mismatch vs reference"
    assert jnp.allclose(attn, ref_attn, atol=1e-3, rtol=1e-3), "attention mismatch vs reference"

    print("KERNEL_OK")
</pallas_src>

<mosaic_0001>
module attributes {stable_mosaic.version = 11 : i64} {
  func.func @decoder_kernel(%arg0: memref<16x32xf32, #tpu.memory_space<vmem>>, %arg1: memref<16x32xf32, #tpu.memory_space<vmem>>, %arg2: memref<2x8x8xf32, #tpu.memory_space<vmem>>, %arg3: memref<2x1x8xf32, #tpu.memory_space<vmem>>, %arg4: memref<2x4x32x32xf32, #tpu.memory_space<vmem>>, %arg5: memref<2x4x1x32xf32, #tpu.memory_space<vmem>>, %arg6: memref<2x4x32x32xf32, #tpu.memory_space<vmem>>, %arg7: memref<2x4x1x32xf32, #tpu.memory_space<vmem>>, %arg8: memref<2x32x64xf32, #tpu.memory_space<vmem>>, %arg9: memref<2x1x64xf32, #tpu.memory_space<vmem>>, %arg10: memref<2x64x32xf32, #tpu.memory_space<vmem>>, %arg11: memref<2x1x32xf32, #tpu.memory_space<vmem>>, %arg12: memref<2x3x1x32xf32, #tpu.memory_space<vmem>>, %arg13: memref<2x3x1x32xf32, #tpu.memory_space<vmem>>, %arg14: memref<32x16xf32, #tpu.memory_space<vmem>>, %arg15: memref<1x16xf32, #tpu.memory_space<vmem>>, %arg16: memref<16x16xf32, #tpu.memory_space<vmem>>, %arg17: memref<16x32xf32, #tpu.memory_space<vmem>>, %arg18: memref<16x32xf32, #tpu.memory_space<vmem>>) attributes {dimension_semantics = [], scalar_prefetch = 0 : i64, scratch_operands = 1 : i64, tpu.core_type = #tpu.core_type<tc>} {
    %c0 = arith.constant 0 : index
    %c0_0 = arith.constant 0 : index
    %0 = vector.load %arg0[%c0, %c0_0] : memref<16x32xf32, #tpu.memory_space<vmem>>, vector<16x32xf32>
    %c0_1 = arith.constant 0 : index
    %c0_2 = arith.constant 0 : index
    %1 = vector.load %arg1[%c0_1, %c0_2] : memref<16x32xf32, #tpu.memory_space<vmem>>, vector<16x32xf32>
    %c0_3 = arith.constant 0 : index
    %c0_4 = arith.constant 0 : index
    %c0_5 = arith.constant 0 : index
    %c0_6 = arith.constant 0 : index
    %2 = vector.load %arg4[%c0_3, %c0_4, %c0_5, %c0_6] : memref<2x4x32x32xf32, #tpu.memory_space<vmem>>, vector<1x1x32x32xf32>
    %3 = vector.shape_cast %2 : vector<1x1x32x32xf32> to vector<32x32xf32>
    %cst = arith.constant dense<0.000000e+00> : vector<16x32xf32>
    %4 = tpu.matmul %0, %3, %cst {dimension_numbers = #tpu.dot_dimension_numbers<[1], [0], [0], [1], [0, 0, 1, 1], [], []>} : vector<16x32xf32>, vector<32x32xf32>, vector<16x32xf32> -> vector<16x32xf32>
    %c0_7 = arith.constant 0 : index
    %c0_8 = arith.constant 0 : index
    %c0_9 = arith.constant 0 : index
    %c0_10 = arith.constant 0 : index
    %5 = vector.load %arg5[%c0_7, %c0_8, %c0_9, %c0_10] : memref<2x4x1x32xf32, #tpu.memory_space<vmem>>, vector<1x1x1x32xf32>
    %6 = vector.shape_cast %5 : vector<1x1x1x32xf32> to vector<1x32xf32>
    %7 = vector.broadcast %6 : vector<1x32xf32> to vector<16x32xf32>
    %8 = arith.addf %4, %7 : vector<16x32xf32>
    %c0_11 = arith.constant 0 : index
    %c1 = arith.constant 1 : index
    %c0_12 = arith.constant 0 : index
    %c0_13 = arith.constant 0 : index
    %9 = vector.load %arg4[%c0_11, %c1, %c0_12, %c0_13] : memref<2x4x32x32xf32, #tpu.memory_space<vmem>>, vector<1x1x32x32xf32>
    %10 = vector.shape_cast %9 : vector<1x1x32x32xf32> to vector<32x32xf32>
    %cst_14 = arith.constant dense<0.000000e+00> : vector<16x32xf32>
    %11 = tpu.matmul %0, %10, %cst_14 {dimension_numbers = #tpu.dot_dimension_numbers<[1], [0], [0], [1], [0, 0, 1, 1], [], []>} : vector<16x32xf32>, vector<32x32xf32>, vector<16x32xf32> -> vector<16x32xf32>
    %c0_15 = arith.constant 0 : index
    %c1_16 = arith.constant 1 : index
    %c0_17 = arith.constant 0 : index
    %c0_18 = arith.constant 0 : index
    %12 = vector.load %arg5[%c0_15, %c1_16, %c0_17, %c0_18] : memref<2x4x1x32xf32, #tpu.memory_space<vmem>>, vector<1x1x1x32xf32>
    %13 = vector.shape_cast %12 : vector<1x1x1x32xf32> to vector<1x32xf32>
    %14 = vector.broadcast %13 : vector<1x32xf32> to vector<16x32xf32>
    %15 = arith.addf %11, %14 : vector<16x32xf32>
    %c0_19 = arith.constant 0 : index
    %c2 = arith.constant 2 : index
    %c0_20 = arith.constant 0 : index
    %c0_21 = arith.constant 0 : index
    %16 = vector.load %arg4[%c0_19, %c2, %c0_20, %c0_21] : memref<2x4x32x32xf32, #tpu.memory_space<vmem>>, vector<1x1x32x32xf32>
    %17 = vector.shape_cast %16 : vector<1x1x32x32xf32> to vector<32x32xf32>
    %cst_22 = arith.constant dense<0.000000e+00> : vector<16x32xf32>
    %18 = tpu.matmul %0, %17, %cst_22 {dimension_numbers = #tpu.dot_dimension_numbers<[1], [0], [0], [1], [0, 0, 1, 1], [], []>} : vector<16x32xf32>, vector<32x32xf32>, vector<16x32xf32> -> vector<16x32xf32>
    %c0_23 = arith.constant 0 : index
    %c2_24 = arith.constant 2 : index
    %c0_25 = arith.constant 0 : index
    %c0_26 = arith.constant 0 : index
    %19 = vector.load %arg5[%c0_23, %c2_24, %c0_25, %c0_26] : memref<2x4x1x32xf32, #tpu.memory_space<vmem>>, vector<1x1x1x32xf32>
    %20 = vector.shape_cast %19 : vector<1x1x1x32xf32> to vector<1x32xf32>
    %21 = vector.broadcast %20 : vector<1x32xf32> to vector<16x32xf32>
    %22 = arith.addf %18, %21 : vector<16x32xf32>
    %23 = vector.extract_strided_slice %8 {offsets = [0, 0], sizes = [8, 32], strides = [1, 1]} : vector<16x32xf32> to vector<8x32xf32>
    %24 = vector.extract_strided_slice %15 {offsets = [0, 0], sizes = [8, 32], strides = [1, 1]} : vector<16x32xf32> to vector<8x32xf32>
    %25 = vector.extract_strided_slice %22 {offsets = [0, 0], sizes = [8, 32], strides = [1, 1]} : vector<16x32xf32> to vector<8x32xf32>
    %c0_27 = arith.constant 0 : index
    %c0_28 = arith.constant 0 : index
    %c0_29 = arith.constant 0 : index
    %26 = vector.load %arg2[%c0_27, %c0_28, %c0_29] : memref<2x8x8xf32, #tpu.memory_space<vmem>>, vector<1x8x8xf32>
    %27 = vector.shape_cast %26 : vector<1x8x8xf32> to vector<8x8xf32>
    %28 = vector.extract_strided_slice %23 {offsets = [0, 0], sizes = [8, 8], strides = [1, 1]} : vector<8x32xf32> to vector<8x8xf32>
    %29 = vector.extract_strided_slice %24 {offsets = [0, 0], sizes = [8, 8], strides = [1, 1]} : vector<8x32xf32> to vector<8x8xf32>
    %cst_30 = arith.constant dense<0.000000e+00> : vector<8x8xf32>
    %30 = tpu.matmul %28, %29, %cst_30 {dimension_numbers = #tpu.dot_dimension_numbers<[1], [1], [0], [0], [0, 0, 1, 0], [], []>} : vector<8x8xf32>, vector<8x8xf32>, vector<8x8xf32> -> vector<8x8xf32>
    %cst_31 = arith.constant 0.353553385 : f32
    %31 = vector.broadcast %cst_31 : f32 to vector<8x8xf32>
    %32 = arith.mulf %30, %31 : vector<8x8xf32>
    %33 = arith.addf %32, %27 : vector<8x8xf32>
    %cst_32 = arith.constant dense<0xFF800000> : vector<8xf32>
    %34 = vector.multi_reduction <maximumf>, %33, %cst_32 [1] : vector<8x8xf32> to vector<8xf32>
    %35 = vector.shape_cast %34 : vector<8xf32> to vector<8x1xf32>
    %36 = vector.broadcast %35 : vector<8x1xf32> to vector<8x8xf32>
    %37 = arith.subf %33, %36 : vector<8x8xf32>
    %38 = math.exp %37 : vector<8x8xf32>
    %cst_33 = arith.constant dense<0.000000e+00> : vector<8xf32>
    %39 = vector.multi_reduction <add>, %38, %cst_33 [1] : vector<8x8xf32> to vector<8xf32>
    %40 = vector.shape_cast %39 : vector<8xf32> to vector<8x1xf32>
    %41 = tpu.reciprocal %40 : vector<8x1xf32> -> vector<8x1xf32>
    %42 = vector.broadcast %41 : vector<8x1xf32> to vector<8x8xf32>
    %43 = arith.mulf %38, %42 : vector<8x8xf32>
    %44 = vector.extract_strided_slice %25 {offsets = [0, 0], sizes = [8, 8], strides = [1, 1]} : vector<8x32xf32> to vector<8x8xf32>
    %cst_34 = arith.constant dense<0.000000e+00> : vector<8x8xf32>
    %45 = tpu.matmul %43, %44, %cst_34 {dimension_numbers = #tpu.dot_dimension_numbers<[1], [0], [0], [1], [0, 0, 1, 1], [], []>} : vector<8x8xf32>, vector<8x8xf32>, vector<8x8xf32> -> vector<8x8xf32>
    %c0_35 = arith.constant 0 : index
    %c0_36 = arith.constant 0 : index
    %46 = vector.load %arg18[%c0_35, %c0_36] : memref<16x32xf32, #tpu.memory_space<vmem>>, vector<8x8xf32>
    tpu.vector_store %arg18[%c0_35, %c0_36], %45 {strides = array<i32>} : memref<16x32xf32, #tpu.memory_space<vmem>>, vector<8x8xf32>,
    %47 = vector.extract_strided_slice %23 {offsets = [0, 8], sizes = [8, 8], strides = [1, 1]} : vector<8x32xf32> to vector<8x8xf32>
    %48 = vector.extract_strided_slice %24 {offsets = [0, 8], sizes = [8, 8], strides = [1, 1]} : vector<8x32xf32> to vector<8x8xf32>
    %cst_37 = arith.constant dense<0.000000e+00> : vector<8x8xf32>
    %49 = tpu.matmul %47, %48, %cst_37 {dimension_numbers = #tpu.dot_dimension_numbers<[1], [1], [0], [0], [0, 0, 1, 0], [], []>} : vector<8x8xf32>, vector<8x8xf32>, vector<8x8xf32> -> vector<8x8xf32>
    %cst_38 = arith.constant 0.353553385 : f32
    %50 = vector.broadcast %cst_38 : f32 to vector<8x8xf32>
    %51 = arith.mulf %49, %50 : vector<8x8xf32>
    %52 = arith.addf %51, %27 : vector<8x8xf32>
    %cst_39 = arith.constant dense<0xFF800000> : vector<8xf32>
    %53 = vector.multi_reduction <maximumf>, %52, %cst_39 [1] : vector<8x8xf32> to vector<8xf32>
    %54 = vector.shape_cast %53 : vector<8xf32> to vector<8x1xf32>
    %55 = vector.broadcast %54 : vector<8x1xf32> to vector<8x8xf32>
    %56 = arith.subf %52, %55 : vector<8x8xf32>
    %57 = math.exp %56 : vector<8x8xf32>
    %cst_40 = arith.constant dense<0.000000e+00> : vector<8xf32>
    %58 = vector.multi_reduction <add>, %57, %cst_40 [1] : vector<8x8xf32> to vector<8xf32>
    %59 = vector.shape_cast %58 : vector<8xf32> to vector<8x1xf32>
    %60 = tpu.reciprocal %59 : vector<8x1xf32> -> vector<8x1xf32>
    %61 = vector.broadcast %60 : vector<8x1xf32> to vector<8x8xf32>
    %62 = arith.mulf %57, %61 : vector<8x8xf32>
    %63 = vector.extract_strided_slice %25 {offsets = [0, 8], sizes = [8, 8], strides = [1, 1]} : vector<8x32xf32> to vector<8x8xf32>
    %cst_41 = arith.constant dense<0.000000e+00> : vector<8x8xf32>
    %64 = tpu.matmul %62, %63, %cst_41 {dimension_numbers = #tpu.dot_dimension_numbers<[1], [0], [0], [1], [0, 0, 1, 1], [], []>} : vector<8x8xf32>, vector<8x8xf32>, vector<8x8xf32> -> vector<8x8xf32>
    %c0_42 = arith.constant 0 : index
    %c8 = arith.constant 8 : index
    %65 = vector.load %arg18[%c0_42, %c8] : memref<16x32xf32, #tpu.memory_space<vmem>>, vector<8x8xf32>
    tpu.vector_store %arg18[%c0_42, %c8], %64 {strides = array<i32>} : memref<16x32xf32, #tpu.memory_space<vmem>>, vector<8x8xf32>,
    %66 = vector.extract_strided_slice %23 {offsets = [0, 16], sizes = [8, 8], strides = [1, 1]} : vector<8x32xf32> to vector<8x8xf32>
    %67 = vector.extract_strided_slice %24 {offsets = [0, 16], sizes = [8, 8], strides = [1, 1]} : vector<8x32xf32> to vector<8x8xf32>
    %cst_43 = arith.constant dense<0.000000e+00> : vector<8x8xf32>
    %68 = tpu.matmul %66, %67, %cst_43 {dimension_numbers = #tpu.dot_dimension_numbers<[1], [1], [0], [0], [0, 0, 1, 0], [], []>} : vector<8x8xf32>, vector<8x8xf32>, vector<8x8xf32> -> vector<8x8xf32>
    %cst_44 = arith.constant 0.353553385 : f32
    %69 = vector.broadcast %cst_44 : f32 to vector<8x8xf32>
    %70 = arith.mulf %68, %69 : vector<8x8xf32>
    %71 = arith.addf %70, %27 : vector<8x8xf32>
    %cst_45 = arith.constant dense<0xFF800000> : vector<8xf32>
    %72 = vector.multi_reduction <maximumf>, %71, %cst_45 [1] : vector<8x8xf32> to vector<8xf32>
    %73 = vector.shape_cast %72 : vector<8xf32> to vector<8x1xf32>
    %74 = vector.broadcast %73 : vector<8x1xf32> to vector<8x8xf32>
    %75 = arith.subf %71, %74 : vector<8x8xf32>
    %76 = math.exp %75 : vector<8x8xf32>
    %cst_46 = arith.constant dense<0.000000e+00> : vector<8xf32>
    %77 = vector.multi_reduction <add>, %76, %cst_46 [1] : vector<8x8xf32> to vector<8xf32>
    %78 = vector.shape_cast %77 : vector<8xf32> to vector<8x1xf32>
    %79 = tpu.reciprocal %78 : vector<8x1xf32> -> vector<8x1xf32>
    %80 = vector.broadcast %79 : vector<8x1xf32> to vector<8x8xf32>
    %81 = arith.mulf %76, %80 : vector<8x8xf32>
    %82 = vector.extract_strided_slice %25 {offsets = [0, 16], sizes = [8, 8], strides = [1, 1]} : vector<8x32xf32> to vector<8x8xf32>
    %cst_47 = arith.constant dense<0.000000e+00> : vector<8x8xf32>
    %83 = tpu.matmul %81, %82, %cst_47 {dimension_numbers = #tpu.dot_dimension_numbers<[1], [0], [0], [1], [0, 0, 1, 1], [], []>} : vector<8x8xf32>, vector<8x8xf32>, vector<8x8xf32> -> vector<8x8xf32>
    %c0_48 = arith.constant 0 : index
    %c16 = arith.constant 16 : index
    %84 = vector.load %arg18[%c0_48, %c16] : memref<16x32xf32, #tpu.memory_space<vmem>>, vector<8x8xf32>
    tpu.vector_store %arg18[%c0_48, %c16], %83 {strides = array<i32>} : memref<16x32xf32, #tpu.memory_space<vmem>>, vector<8x8xf32>,
    %85 = vector.extract_strided_slice %23 {offsets = [0, 24], sizes = [8, 8], strides = [1, 1]} : vector<8x32xf32> to vector<8x8xf32>
    %86 = vector.extract_strided_slice %24 {offsets = [0, 24], sizes = [8, 8], strides = [1, 1]} : vector<8x32xf32> to vector<8x8xf32>
    %cst_49 = arith.constant dense<0.000000e+00> : vector<8x8xf32>
    %87 = tpu.matmul %85, %86, %cst_49 {dimension_numbers = #tpu.dot_dimension_numbers<[1], [1], [0], [0], [0, 0, 1, 0], [], []>} : vector<8x8xf32>, vector<8x8xf32>, vector<8x8xf32> -> vector<8x8xf32>
    %cst_50 = arith.constant 0.353553385 : f32
    %88 = vector.broadcast %cst_50 : f32 to vector<8x8xf32>
    %89 = arith.mulf %87, %88 : vector<8x8xf32>
    %90 = arith.addf %89, %27 : vector<8x8xf32>
    %cst_51 = arith.constant dense<0xFF800000> : vector<8xf32>
    %91 = vector.multi_reduction <maximumf>, %90, %cst_51 [1] : vector<8x8xf32> to vector<8xf32>
    %92 = vector.shape_cast %91 : vector<8xf32> to vector<8x1xf32>
    %93 = vector.broadcast %92 : vector<8x1xf32> to vector<8x8xf32>
    %94 = arith.subf %90, %93 : vector<8x8xf32>
    %95 = math.exp %94 : vector<8x8xf32>
    %cst_52 = arith.constant dense<0.000000e+00> : vector<8xf32>
    %96 = vector.multi_reduction <add>, %95, %cst_52 [1] : vector<8x8xf32> to vector<8xf32>
    %97 = vector.shape_cast %96 : vector<8xf32> to vector<8x1xf32>
    %98 = tpu.reciprocal %97 : vector<8x1xf32> -> vector<8x1xf32>
    %99 = vector.broadcast %98 : vector<8x1xf32> to vector<8x8xf32>
    %100 = arith.mulf %95, %99 : vector<8x8xf32>
    %101 = vector.extract_strided_slice %25 {offsets = [0, 24], sizes = [8, 8], strides = [1, 1]} : vector<8x32xf32> to vector<8x8xf32>
    %cst_53 = arith.constant dense<0.000000e+00> : vector<8x8xf32>
    %102 = tpu.matmul %100, %101, %cst_53 {dimension_numbers = #tpu.dot_dimension_numbers<[1], [0], [0], [1], [0, 0, 1, 1], [], []>} : vector<8x8xf32>, vector<8x8xf32>, vector<8x8xf32> -> vector<8x8xf32>
    %c0_54 = arith.constant 0 : index
    %c24 = arith.constant 24 : index
    %103 = vector.load %arg18[%c0_54, %c24] : memref<16x32xf32, #tpu.memory_space<vmem>>, vector<8x8xf32>
    tpu.vector_store %arg18[%c0_54, %c24], %102 {strides = array<i32>} : memref<16x32xf32, #tpu.memory_space<vmem>>, vector<8x8xf32>,
    %104 = vector.extract_strided_slice %8 {offsets = [8, 0], sizes = [8, 32], strides = [1, 1]} : vector<16x32xf32> to vector<8x32xf32>
    %105 = vector.extract_strided_slice %15 {offsets = [8, 0], sizes = [8, 32], strides = [1, 1]} : vector<16x32xf32> to vector<8x32xf32>
    %106 = vector.extract_strided_slice %22 {offsets = [8, 0], sizes = [8, 32], strides = [1, 1]} : vector<16x32xf32> to vector<8x32xf32>
    %c1_55 = arith.constant 1 : index
    %c0_56 = arith.constant 0 : index
    %c0_57 = arith.constant 0 : index
    %107 = vector.load %arg2[%c1_55, %c0_56, %c0_57] : memref<2x8x8xf32, #tpu.memory_space<vmem>>, vector<1x8x8xf32>
    %108 = vector.shape_cast %107 : vector<1x8x8xf32> to vector<8x8xf32>
    %109 = vector.extract_strided_slice %104 {offsets = [0, 0], sizes = [8, 8], strides = [1, 1]} : vector<8x32xf32> to vector<8x8xf32>
    %110 = vector.extract_strided_slice %105 {offsets = [0, 0], sizes = [8, 8], strides = [1, 1]} : vector<8x32xf32> to vector<8x8xf32>
    %cst_58 = arith.constant dense<0.000000e+00> : vector<8x8xf32>
    %111 = tpu.matmul %109, %110, %cst_58 {dimension_numbers = #tpu.dot_dimension_numbers<[1], [1], [0], [0], [0, 0, 1, 0], [], []>} : vector<8x8xf32>, vector<8x8xf32>, vector<8x8xf32> -> vector<8x8xf32>
    %cst_59 = arith.constant 0.353553385 : f32
    %112 = vector.broadcast %cst_59 : f32 to vector<8x8xf32>
    %113 = arith.mulf %111, %112 : vector<8x8xf32>
    %114 = arith.addf %113, %108 : vector<8x8xf32>
    %cst_60 = arith.constant dense<0xFF800000> : vector<8xf32>
    %115 = vector.multi_reduction <maximumf>, %114, %cst_60 [1] : vector<8x8xf32> to vector<8xf32>
    %116 = vector.shape_cast %115 : vector<8xf32> to vector<8x1xf32>
    %117 = vector.broadcast %116 : vector<8x1xf32> to vector<8x8xf32>
    %118 = arith.subf %114, %117 : vector<8x8xf32>
    %119 = math.exp %118 : vector<8x8xf32>
    %cst_61 = arith.constant dense<0.000000e+00> : vector<8xf32>
    %120 = vector.multi_reduction <add>, %119, %cst_61 [1] : vector<8x8xf32> to vector<8xf32>
    %121 = vector.shape_cast %120 : vector<8xf32> to vector<8x1xf32>
    %122 = tpu.reciprocal %121 : vector<8x1xf32> -> vector<8x1xf32>
    %123 = vector.broadcast %122 : vector<8x1xf32> to vector<8x8xf32>
    %124 = arith.mulf %119, %123 : vector<8x8xf32>
    %125 = vector.extract_strided_slice %106 {offsets = [0, 0], sizes = [8, 8], strides = [1, 1]} : vector<8x32xf32> to vector<8x8xf32>
    %cst_62 = arith.constant dense<0.000000e+00> : vector<8x8xf32>
    %126 = tpu.matmul %124, %125, %cst_62 {dimension_numbers = #tpu.dot_dimension_numbers<[1], [0], [0], [1], [0, 0, 1, 1], [], []>} : vector<8x8xf32>, vector<8x8xf32>, vector<8x8xf32> -> vector<8x8xf32>
    %c8_63 = arith.constant 8 : index
    %c0_64 = arith.constant 0 : index
    %127 = vector.load %arg18[%c8_63, %c0_64] : memref<16x32xf32, #tpu.memory_space<vmem>>, vector<8x8xf32>
    tpu.vector_store %arg18[%c8_63, %c0_64], %126 {strides = array<i32>} : memref<16x32xf32, #tpu.memory_space<vmem>>, vector<8x8xf32>,
    %128 = vector.extract_strided_slice %104 {offsets = [0, 8], sizes = [8, 8], strides = [1, 1]} : vector<8x32xf32> to vector<8x8xf32>
    %129 = vector.extract_strided_slice %105 {offsets = [0, 8], sizes = [8, 8], strides = [1, 1]} : vector<8x32xf32> to vector<8x8xf32>
    %cst_65 = arith.constant dense<0.000000e+00> : vector<8x8xf32>
    %130 = tpu.matmul %128, %129, %cst_65 {dimension_numbers = #tpu.dot_dimension_numbers<[1], [1], [0], [0], [0, 0, 1, 0], [], []>} : vector<8x8xf32>, vector<8x8xf32>, vector<8x8xf32> -> vector<8x8xf32>
    %cst_66 = arith.constant 0.353553385 : f32
    %131 = vector.broadcast %cst_66 : f32 to vector<8x8xf32>
    %132 = arith.mulf %130, %131 : vector<8x8xf32>
    %133 = arith.addf %132, %108 : vector<8x8xf32>
    %cst_67 = arith.constant dense<0xFF800000> : vector<8xf32>
    %134 = vector.multi_reduction <maximumf>, %133, %cst_67 [1] : vector<8x8xf32> to vector<8xf32>
    %135 = vector.shape_cast %134 : vector<8xf32> to vector<8x1xf32>
    %136 = vector.broadcast %135 : vector<8x1xf32> to vector<8x8xf32>
    %137 = arith.subf %133, %136 : vector<8x8xf32>
    %138 = math.exp %137 : vector<8x8xf32>
    %cst_68 = arith.constant dense<0.000000e+00> : vector<8xf32>
    %139 = vector.multi_reduction <add>, %138, %cst_68 [1] : vector<8x8xf32> to vector<8xf32>
    %140 = vector.shape_cast %139 : vector<8xf32> to vector<8x1xf32>
    %141 = tpu.reciprocal %140 : vector<8x1xf32> -> vector<8x1xf32>
    %142 = vector.broadcast %141 : vector<8x1xf32> to vector<8x8xf32>
    %143 = arith.mulf %138, %142 : vector<8x8xf32>
    %144 = vector.extract_strided_slice %106 {offsets = [0, 8], sizes = [8, 8], strides = [1, 1]} : vector<8x32xf32> to vector<8x8xf32>
    %cst_69 = arith.constant dense<0.000000e+00> : vector<8x8xf32>
    %145 = tpu.matmul %143, %144, %cst_69 {dimension_numbers = #tpu.dot_dimension_numbers<[1], [0], [0], [1], [0, 0, 1, 1], [], []>} : vector<8x8xf32>, vector<8x8xf32>, vector<8x8xf32> -> vector<8x8xf32>
    %c8_70 = arith.constant 8 : index
    %c8_71 = arith.constant 8 : index
    %146 = vector.load %arg18[%c8_70, %c8_71] : memref<16x32xf32, #tpu.memory_space<vmem>>, vector<8x8xf32>
    tpu.vector_store %arg18[%c8_70, %c8_71], %145 {strides = array<i32>} : memref<16x32xf32, #tpu.memory_space<vmem>>, vector<8x8xf32>,
    %147 = vector.extract_strided_slice %104 {offsets = [0, 16], sizes = [8, 8], strides = [1, 1]} : vector<8x32xf32> to vector<8x8xf32>
    %148 = vector.extract_strided_slice %105 {offsets = [0, 16], sizes = [8, 8], strides = [1, 1]} : vector<8x32xf32> to vector<8x8xf32>
    %cst_72 = arith.constant dense<0.000000e+00> : vector<8x8xf32>
    %149 = tpu.matmul %147, %148, %cst_72 {dimension_numbers = #tpu.dot_dimension_numbers<[1], [1], [0], [0], [0, 0, 1, 0], [], []>} : vector<8x8xf32>, vector<8x8xf32>, vector<8x8xf32> -> vector<8x8xf32>
    %cst_73 = arith.constant 0.353553385 : f32
    %150 = vector.broadcast %cst_73 : f32 to vector<8x8xf32>
    %151 = arith.mulf %149, %150 : vector<8x8xf32>
    %152 = arith.addf %151, %108 : vector<8x8xf32>
    %cst_74 = arith.constant dense<0xFF800000> : vector<8xf32>
    %153 = vector.multi_reduction <maximumf>, %152, %cst_74 [1] : vector<8x8xf32> to vector<8xf32>
    %154 = vector.shape_cast %153 : vector<8xf32> to vector<8x1xf32>
    %155 = vector.broadcast %154 : vector<8x1xf32> to vector<8x8xf32>
    %156 = arith.subf %152, %155 : vector<8x8xf32>
    %157 = math.exp %156 : vector<8x8xf32>
    %cst_75 = arith.constant dense<0.000000e+00> : vector<8xf32>
    %158 = vector.multi_reduction <add>, %157, %cst_75 [1] : vector<8x8xf32> to vector<8xf32>
    %159 = vector.shape_cast %158 : vector<8xf32> to vector<8x1xf32>
    %160 = tpu.reciprocal %159 : vector<8x1xf32> -> vector<8x1xf32>
    %161 = vector.broadcast %160 : vector<8x1xf32> to vector<8x8xf32>
    %162 = arith.mulf %157, %161 : vector<8x8xf32>
    %163 = vector.extract_strided_slice %106 {offsets = [0, 16], sizes = [8, 8], strides = [1, 1]} : vector<8x32xf32> to vector<8x8xf32>
    %cst_76 = arith.constant dense<0.000000e+00> : vector<8x8xf32>
    %164 = tpu.matmul %162, %163, %cst_76 {dimension_numbers = #tpu.dot_dimension_numbers<[1], [0], [0], [1], [0, 0, 1, 1], [], []>} : vector<8x8xf32>, vector<8x8xf32>, vector<8x8xf32> -> vector<8x8xf32>
    %c8_77 = arith.constant 8 : index
    %c16_78 = arith.constant 16 : index
    %165 = vector.load %arg18[%c8_77, %c16_78] : memref<16x32xf32, #tpu.memory_space<vmem>>, vector<8x8xf32>
    tpu.vector_store %arg18[%c8_77, %c16_78], %164 {strides = array<i32>} : memref<16x32xf32, #tpu.memory_space<vmem>>, vector<8x8xf32>,
    %166 = vector.extract_strided_slice %104 {offsets = [0, 24], sizes = [8, 8], strides = [1, 1]} : vector<8x32xf32> to vector<8x8xf32>
    %167 = vector.extract_strided_slice %105 {offsets = [0, 24], sizes = [8, 8], strides = [1, 1]} : vector<8x32xf32> to vector<8x8xf32>
    %cst_79 = arith.constant dense<0.000000e+00> : vector<8x8xf32>
    %168 = tpu.matmul %166, %167, %cst_79 {dimension_numbers = #tpu.dot_dimension_numbers<[1], [1], [0], [0], [0, 0, 1, 0], [], []>} : vector<8x8xf32>, vector<8x8xf32>, vector<8x8xf32> -> vector<8x8xf32>
    %cst_80 = arith.constant 0.353553385 : f32
    %169 = vector.broadcast %cst_80 : f32 to vector<8x8xf32>
    %170 = arith.mulf %168, %169 : vector<8x8xf32>
    %171 = arith.addf %170, %108 : vector<8x8xf32>
    %cst_81 = arith.constant dense<0xFF800000> : vector<8xf32>
    %172 = vector.multi_reduction <maximumf>, %171, %cst_81 [1] : vector<8x8xf32> to vector<8xf32>
    %173 = vector.shape_cast %172 : vector<8xf32> to vector<8x1xf32>
    %174 = vector.broadcast %173 : vector<8x1xf32> to vector<8x8xf32>
    %175 = arith.subf %171, %174 : vector<8x8xf32>
    %176 = math.exp %175 : vector<8x8xf32>
    %cst_82 = arith.constant dense<0.000000e+00> : vector<8xf32>
    %177 = vector.multi_reduction <add>, %176, %cst_82 [1] : vector<8x8xf32> to vector<8xf32>
    %178 = vector.shape_cast %177 : vector<8xf32> to vector<8x1xf32>
    %179 = tpu.reciprocal %178 : vector<8x1xf32> -> vector<8x1xf32>
    %180 = vector.broadcast %179 : vector<8x1xf32> to vector<8x8xf32>
    %181 = arith.mulf %176, %180 : vector<8x8xf32>
    %182 = vector.extract_strided_slice %106 {offsets = [0, 24], sizes = [8, 8], strides = [1, 1]} : vector<8x32xf32> to vector<8x8xf32>
    %cst_83 = arith.constant dense<0.000000e+00> : vector<8x8xf32>
    %183 = tpu.matmul %181, %182, %cst_83 {dimension_numbers = #tpu.dot_dimension_numbers<[1], [0], [0], [1], [0, 0, 1, 1], [], []>} : vector<8x8xf32>, vector<8x8xf32>, vector<8x8xf32> -> vector<8x8xf32>
    %c8_84 = arith.constant 8 : index
    %c24_85 = arith.constant 24 : index
    %184 = vector.load %arg18[%c8_84, %c24_85] : memref<16x32xf32, #tpu.memory_space<vmem>>, vector<8x8xf32>
    tpu.vector_store %arg18[%c8_84, %c24_85], %183 {strides = array<i32>} : memref<16x32xf32, #tpu.memory_space<vmem>>, vector<8x8xf32>,
    %c0_86 = arith.constant 0 : index
    %c0_87 = arith.constant 0 : index
    %185 = vector.load %arg18[%c0_86, %c0_87] : memref<16x32xf32, #tpu.memory_space<vmem>>, vector<16x32xf32>
    %c0_88 = arith.constant 0 : index
    %c3 = arith.constant 3 : index
    %c0_89 = arith.constant 0 : index
    %c0_90 = arith.constant 0 : index
    %186 = vector.load %arg4[%c0_88, %c3, %c0_89, %c0_90] : memref<2x4x32x32xf32, #tpu.memory_space<vmem>>, vector<1x1x32x32xf32>
    %187 = vector.shape_cast %186 : vector<1x1x32x32xf32> to vector<32x32xf32>
    %cst_91 = arith.constant dense<0.000000e+00> : vector<16x32xf32>
    %188 = tpu.matmul %185, %187, %cst_91 {dimension_numbers = #tpu.dot_dimension_numbers<[1], [0], [0], [1], [0, 0, 1, 1], [], []>} : vector<16x32xf32>, vector<32x32xf32>, vector<16x32xf32> -> vector<16x32xf32>
    %c0_92 = arith.constant 0 : index
    %c3_93 = arith.constant 3 : index
    %c0_94 = arith.constant 0 : index
    %c0_95 = arith.constant 0 : index
    %189 = vector.load %arg5[%c0_92, %c3_93, %c0_94, %c0_95] : memref<2x4x1x32xf32, #tpu.memory_space<vmem>>, vector<1x1x1x32xf32>
    %190 = vector.shape_cast %189 : vector<1x1x1x32xf32> to vector<1x32xf32>
    %191 = vector.broadcast %190 : vector<1x32xf32> to vector<16x32xf32>
    %192 = arith.addf %188, %191 : vector<16x32xf32>
    %c0_96 = arith.constant 0 : index
    %c0_97 = arith.constant 0 : index
    %c0_98 = arith.constant 0 : index
    %c0_99 = arith.constant 0 : index
    %193 = vector.load %arg12[%c0_96, %c0_97, %c0_98, %c0_99] : memref<2x3x1x32xf32, #tpu.memory_space<vmem>>, vector<1x1x1x32xf32>
    %194 = vector.shape_cast %193 : vector<1x1x1x32xf32> to vector<1x32xf32>
    %c0_100 = arith.constant 0 : index
    %c0_101 = arith.constant 0 : index
    %c0_102 = arith.constant 0 : index
    %c0_103 = arith.constant 0 : index
    %195 = vector.load %arg13[%c0_100, %c0_101, %c0_102, %c0_103] : memref<2x3x1x32xf32, #tpu.memory_space<vmem>>, vector<1x1x1x32xf32>
    %196 = vector.shape_cast %195 : vector<1x1x1x32xf32> to vector<1x32xf32>
    %197 = arith.addf %192, %0 : vector<16x32xf32>
    %cst_104 = arith.constant dense<0.000000e+00> : vector<16xf32>
    %198 = vector.multi_reduction <add>, %197, %cst_104 [1] : vector<16x32xf32> to vector<16xf32>
    %199 = vector.shape_cast %198 : vector<16xf32> to vector<16x1xf32>
    %cst_105 = arith.constant 3.200000e+01 : f32
    %200 = vector.broadcast %cst_105 : f32 to vector<16x1xf32>
    %201 = arith.divf %199, %200 : vector<16x1xf32>
    %202 = vector.broadcast %201 : vector<16x1xf32> to vector<16x32xf32>
    %203 = arith.subf %197, %202 : vector<16x32xf32>
    %204 = arith.mulf %203, %203 : vector<16x32xf32>
    %cst_106 = arith.constant dense<0.000000e+00> : vector<16xf32>
    %205 = vector.multi_reduction <add>, %204, %cst_106 [1] : vector<16x32xf32> to vector<16xf32>
    %206 = vector.shape_cast %205 : vector<16xf32> to vector<16x1xf32>
    %cst_107 = arith.constant 3.200000e+01 : f32
    %207 = vector.broadcast %cst_107 : f32 to vector<16x1xf32>
    %208 = arith.divf %206, %207 : vector<16x1xf32>
    %cst_108 = arith.constant 9.99999974E-6 : f32
    %209 = vector.broadcast %cst_108 : f32 to vector<16x1xf32>
    %210 = arith.addf %208, %209 : vector<16x1xf32>
    %211 = math.rsqrt %210 : vector<16x1xf32>
    %212 = vector.broadcast %211 : vector<16x1xf32> to vector<16x32xf32>
    %213 = arith.mulf %203, %212 : vector<16x32xf32>
    %214 = vector.broadcast %194 : vector<1x32xf32> to vector<16x32xf32>
    %215 = arith.mulf %213, %214 : vector<16x32xf32>
    %216 = vector.broadcast %196 : vector<1x32xf32> to vector<16x32xf32>
    %217 = arith.addf %215, %216 : vector<16x32xf32>
    %c0_109 = arith.constant 0 : index
    %c0_110 = arith.constant 0 : index
    %c0_111 = arith.constant 0 : index
    %c0_112 = arith.constant 0 : index
    %218 = vector.load %arg6[%c0_109, %c0_110, %c0_111, %c0_112] : memref<2x4x32x32xf32, #tpu.memory_space<vmem>>, vector<1x1x32x32xf32>
    %219 = vector.shape_cast %218 : vector<1x1x32x32xf32> to vector<32x32xf32>
    %cst_113 = arith.constant dense<0.000000e+00> : vector<16x32xf32>
    %220 = tpu.matmul %217, %219, %cst_113 {dimension_numbers = #tpu.dot_dimension_numbers<[1], [0], [0], [1], [0, 0, 1, 1], [], []>} : vector<16x32xf32>, vector<32x32xf32>, vector<16x32xf32> -> vector<16x32xf32>
    %c0_114 = arith.constant 0 : index
    %c0_115 = arith.constant 0 : index
    %c0_116 = arith.constant 0 : index
    %c0_117 = arith.constant 0 : index
    %221 = vector.load %arg7[%c0_114, %c0_115, %c0_116, %c0_117] : memref<2x4x1x32xf32, #tpu.memory_space<vmem>>, vector<1x1x1x32xf32>
    %222 = vector.shape_cast %221 : vector<1x1x1x32xf32> to vector<1x32xf32>
    %223 = vector.broadcast %222 : vector<1x32xf32> to vector<16x32xf32>
    %224 = arith.addf %220, %223 : vector<16x32xf32>
    %c0_118 = arith.constant 0 : index
    %c1_119 = arith.constant 1 : index
    %c0_120 = arith.constant 0 : index
    %c0_121 = arith.constant 0 : index
    %225 = vector.load %arg6[%c0_118, %c1_119, %c0_120, %c0_121] : memref<2x4x32x32xf32, #tpu.memory_space<vmem>>, vector<1x1x32x32xf32>
    %226 = vector.shape_cast %225 : vector<1x1x32x32xf32> to vector<32x32xf32>
    %cst_122 = arith.constant dense<0.000000e+00> : vector<16x32xf32>
    %227 = tpu.matmul %1, %226, %cst_122 {dimension_numbers = #tpu.dot_dimension_numbers<[1], [0], [0], [1], [0, 0, 1, 1], [], []>} : vector<16x32xf32>, vector<32x32xf32>, vector<16x32xf32> -> vector<16x32xf32>
    %c0_123 = arith.constant 0 : index
    %c1_124 = arith.constant 1 : index
    %c0_125 = arith.constant 0 : index
    %c0_126 = arith.constant 0 : index
    %228 = vector.load %arg7[%c0_123, %c1_124, %c0_125, %c0_126] : memref<2x4x1x32xf32, #tpu.memory_space<vmem>>, vector<1x1x1x32xf32>
    %229 = vector.shape_cast %228 : vector<1x1x1x32xf32> to vector<1x32xf32>
    %230 = vector.broadcast %229 : vector<1x32xf32> to vector<16x32xf32>
    %231 = arith.addf %227, %230 : vector<16x32xf32>
    %c0_127 = arith.constant 0 : index
    %c2_128 = arith.constant 2 : index
    %c0_129 = arith.constant 0 : index
    %c0_130 = arith.constant 0 : index
    %232 = vector.load %arg6[%c0_127, %c2_128, %c0_129, %c0_130] : memref<2x4x32x32xf32, #tpu.memory_space<vmem>>, vector<1x1x32x32xf32>
    %233 = vector.shape_cast %232 : vector<1x1x32x32xf32> to vector<32x32xf32>
    %cst_131 = arith.constant dense<0.000000e+00> : vector<16x32xf32>
    %234 = tpu.matmul %1, %233, %cst_131 {dimension_numbers = #tpu.dot_dimension_numbers<[1], [0], [0], [1], [0, 0, 1, 1], [], []>} : vector<16x32xf32>, vector<32x32xf32>, vector<16x32xf32> -> vector<16x32xf32>
    %c0_132 = arith.constant 0 : index
    %c2_133 = arith.constant 2 : index
    %c0_134 = arith.constant 0 : index
    %c0_135 = arith.constant 0 : index
    %235 = vector.load %arg7[%c0_132, %c2_133, %c0_134, %c0_135] : memref<2x4x1x32xf32, #tpu.memory_space<vmem>>, vector<1x1x1x32xf32>
    %236 = vector.shape_cast %235 : vector<1x1x1x32xf32> to vector<1x32xf32>
    %237 = vector.broadcast %236 : vector<1x32xf32> to vector<16x32xf32>
    %238 = arith.addf %234, %237 : vector<16x32xf32>
    %239 = vector.extract_strided_slice %224 {offsets = [0, 0], sizes = [8, 32], strides = [1, 1]} : vector<16x32xf32> to vector<8x32xf32>
    %240 = vector.extract_strided_slice %231 {offsets = [0, 0], sizes = [8, 32], strides = [1, 1]} : vector<16x32xf32> to vector<8x32xf32>
    %241 = vector.extract_strided_slice %238 {offsets = [0, 0], sizes = [8, 32], strides = [1, 1]} : vector<16x32xf32> to vector<8x32xf32>
    %c0_136 = arith.constant 0 : index
    %c0_137 = arith.constant 0 : index
    %c0_138 = arith.constant 0 : index
    %242 = vector.load %arg3[%c0_136, %c0_137, %c0_138] : memref<2x1x8xf32, #tpu.memory_space<vmem>>, vector<1x1x8xf32>
    %243 = vector.shape_cast %242 : vector<1x1x8xf32> to vector<1x8xf32>
    %244 = vector.extract_strided_slice %239 {offsets = [0, 0], sizes = [8, 8], strides = [1, 1]} : vector<8x32xf32> to vector<8x8xf32>
    %245 = vector.extract_strided_slice %240 {offsets = [0, 0], sizes = [8, 8], strides = [1, 1]} : vector<8x32xf32> to vector<8x8xf32>
    %cst_139 = arith.constant dense<0.000000e+00> : vector<8x8xf32>
    %246 = tpu.matmul %244, %245, %cst_139 {dimension_numbers = #tpu.dot_dimension_numbers<[1], [1], [0], [0], [0, 0, 1, 0], [], []>} : vector<8x8xf32>, vector<8x8xf32>, vector<8x8xf32> -> vector<8x8xf32>
    %cst_140 = arith.constant 0.353553385 : f32
    %247 = vector.broadcast %cst_140 : f32 to vector<8x8xf32>
    %248 = arith.mulf %246, %247 : vector<8x8xf32>
    %249 = vector.broadcast %243 : vector<1x8xf32> to vector<8x8xf32>
    %250 = arith.addf %248, %249 : vector<8x8xf32>
    %cst_141 = arith.constant dense<0xFF800000> : vector<8xf32>
    %251 = vector.multi_reduction <maximumf>, %250, %cst_141 [1] : vector<8x8xf32> to vector<8xf32>
    %252 = vector.shape_cast %251 : vector<8xf32> to vector<8x1xf32>
    %253 = vector.broadcast %252 : vector<8x1xf32> to vector<8x8xf32>
    %254 = arith.subf %250, %253 : vector<8x8xf32>
    %255 = math.exp %254 : vector<8x8xf32>
    %cst_142 = arith.constant dense<0.000000e+00> : vector<8xf32>
    %256 = vector.multi_reduction <add>, %255, %cst_142 [1] : vector<8x8xf32> to vector<8xf32>
    %257 = vector.shape_cast %256 : vector<8xf32> to vector<8x1xf32>
    %258 = tpu.reciprocal %257 : vector<8x1xf32> -> vector<8x1xf32>
    %259 = vector.broadcast %258 : vector<8x1xf32> to vector<8x8xf32>
    %260 = arith.mulf %255, %259 : vector<8x8xf32>
    %261 = vector.extract_strided_slice %241 {offsets = [0, 0], sizes = [8, 8], strides = [1, 1]} : vector<8x32xf32> to vector<8x8xf32>
    %cst_143 = arith.constant dense<0.000000e+00> : vector<8x8xf32>
    %262 = tpu.matmul %260, %261, %cst_143 {dimension_numbers = #tpu.dot_dimension_numbers<[1], [0], [0], [1], [0, 0, 1, 1], [], []>} : vector<8x8xf32>, vector<8x8xf32>, vector<8x8xf32> -> vector<8x8xf32>
    %c0_144 = arith.constant 0 : index
    %c0_145 = arith.constant 0 : index
    %263 = vector.load %arg18[%c0_144, %c0_145] : memref<16x32xf32, #tpu.memory_space<vmem>>, vector<8x8xf32>
    tpu.vector_store %arg18[%c0_144, %c0_145], %262 {strides = array<i32>} : memref<16x32xf32, #tpu.memory_space<vmem>>, vector<8x8xf32>,
    %264 = vector.extract_strided_slice %239 {offsets = [0, 8], sizes = [8, 8], strides = [1, 1]} : vector<8x32xf32> to vector<8x8xf32>
    %265 = vector.extract_strided_slice %240 {offsets = [0, 8], sizes = [8, 8], strides = [1, 1]} : vector<8x32xf32> to vector<8x8xf32>
    %cst_146 = arith.constant dense<0.000000e+00> : vector<8x8xf32>
    %266 = tpu.matmul %264, %265, %cst_146 {dimension_numbers = #tpu.dot_dimension_numbers<[1], [1], [0], [0], [0, 0, 1, 0], [], []>} : vector<8x8xf32>, vector<8x8xf32>, vector<8x8xf32> -> vector<8x8xf32>
    %cst_147 = arith.constant 0.353553385 : f32
    %267 = vector.broadcast %cst_147 : f32 to vector<8x8xf32>
    %268 = arith.mulf %266, %267 : vector<8x8xf32>
    %269 = vector.broadcast %243 : vector<1x8xf32> to vector<8x8xf32>
    %270 = arith.addf %268, %269 : vector<8x8xf32>
    %cst_148 = arith.constant dense<0xFF800000> : vector<8xf32>
    %271 = vector.multi_reduction <maximumf>, %270, %cst_148 [1] : vector<8x8xf32> to vector<8xf32>
    %272 = vector.shape_cast %271 : vector<8xf32> to vector<8x1xf32>
    %273 = vector.broadcast %272 : vector<8x1xf32> to vector<8x8xf32>
    %274 = arith.subf %270, %273 : vector<8x8xf32>
    %275 = math.exp %274 : vector<8x8xf32>
    %cst_149 = arith.constant dense<0.000000e+00> : vector<8xf32>
    %276 = vector.multi_reduction <add>, %275, %cst_149 [1] : vector<8x8xf32> to vector<8xf32>
    %277 = vector.shape_cast %276 : vector<8xf32> to vector<8x1xf32>
    %278 = tpu.reciprocal %277 : vector<8x1xf32> -> vector<8x1xf32>
    %279 = vector.broadcast %278 : vector<8x1xf32> to vector<8x8xf32>
    %280 = arith.mulf %275, %279 : vector<8x8xf32>
    %281 = vector.extract_strided_slice %241 {offsets = [0, 8], sizes = [8, 8], strides = [1, 1]} : vector<8x32xf32> to vector<8x8xf32>
    %cst_150 = arith.constant dense<0.000000e+00> : vector<8x8xf32>
    %282 = tpu.matmul %280, %281, %cst_150 {dimension_numbers = #tpu.dot_dimension_numbers<[1], [0], [0], [1], [0, 0, 1, 1], [], []>} : vector<8x8xf32>, vector<8x8xf32>, vector<8x8xf32> -> vector<8x8xf32>
    %c0_151 = arith.constant 0 : index
    %c8_152 = arith.constant 8 : index
    %283 = vector.load %arg18[%c0_151, %c8_152] : memref<16x32xf32, #tpu.memory_space<vmem>>, vector<8x8xf32>
    tpu.vector_store %arg18[%c0_151, %c8_152], %282 {strides = array<i32>} : memref<16x32xf32, #tpu.memory_space<vmem>>, vector<8x8xf32>,
    %284 = vector.extract_strided_slice %239 {offsets = [0, 16], sizes = [8, 8], strides = [1, 1]} : vector<8x32xf32> to vector<8x8xf32>
    %285 = vector.extract_strided_slice %240 {offsets = [0, 16], sizes = [8, 8], strides = [1, 1]} : vector<8x32xf32> to vector<8x8xf32>
    %cst_153 = arith.constant dense<0.000000e+00> : vector<8x8xf32>
    %286 = tpu.matmul %284, %285, %cst_153 {dimension_numbers = #tpu.dot_dimension_numbers<[1], [1], [0], [0], [0, 0, 1, 0], [], []>} : vector<8x8xf32>, vector<8x8xf32>, vector<8x8xf32> -> vector<8x8xf32>
    %cst_154 = arith.constant 0.353553385 : f32
    %287 = vector.broadcast %cst_154 : f32 to vector<8x8xf32>
    %288 = arith.mulf %286, %287 : vector<8x8xf32>
    %289 = vector.broadcast %243 : vector<1x8xf32> to vector<8x8xf32>
    %290 = arith.addf %288, %289 : vector<8x8xf32>
    %cst_155 = arith.constant dense<0xFF800000> : vector<8xf32>
    %291 = vector.multi_reduction <maximumf>, %290, %cst_155 [1] : vector<8x8xf32> to vector<8xf32>
    %292 = vector.shape_cast %291 : vector<8xf32> to vector<8x1xf32>
    %293 = vector.broadcast %292 : vector<8x1xf32> to vector<8x8xf32>
    %294 = arith.subf %290, %293 : vector<8x8xf32>
    %295 = math.exp %294 : vector<8x8xf32>
    %cst_156 = arith.constant dense<0.000000e+00> : vector<8xf32>
    %296 = vector.multi_reduction <add>, %295, %cst_156 [1] : vector<8x8xf32> to vector<8xf32>
    %297 = vector.shape_cast %296 : vector<8xf32> to vector<8x1xf32>
    %298 = tpu.reciprocal %297 : vector<8x1xf32> -> vector<8x1xf32>
    %299 = vector.broadcast %298 : vector<8x1xf32> to vector<8x8xf32>
    %300 = arith.mulf %295, %299 : vector<8x8xf32>
    %301 = vector.extract_strided_slice %241 {offsets = [0, 16], sizes = [8, 8], strides = [1, 1]} : vector<8x32xf32> to vector<8x8xf32>
    %cst_157 = arith.constant dense<0.000000e+00> : vector<8x8xf32>
    %302 = tpu.matmul %300, %301, %cst_157 {dimension_numbers = #tpu.dot_dimension_numbers<[1], [0], [0], [1], [0, 0, 1, 1], [], []>} : vector<8x8xf32>, vector<8x8xf32>, vector<8x8xf32> -> vector<8x8xf32>
    %c0_158 = arith.constant 0 : index
    %c16_159 = arith.constant 16 : index
    %303 = vector.load %arg18[%c0_158, %c16_159] : memref<16x32xf32, #tpu.memory_space<vmem>>, vector<8x8xf32>
    tpu.vector_store %arg18[%c0_158, %c16_159], %302 {strides = array<i32>} : memref<16x32xf32, #tpu.memory_space<vmem>>, vector<8x8xf32>,
    %304 = vector.extract_strided_slice %239 {offsets = [0, 24], sizes = [8, 8], strides = [1, 1]} : vector<8x32xf32> to vector<8x8xf32>
    %305 = vector.extract_strided_slice %240 {offsets = [0, 24], sizes = [8, 8], strides = [1, 1]} : vector<8x32xf32> to vector<8x8xf32>
    %cst_160 = arith.constant dense<0.000000e+00> : vector<8x8xf32>
    %306 = tpu.matmul %304, %305, %cst_160 {dimension_numbers = #tpu.dot_dimension_numbers<[1], [1], [0], [0], [0, 0, 1, 0], [], []>} : vector<8x8xf32>, vector<8x8xf32>, vector<8x8xf32> -> vector<8x8xf32>
    %cst_161 = arith.constant 0.353553385 : f32
    %307 = vector.broadcast %cst_161 : f32 to vector<8x8xf32>
    %308 = arith.mulf %306, %307 : vector<8x8xf32>
    %309 = vector.broadcast %243 : vector<1x8xf32> to vector<8x8xf32>
    %310 = arith.addf %308, %309 : vector<8x8xf32>
    %cst_162 = arith.constant dense<0xFF800000> : vector<8xf32>
    %311 = vector.multi_reduction <maximumf>, %310, %cst_162 [1] : vector<8x8xf32> to vector<8xf32>
    %312 = vector.shape_cast %311 : vector<8xf32> to vector<8x1xf32>
    %313 = vector.broadcast %312 : vector<8x1xf32> to vector<8x8xf32>
    %314 = arith.subf %310, %313 : vector<8x8xf32>
    %315 = math.exp %314 : vector<8x8xf32>
    %cst_163 = arith.constant dense<0.000000e+00> : vector<8xf32>
    %316 = vector.multi_reduction <add>, %315, %cst_163 [1] : vector<8x8xf32> to vector<8xf32>
    %317 = vector.shape_cast %316 : vector<8xf32> to vector<8x1xf32>
    %318 = tpu.reciprocal %317 : vector<8x1xf32> -> vector<8x1xf32>
    %319 = vector.broadcast %318 : vector<8x1xf32> to vector<8x8xf32>
    %320 = arith.mulf %315, %319 : vector<8x8xf32>
    %321 = vector.extract_strided_slice %241 {offsets = [0, 24], sizes = [8, 8], strides = [1, 1]} : vector<8x32xf32> to vector<8x8xf32>
    %cst_164 = arith.constant dense<0.000000e+00> : vector<8x8xf32>
    %322 = tpu.matmul %320, %321, %cst_164 {dimension_numbers = #tpu.dot_dimension_numbers<[1], [0], [0], [1], [0, 0, 1, 1], [], []>} : vector<8x8xf32>, vector<8x8xf32>, vector<8x8xf32> -> vector<8x8xf32>
    %c0_165 = arith.constant 0 : index
    %c24_166 = arith.constant 24 : index
    %323 = vector.load %arg18[%c0_165, %c24_166] : memref<16x32xf32, #tpu.memory_space<vmem>>, vector<8x8xf32>
    tpu.vector_store %arg18[%c0_165, %c24_166], %322 {strides = array<i32>} : memref<16x32xf32, #tpu.memory_space<vmem>>, vector<8x8xf32>,
    %324 = vector.extract_strided_slice %224 {offsets = [8, 0], sizes = [8, 32], strides = [1, 1]} : vector<16x32xf32> to vector<8x32xf32>
    %325 = vector.extract_strided_slice %231 {offsets = [8, 0], sizes = [8, 32], strides = [1, 1]} : vector<16x32xf32> to vector<8x32xf32>
    %326 = vector.extract_strided_slice %238 {offsets = [8, 0], sizes = [8, 32], strides = [1, 1]} : vector<16x32xf32> to vector<8x32xf32>
    %c1_167 = arith.constant 1 : index
    %c0_168 = arith.constant 0 : index
    %c0_169 = arith.constant 0 : index
    %327 = vector.load %arg3[%c1_167, %c0_168, %c0_169] : memref<2x1x8xf32, #tpu.memory_space<vmem>>, vector<1x1x8xf32>
    %328 = vector.shape_cast %327 : vector<1x1x8xf32> to vector<1x8xf32>
    %329 = vector.extract_strided_slice %324 {offsets = [0, 0], sizes = [8, 8], strides = [1, 1]} : vector<8x32xf32> to vector<8x8xf32>
    %330 = vector.extract_strided_slice %325 {offsets = [0, 0], sizes = [8, 8], strides = [1, 1]} : vector<8x32xf32> to vector<8x8xf32>
    %cst_170 = arith.constant dense<0.000000e+00> : vector<8x8xf32>
    %331 = tpu.matmul %329, %330, %cst_170 {dimension_numbers = #tpu.dot_dimension_numbers<[1], [1], [0], [0], [0, 0, 1, 0], [], []>} : vector<8x8xf32>, vector<8x8xf32>, vector<8x8xf32> -> vector<8x8xf32>
    %cst_171 = arith.constant 0.353553385 : f32
    %332 = vector.broadcast %cst_171 : f32 to vector<8x8xf32>
    %333 = arith.mulf %331, %332 : vector<8x8xf32>
    %334 = vector.broadcast %328 : vector<1x8xf32> to vector<8x8xf32>
    %335 = arith.addf %333, %334 : vector<8x8xf32>
    %cst_172 = arith.constant dense<0xFF800000> : vector<8xf32>
    %336 = vector.multi_reduction <maximumf>, %335, %cst_172 [1] : vector<8x8xf32> to vector<8xf32>
    %337 = vector.shape_cast %336 : vector<8xf32> to vector<8x1xf32>
    %338 = vector.broadcast %337 : vector<8x1xf32> to vector<8x8xf32>
    %339 = arith.subf %335, %338 : vector<8x8xf32>
    %340 = math.exp %339 : vector<8x8xf32>
    %cst_173 = arith.constant dense<0.000000e+00> : vector<8xf32>
    %341 = vector.multi_reduction <add>, %340, %cst_173 [1] : vector<8x8xf32> to vector<8xf32>
    %342 = vector.shape_cast %341 : vector<8xf32> to vector<8x1xf32>
    %343 = tpu.reciprocal %342 : vector<8x1xf32> -> vector<8x1xf32>
    %344 = vector.broadcast %343 : vector<8x1xf32> to vector<8x8xf32>
    %345 = arith.mulf %340, %344 : vector<8x8xf32>
    %346 = vector.extract_strided_slice %326 {offsets = [0, 0], sizes = [8, 8], strides = [1, 1]} : vector<8x32xf32> to vector<8x8xf32>
    %cst_174 = arith.constant dense<0.000000e+00> : vector<8x8xf32>
    %347 = tpu.matmul %345, %346, %cst_174 {dimension_numbers = #tpu.dot_dimension_numbers<[1], [0], [0], [1], [0, 0, 1, 1], [], []>} : vector<8x8xf32>, vector<8x8xf32>, vector<8x8xf32> -> vector<8x8xf32>
    %c8_175 = arith.constant 8 : index
    %c0_176 = arith.constant 0 : index
    %348 = vector.load %arg18[%c8_175, %c0_176] : memref<16x32xf32, #tpu.memory_space<vmem>>, vector<8x8xf32>
    tpu.vector_store %arg18[%c8_175, %c0_176], %347 {strides = array<i32>} : memref<16x32xf32, #tpu.memory_space<vmem>>, vector<8x8xf32>,
    %349 = vector.extract_strided_slice %324 {offsets = [0, 8], sizes = [8, 8], strides = [1, 1]} : vector<8x32xf32> to vector<8x8xf32>
    %350 = vector.extract_strided_slice %325 {offsets = [0, 8], sizes = [8, 8], strides = [1, 1]} : vector<8x32xf32> to vector<8x8xf32>
    %cst_177 = arith.constant dense<0.000000e+00> : vector<8x8xf32>
    %351 = tpu.matmul %349, %350, %cst_177 {dimension_numbers = #tpu.dot_dimension_numbers<[1], [1], [0], [0], [0, 0, 1, 0], [], []>} : vector<8x8xf32>, vector<8x8xf32>, vector<8x8xf32> -> vector<8x8xf32>
    %cst_178 = arith.constant 0.353553385 : f32
    %352 = vector.broadcast %cst_178 : f32 to vector<8x8xf32>
    %353 = arith.mulf %351, %352 : vector<8x8xf32>
    %354 = vector.broadcast %328 : vector<1x8xf32> to vector<8x8xf32>
    %355 = arith.addf %353, %354 : vector<8x8xf32>
    %cst_179 = arith.constant dense<0xFF800000> : vector<8xf32>
    %356 = vector.multi_reduction <maximumf>, %355, %cst_179 [1] : vector<8x8xf32> to vector<8xf32>
    %357 = vector.shape_cast %356 : vector<8xf32> to vector<8x1xf32>
    %358 = vector.broadcast %357 : vector<8x1xf32> to vector<8x8xf32>
    %359 = arith.subf %355, %358 : vector<8x8xf32>
    %360 = math.exp %359 : vector<8x8xf32>
    %cst_180 = arith.constant dense<0.000000e+00> : vector<8xf32>
    %361 = vector.multi_reduction <add>, %360, %cst_180 [1] : vector<8x8xf32> to vector<8xf32>
    %362 = vector.shape_cast %361 : vector<8xf32> to vector<8x1xf32>
    %363 = tpu.reciprocal %362 : vector<8x1xf32> -> vector<8x1xf32>
    %364 = vector.broadcast %363 : vector<8x1xf32> to vector<8x8xf32>
    %365 = arith.mulf %360, %364 : vector<8x8xf32>
    %366 = vector.extract_strided_slice %326 {offsets = [0, 8], sizes = [8, 8], strides = [1, 1]} : vector<8x32xf32> to vector<8x8xf32>
    %cst_181 = arith.constant dense<0.000000e+00> : vector<8x8xf32>
    %367 = tpu.matmul %365, %366, %cst_181 {dimension_numbers = #tpu.dot_dimension_numbers<[1], [0], [0], [1], [0, 0, 1, 1], [], []>} : vector<8x8xf32>, vector<8x8xf32>, vector<8x8xf32> -> vector<8x8xf32>
    %c8_182 = arith.constant 8 : index
    %c8_183 = arith.constant 8 : index
    %368 = vector.load %arg18[%c8_182, %c8_183] : memref<16x32xf32, #tpu.memory_space<vmem>>, vector<8x8xf32>
    tpu.vector_store %arg18[%c8_182, %c8_183], %367 {strides = array<i32>} : memref<16x32xf32, #tpu.memory_space<vmem>>, vector<8x8xf32>,
    %369 = vector.extract_strided_slice %324 {offsets = [0, 16], sizes = [8, 8], strides = [1, 1]} : vector<8x32xf32> to vector<8x8xf32>
    %370 = vector.extract_strided_slice %325 {offsets = [0, 16], sizes = [8, 8], strides = [1, 1]} : vector<8x32xf32> to vector<8x8xf32>
    %cst_184 = arith.constant dense<0.000000e+00> : vector<8x8xf32>
    %371 = tpu.matmul %369, %370, %cst_184 {dimension_numbers = #tpu.dot_dimension_numbers<[1], [1], [0], [0], [0, 0, 1, 0], [], []>} : vector<8x8xf32>, vector<8x8xf32>, vector<8x8xf32> -> vector<8x8xf32>
    %cst_185 = arith.constant 0.353553385 : f32
    %372 = vector.broadcast %cst_185 : f32 to vector<8x8xf32>
    %373 = arith.mulf %371, %372 : vector<8x8xf32>
    %374 = vector.broadcast %328 : vector<1x8xf32> to vector<8x8xf32>
    %375 = arith.addf %373, %374 : vector<8x8xf32>
    %cst_186 = arith.constant dense<0xFF800000> : vector<8xf32>
    %376 = vector.multi_reduction <maximumf>, %375, %cst_186 [1] : vector<8x8xf32> to vector<8xf32>
    %377 = vector.shape_cast %376 : vector<8xf32> to vector<8x1xf32>
    %378 = vector.broadcast %377 : vector<8x1xf32> to vector<8x8xf32>
    %379 = arith.subf %375, %378 : vector<8x8xf32>
    %380 = math.exp %379 : vector<8x8xf32>
    %cst_187 = arith.constant dense<0.000000e+00> : vector<8xf32>
    %381 = vector.multi_reduction <add>, %380, %cst_187 [1] : vector<8x8xf32> to vector<8xf32>
    %382 = vector.shape_cast %381 : vector<8xf32> to vector<8x1xf32>
    %383 = tpu.reciprocal %382 : vector<8x1xf32> -> vector<8x1xf32>
    %384 = vector.broadcast %383 : vector<8x1xf32> to vector<8x8xf32>
    %385 = arith.mulf %380, %384 : vector<8x8xf32>
    %386 = vector.extract_strided_slice %326 {offsets = [0, 16], sizes = [8, 8], strides = [1, 1]} : vector<8x32xf32> to vector<8x8xf32>
    %cst_188 = arith.constant dense<0.000000e+00> : vector<8x8xf32>
    %387 = tpu.matmul %385, %386, %cst_188 {dimension_numbers = #tpu.dot_dimension_numbers<[1], [0], [0], [1], [0, 0, 1, 1], [], []>} : vector<8x8xf32>, vector<8x8xf32>, vector<8x8xf32> -> vector<8x8xf32>
    %c8_189 = arith.constant 8 : index
    %c16_190 = arith.constant 16 : index
    %388 = vector.load %arg18[%c8_189, %c16_190] : memref<16x32xf32, #tpu.memory_space<vmem>>, vector<8x8xf32>
    tpu.vector_store %arg18[%c8_189, %c16_190], %387 {strides = array<i32>} : memref<16x32xf32, #tpu.memory_space<vmem>>, vector<8x8xf32>,
    %389 = vector.extract_strided_slice %324 {offsets = [0, 24], sizes = [8, 8], strides = [1, 1]} : vector<8x32xf32> to vector<8x8xf32>
    %390 = vector.extract_strided_slice %325 {offsets = [0, 24], sizes = [8, 8], strides = [1, 1]} : vector<8x32xf32> to vector<8x8xf32>
    %cst_191 = arith.constant dense<0.000000e+00> : vector<8x8xf32>
    %391 = tpu.matmul %389, %390, %cst_191 {dimension_numbers = #tpu.dot_dimension_numbers<[1], [1], [0], [0], [0, 0, 1, 0], [], []>} : vector<8x8xf32>, vector<8x8xf32>, vector<8x8xf32> -> vector<8x8xf32>
    %cst_192 = arith.constant 0.353553385 : f32
    %392 = vector.broadcast %cst_192 : f32 to vector<8x8xf32>
    %393 = arith.mulf %391, %392 : vector<8x8xf32>
    %394 = vector.broadcast %328 : vector<1x8xf32> to vector<8x8xf32>
    %395 = arith.addf %393, %394 : vector<8x8xf32>
    %cst_193 = arith.constant dense<0xFF800000> : vector<8xf32>
    %396 = vector.multi_reduction <maximumf>, %395, %cst_193 [1] : vector<8x8xf32> to vector<8xf32>
    %397 = vector.shape_cast %396 : vector<8xf32> to vector<8x1xf32>
    %398 = vector.broadcast %397 : vector<8x1xf32> to vector<8x8xf32>
    %399 = arith.subf %395, %398 : vector<8x8xf32>
    %400 = math.exp %399 : vector<8x8xf32>
    %cst_194 = arith.constant dense<0.000000e+00> : vector<8xf32>
    %401 = vector.multi_reduction <add>, %400, %cst_194 [1] : vector<8x8xf32> to vector<8xf32>
    %402 = vector.shape_cast %401 : vector<8xf32> to vector<8x1xf32>
    %403 = tpu.reciprocal %402 : vector<8x1xf32> -> vector<8x1xf32>
    %404 = vector.broadcast %403 : vector<8x1xf32> to vector<8x8xf32>
    %405 = arith.mulf %400, %404 : vector<8x8xf32>
    %406 = vector.extract_strided_slice %326 {offsets = [0, 24], sizes = [8, 8], strides = [1, 1]} : vector<8x32xf32> to vector<8x8xf32>
    %cst_195 = arith.constant dense<0.000000e+00> : vector<8x8xf32>
    %407 = tpu.matmul %405, %406, %cst_195 {dimension_numbers = #tpu.dot_dimension_numbers<[1], [0], [0], [1], [0, 0, 1, 1], [], []>} : vector<8x8xf32>, vector<8x8xf32>, vector<8x8xf32> -> vector<8x8xf32>
    %c8_196 = arith.constant 8 : index
    %c24_197 = arith.constant 24 : index
    %408 = vector.load %arg18[%c8_196, %c24_197] : memref<16x32xf32, #tpu.memory_space<vmem>>, vector<8x8xf32>
    tpu.vector_store %arg18[%c8_196, %c24_197], %407 {strides = array<i32>} : memref<16x32xf32, #tpu.memory_space<vmem>>, vector<8x8xf32>,
    %c0_198 = arith.constant 0 : index
    %c0_199 = arith.constant 0 : index
    %409 = vector.load %arg18[%c0_198, %c0_199] : memref<16x32xf32, #tpu.memory_space<vmem>>, vector<16x32xf32>
    %c0_200 = arith.constant 0 : index
    %c3_201 = arith.constant 3 : index
    %c0_202 = arith.constant 0 : index
    %c0_203 = arith.constant 0 : index
    %410 = vector.load %arg6[%c0_200, %c3_201, %c0_202, %c0_203] : memref<2x4x32x32xf32, #tpu.memory_space<vmem>>, vector<1x1x32x32xf32>
    %411 = vector.shape_cast %410 : vector<1x1x32x32xf32> to vector<32x32xf32>
    %cst_204 = arith.constant dense<0.000000e+00> : vector<16x32xf32>
    %412 = tpu.matmul %409, %411, %cst_204 {dimension_numbers = #tpu.dot_dimension_numbers<[1], [0], [0], [1], [0, 0, 1, 1], [], []>} : vector<16x32xf32>, vector<32x32xf32>, vector<16x32xf32> -> vector<16x32xf32>
    %c0_205 = arith.constant 0 : index
    %c3_206 = arith.constant 3 : index
    %c0_207 = arith.constant 0 : index
    %c0_208 = arith.constant 0 : index
    %413 = vector.load %arg7[%c0_205, %c3_206, %c0_207, %c0_208] : memref<2x4x1x32xf32, #tpu.memory_space<vmem>>, vector<1x1x1x32xf32>
    %414 = vector.shape_cast %413 : vector<1x1x1x32xf32> to vector<1x32xf32>
    %415 = vector.broadcast %414 : vector<1x32xf32> to vector<16x32xf32>
    %416 = arith.addf %412, %415 : vector<16x32xf32>
    %c0_209 = arith.constant 0 : index
    %c1_210 = arith.constant 1 : index
    %c0_211 = arith.constant 0 : index
    %c0_212 = arith.constant 0 : index
    %417 = vector.load %arg12[%c0_209, %c1_210, %c0_211, %c0_212] : memref<2x3x1x32xf32, #tpu.memory_space<vmem>>, vector<1x1x1x32xf32>
    %418 = vector.shape_cast %417 : vector<1x1x1x32xf32> to vector<1x32xf32>
    %c0_213 = arith.constant 0 : index
    %c1_214 = arith.constant 1 : index
    %c0_215 = arith.constant 0 : index
    %c0_216 = arith.constant 0 : index
    %419 = vector.load %arg13[%c0_213, %c1_214, %c0_215, %c0_216] : memref<2x3x1x32xf32, #tpu.memory_space<vmem>>, vector<1x1x1x32xf32>
    %420 = vector.shape_cast %419 : vector<1x1x1x32xf32> to vector<1x32xf32>
    %421 = arith.addf %416, %217 : vector<16x32xf32>
    %cst_217 = arith.constant dense<0.000000e+00> : vector<16xf32>
    %422 = vector.multi_reduction <add>, %421, %cst_217 [1] : vector<16x32xf32> to vector<16xf32>
    %423 = vector.shape_cast %422 : vector<16xf32> to vector<16x1xf32>
    %cst_218 = arith.constant 3.200000e+01 : f32
    %424 = vector.broadcast %cst_218 : f32 to vector<16x1xf32>
    %425 = arith.divf %423, %424 : vector<16x1xf32>
    %426 = vector.broadcast %425 : vector<16x1xf32> to vector<16x32xf32>
    %427 = arith.subf %421, %426 : vector<16x32xf32>
    %428 = arith.mulf %427, %427 : vector<16x32xf32>
    %cst_219 = arith.constant dense<0.000000e+00> : vector<16xf32>
    %429 = vector.multi_reduction <add>, %428, %cst_219 [1] : vector<16x32xf32> to vector<16xf32>
    %430 = vector.shape_cast %429 : vector<16xf32> to vector<16x1xf32>
    %cst_220 = arith.constant 3.200000e+01 : f32
    %431 = vector.broadcast %cst_220 : f32 to vector<16x1xf32>
    %432 = arith.divf %430, %431 : vector<16x1xf32>
    %cst_221 = arith.constant 9.99999974E-6 : f32
    %433 = vector.broadcast %cst_221 : f32 to vector<16x1xf32>
    %434 = arith.addf %432, %433 : vector<16x1xf32>
    %435 = math.rsqrt %434 : vector<16x1xf32>
    %436 = vector.broadcast %435 : vector<16x1xf32> to vector<16x32xf32>
    %437 = arith.mulf %427, %436 : vector<16x32xf32>
    %438 = vector.broadcast %418 : vector<1x32xf32> to vector<16x32xf32>
    %439 = arith.mulf %437, %438 : vector<16x32xf32>
    %440 = vector.broadcast %420 : vector<1x32xf32> to vector<16x32xf32>
    %441 = arith.addf %439, %440 : vector<16x32xf32>
    %c0_222 = arith.constant 0 : index
    %c0_223 = arith.constant 0 : index
    %c0_224 = arith.constant 0 : index
    %442 = vector.load %arg8[%c0_222, %c0_223, %c0_224] : memref<2x32x64xf32, #tpu.memory_space<vmem>>, vector<1x32x64xf32>
    %443 = vector.shape_cast %442 : vector<1x32x64xf32> to vector<32x64xf32>
    %cst_225 = arith.constant dense<0.000000e+00> : vector<16x64xf32>
    %444 = tpu.matmul %441, %443, %cst_225 {dimension_numbers = #tpu.dot_dimension_numbers<[1], [0], [0], [1], [0, 0, 1, 1], [], []>} : vector<16x32xf32>, vector<32x64xf32>, vector<16x64xf32> -> vector<16x64xf32>
    %c0_226 = arith.constant 0 : index
    %c0_227 = arith.constant 0 : index
    %c0_228 = arith.constant 0 : index
    %445 = vector.load %arg9[%c0_226, %c0_227, %c0_228] : memref<2x1x64xf32, #tpu.memory_space<vmem>>, vector<1x1x64xf32>
    %446 = vector.shape_cast %445 : vector<1x1x64xf32> to vector<1x64xf32>
    %447 = vector.broadcast %446 : vector<1x64xf32> to vector<16x64xf32>
    %448 = arith.addf %444, %447 : vector<16x64xf32>
    %cst_229 = arith.constant 0.000000e+00 : f32
    %449 = vector.broadcast %cst_229 : f32 to vector<16x64xf32>
    %450 = arith.maximumf %448, %449 : vector<16x64xf32>
    %c0_230 = arith.constant 0 : index
    %c0_231 = arith.constant 0 : index
    %c0_232 = arith.constant 0 : index
    %451 = vector.load %arg10[%c0_230, %c0_231, %c0_232] : memref<2x64x32xf32, #tpu.memory_space<vmem>>, vector<1x64x32xf32>
    %452 = vector.shape_cast %451 : vector<1x64x32xf32> to vector<64x32xf32>
    %cst_233 = arith.constant dense<0.000000e+00> : vector<16x32xf32>
    %453 = tpu.matmul %450, %452, %cst_233 {dimension_numbers = #tpu.dot_dimension_numbers<[1], [0], [0], [1], [0, 0, 1, 1], [], []>} : vector<16x64xf32>, vector<64x32xf32>, vector<16x32xf32> -> vector<16x32xf32>
    %c0_234 = arith.constant 0 : index
    %c0_235 = arith.constant 0 : index
    %c0_236 = arith.constant 0 : index
    %454 = vector.load %arg11[%c0_234, %c0_235, %c0_236] : memref<2x1x32xf32, #tpu.memory_space<vmem>>, vector<1x1x32xf32>
    %455 = vector.shape_cast %454 : vector<1x1x32xf32> to vector<1x32xf32>
    %456 = vector.broadcast %455 : vector<1x32xf32> to vector<16x32xf32>
    %457 = arith.addf %453, %456 : vector<16x32xf32>
    %c0_237 = arith.constant 0 : index
    %c2_238 = arith.constant 2 : index
    %c0_239 = arith.constant 0 : index
    %c0_240 = arith.constant 0 : index
    %458 = vector.load %arg12[%c0_237, %c2_238, %c0_239, %c0_240] : memref<2x3x1x32xf32, #tpu.memory_space<vmem>>, vector<1x1x1x32xf32>
    %459 = vector.shape_cast %458 : vector<1x1x1x32xf32> to vector<1x32xf32>
    %c0_241 = arith.constant 0 : index
    %c2_242 = arith.constant 2 : index
    %c0_243 = arith.constant 0 : index
    %c0_244 = arith.constant 0 : index
    %460 = vector.load %arg13[%c0_241, %c2_242, %c0_243, %c0_244] : memref<2x3x1x32xf32, #tpu.memory_space<vmem>>, vector<1x1x1x32xf32>
    %461 = vector.shape_cast %460 : vector<1x1x1x32xf32> to vector<1x32xf32>
    %462 = arith.addf %457, %441 : vector<16x32xf32>
    %cst_245 = arith.constant dense<0.000000e+00> : vector<16xf32>
    %463 = vector.multi_reduction <add>, %462, %cst_245 [1] : vector<16x32xf32> to vector<16xf32>
    %464 = vector.shape_cast %463 : vector<16xf32> to vector<16x1xf32>
    %cst_246 = arith.constant 3.200000e+01 : f32
    %465 = vector.broadcast %cst_246 : f32 to vector<16x1xf32>
    %466 = arith.divf %464, %465 : vector<16x1xf32>
    %467 = vector.broadcast %466 : vector<16x1xf32> to vector<16x32xf32>
    %468 = arith.subf %462, %467 : vector<16x32xf32>
    %469 = arith.mulf %468, %468 : vector<16x32xf32>
    %cst_247 = arith.constant dense<0.000000e+00> : vector<16xf32>
    %470 = vector.multi_reduction <add>, %469, %cst_247 [1] : vector<16x32xf32> to vector<16xf32>
    %471 = vector.shape_cast %470 : vector<16xf32> to vector<16x1xf32>
    %cst_248 = arith.constant 3.200000e+01 : f32
    %472 = vector.broadcast %cst_248 : f32 to vector<16x1xf32>
    %473 = arith.divf %471, %472 : vector<16x1xf32>
    %cst_249 = arith.constant 9.99999974E-6 : f32
    %474 = vector.broadcast %cst_249 : f32 to vector<16x1xf32>
    %475 = arith.addf %473, %474 : vector<16x1xf32>
    %476 = math.rsqrt %475 : vector<16x1xf32>
    %477 = vector.broadcast %476 : vector<16x1xf32> to vector<16x32xf32>
    %478 = arith.mulf %468, %477 : vector<16x32xf32>
    %479 = vector.broadcast %459 : vector<1x32xf32> to vector<16x32xf32>
    %480 = arith.mulf %478, %479 : vector<16x32xf32>
    %481 = vector.broadcast %461 : vector<1x32xf32> to vector<16x32xf32>
    %482 = arith.addf %480, %481 : vector<16x32xf32>
    %c1_250 = arith.constant 1 : index
    %c0_251 = arith.constant 0 : index
    %c0_252 = arith.constant 0 : index
    %c0_253 = arith.constant 0 : index
    %483 = vector.load %arg4[%c1_250, %c0_251, %c0_252, %c0_253] : memref<2x4x32x32xf32, #tpu.memory_space<vmem>>, vector<1x1x32x32xf32>
    %484 = vector.shape_cast %483 : vector<1x1x32x32xf32> to vector<32x32xf32>
    %cst_254 = arith.constant dense<0.000000e+00> : vector<16x32xf32>
    %485 = tpu.matmul %482, %484, %cst_254 {dimension_numbers = #tpu.dot_dimension_numbers<[1], [0], [0], [1], [0, 0, 1, 1], [], []>} : vector<16x32xf32>, vector<32x32xf32>, vector<16x32xf32> -> vector<16x32xf32>
    %c1_255 = arith.constant 1 : index
    %c0_256 = arith.constant 0 : index
    %c0_257 = arith.constant 0 : index
    %c0_258 = arith.constant 0 : index
    %486 = vector.load %arg5[%c1_255, %c0_256, %c0_257, %c0_258] : memref<2x4x1x32xf32, #tpu.memory_space<vmem>>, vector<1x1x1x32xf32>
    %487 = vector.shape_cast %486 : vector<1x1x1x32xf32> to vector<1x32xf32>
    %488 = vector.broadcast %487 : vector<1x32xf32> to vector<16x32xf32>
    %489 = arith.addf %485, %488 : vector<16x32xf32>
    %c1_259 = arith.constant 1 : index
    %c1_260 = arith.constant 1 : index
    %c0_261 = arith.constant 0 : index
    %c0_262 = arith.constant 0 : index
    %490 = vector.load %arg4[%c1_259, %c1_260, %c0_261, %c0_262] : memref<2x4x32x32xf32, #tpu.memory_space<vmem>>, vector<1x1x32x32xf32>
    %491 = vector.shape_cast %490 : vector<1x1x32x32xf32> to vector<32x32xf32>
    %cst_263 = arith.constant dense<0.000000e+00> : vector<16x32xf32>
    %492 = tpu.matmul %482, %491, %cst_263 {dimension_numbers = #tpu.dot_dimension_numbers<[1], [0], [0], [1], [0, 0, 1, 1], [], []>} : vector<16x32xf32>, vector<32x32xf32>, vector<16x32xf32> -> vector<16x32xf32>
    %c1_264 = arith.constant 1 : index
    %c1_265 = arith.constant 1 : index
    %c0_266 = arith.constant 0 : index
    %c0_267 = arith.constant 0 : index
    %493 = vector.load %arg5[%c1_264, %c1_265, %c0_266, %c0_267] : memref<2x4x1x32xf32, #tpu.memory_space<vmem>>, vector<1x1x1x32xf32>
    %494 = vector.shape_cast %493 : vector<1x1x1x32xf32> to vector<1x32xf32>
    %495 = vector.broadcast %494 : vector<1x32xf32> to vector<16x32xf32>
    %496 = arith.addf %492, %495 : vector<16x32xf32>
    %c1_268 = arith.constant 1 : index
    %c2_269 = arith.constant 2 : index
    %c0_270 = arith.constant 0 : index
    %c0_271 = arith.constant 0 : index
    %497 = vector.load %arg4[%c1_268, %c2_269, %c0_270, %c0_271] : memref<2x4x32x32xf32, #tpu.memory_space<vmem>>, vector<1x1x32x32xf32>
    %498 = vector.shape_cast %497 : vector<1x1x32x32xf32> to vector<32x32xf32>
    %cst_272 = arith.constant dense<0.000000e+00> : vector<16x32xf32>
    %499 = tpu.matmul %482, %498, %cst_272 {dimension_numbers = #tpu.dot_dimension_numbers<[1], [0], [0], [1], [0, 0, 1, 1], [], []>} : vector<16x32xf32>, vector<32x32xf32>, vector<16x32xf32> -> vector<16x32xf32>
    %c1_273 = arith.constant 1 : index
    %c2_274 = arith.constant 2 : index
    %c0_275 = arith.constant 0 : index
    %c0_276 = arith.constant 0 : index
    %500 = vector.load %arg5[%c1_273, %c2_274, %c0_275, %c0_276] : memref<2x4x1x32xf32, #tpu.memory_space<vmem>>, vector<1x1x1x32xf32>
    %501 = vector.shape_cast %500 : vector<1x1x1x32xf32> to vector<1x32xf32>
    %502 = vector.broadcast %501 : vector<1x32xf32> to vector<16x32xf32>
    %503 = arith.addf %499, %502 : vector<16x32xf32>
    %504 = vector.extract_strided_slice %489 {offsets = [0, 0], sizes = [8, 32], strides = [1, 1]} : vector<16x32xf32> to vector<8x32xf32>
    %505 = vector.extract_strided_slice %496 {offsets = [0, 0], sizes = [8, 32], strides = [1, 1]} : vector<16x32xf32> to vector<8x32xf32>
    %506 = vector.extract_strided_slice %503 {offsets = [0, 0], sizes = [8, 32], strides = [1, 1]} : vector<16x32xf32> to vector<8x32xf32>
    %c0_277 = arith.constant 0 : index
    %c0_278 = arith.constant 0 : index
    %c0_279 = arith.constant 0 : index
    %507 = vector.load %arg2[%c0_277, %c0_278, %c0_279] : memref<2x8x8xf32, #tpu.memory_space<vmem>>, vector<1x8x8xf32>
    %508 = vector.shape_cast %507 : vector<1x8x8xf32> to vector<8x8xf32>
    %509 = vector.extract_strided_slice %504 {offsets = [0, 0], sizes = [8, 8], strides = [1, 1]} : vector<8x32xf32> to vector<8x8xf32>
    %510 = vector.extract_strided_slice %505 {offsets = [0, 0], sizes = [8, 8], strides = [1, 1]} : vector<8x32xf32> to vector<8x8xf32>
    %cst_280 = arith.constant dense<0.000000e+00> : vector<8x8xf32>
    %511 = tpu.matmul %509, %510, %cst_280 {dimension_numbers = #tpu.dot_dimension_numbers<[1], [1], [0], [0], [0, 0, 1, 0], [], []>} : vector<8x8xf32>, vector<8x8xf32>, vector<8x8xf32> -> vector<8x8xf32>
    %cst_281 = arith.constant 0.353553385 : f32
    %512 = vector.broadcast %cst_281 : f32 to vector<8x8xf32>
    %513 = arith.mulf %511, %512 : vector<8x8xf32>
    %514 = arith.addf %513, %508 : vector<8x8xf32>
    %cst_282 = arith.constant dense<0xFF800000> : vector<8xf32>
    %515 = vector.multi_reduction <maximumf>, %514, %cst_282 [1] : vector<8x8xf32> to vector<8xf32>
    %516 = vector.shape_cast %515 : vector<8xf32> to vector<8x1xf32>
    %517 = vector.broadcast %516 : vector<8x1xf32> to vector<8x8xf32>
    %518 = arith.subf %514, %517 : vector<8x8xf32>
    %519 = math.exp %518 : vector<8x8xf32>
    %cst_283 = arith.constant dense<0.000000e+00> : vector<8xf32>
    %520 = vector.multi_reduction <add>, %519, %cst_283 [1] : vector<8x8xf32> to vector<8xf32>
    %521 = vector.shape_cast %520 : vector<8xf32> to vector<8x1xf32>
    %522 = tpu.reciprocal %521 : vector<8x1xf32> -> vector<8x1xf32>
    %523 = vector.broadcast %522 : vector<8x1xf32> to vector<8x8xf32>
    %524 = arith.mulf %519, %523 : vector<8x8xf32>
    %525 = vector.extract_strided_slice %506 {offsets = [0, 0], sizes = [8, 8], strides = [1, 1]} : vector<8x32xf32> to vector<8x8xf32>
    %cst_284 = arith.constant dense<0.000000e+00> : vector<8x8xf32>
    %526 = tpu.matmul %524, %525, %cst_284 {dimension_numbers = #tpu.dot_dimension_numbers<[1], [0], [0], [1], [0, 0, 1, 1], [], []>} : vector<8x8xf32>, vector<8x8xf32>, vector<8x8xf32> -> vector<8x8xf32>
    %c0_285 = arith.constant 0 : index
    %c0_286 = arith.constant 0 : index
    %527 = vector.load %arg18[%c0_285, %c0_286] : memref<16x32xf32, #tpu.memory_space<vmem>>, vector<8x8xf32>
    tpu.vector_store %arg18[%c0_285, %c0_286], %526 {strides = array<i32>} : memref<16x32xf32, #tpu.memory_space<vmem>>, vector<8x8xf32>,
    %528 = vector.extract_strided_slice %504 {offsets = [0, 8], sizes = [8, 8], strides = [1, 1]} : vector<8x32xf32> to vector<8x8xf32>
    %529 = vector.extract_strided_slice %505 {offsets = [0, 8], sizes = [8, 8], strides = [1, 1]} : vector<8x32xf32> to vector<8x8xf32>
    %cst_287 = arith.constant dense<0.000000e+00> : vector<8x8xf32>
    %530 = tpu.matmul %528, %529, %cst_287 {dimension_numbers = #tpu.dot_dimension_numbers<[1], [1], [0], [0], [0, 0, 1, 0], [], []>} : vector<8x8xf32>, vector<8x8xf32>, vector<8x8xf32> -> vector<8x8xf32>
    %cst_288 = arith.constant 0.353553385 : f32
    %531 = vector.broadcast %cst_288 : f32 to vector<8x8xf32>
    %532 = arith.mulf %530, %531 : vector<8x8xf32>
    %533 = arith.addf %532, %508 : vector<8x8xf32>
    %cst_289 = arith.constant dense<0xFF800000> : vector<8xf32>
    %534 = vector.multi_reduction <maximumf>, %533, %cst_289 [1] : vector<8x8xf32> to vector<8xf32>
    %535 = vector.shape_cast %534 : vector<8xf32> to vector<8x1xf32>
    %536 = vector.broadcast %535 : vector<8x1xf32> to vector<8x8xf32>
    %537 = arith.subf %533, %536 : vector<8x8xf32>
    %538 = math.exp %537 : vector<8x8xf32>
    %cst_290 = arith.constant dense<0.000000e+00> : vector<8xf32>
    %539 = vector.multi_reduction <add>, %538, %cst_290 [1] : vector<8x8xf32> to vector<8xf32>
    %540 = vector.shape_cast %539 : vector<8xf32> to vector<8x1xf32>
    %541 = tpu.reciprocal %540 : vector<8x1xf32> -> vector<8x1xf32>
    %542 = vector.broadcast %541 : vector<8x1xf32> to vector<8x8xf32>
    %543 = arith.mulf %538, %542 : vector<8x8xf32>
    %544 = vector.extract_strided_slice %506 {offsets = [0, 8], sizes = [8, 8], strides = [1, 1]} : vector<8x32xf32> to vector<8x8xf32>
    %cst_291 = arith.constant dense<0.000000e+00> : vector<8x8xf32>
    %545 = tpu.matmul %543, %544, %cst_291 {dimension_numbers = #tpu.dot_dimension_numbers<[1], [0], [0], [1], [0, 0, 1, 1], [], []>} : vector<8x8xf32>, vector<8x8xf32>, vector<8x8xf32> -> vector<8x8xf32>
    %c0_292 = arith.constant 0 : index
    %c8_293 = arith.constant 8 : index
    %546 = vector.load %arg18[%c0_292, %c8_293] : memref<16x32xf32, #tpu.memory_space<vmem>>, vector<8x8xf32>
    tpu.vector_store %arg18[%c0_292, %c8_293], %545 {strides = array<i32>} : memref<16x32xf32, #tpu.memory_space<vmem>>, vector<8x8xf32>,
    %547 = vector.extract_strided_slice %504 {offsets = [0, 16], sizes = [8, 8], strides = [1, 1]} : vector<8x32xf32> to vector<8x8xf32>
    %548 = vector.extract_strided_slice %505 {offsets = [0, 16], sizes = [8, 8], strides = [1, 1]} : vector<8x32xf32> to vector<8x8xf32>
    %cst_294 = arith.constant dense<0.000000e+00> : vector<8x8xf32>
    %549 = tpu.matmul %547, %548, %cst_294 {dimension_numbers = #tpu.dot_dimension_numbers<[1], [1], [0], [0], [0, 0, 1, 0], [], []>} : vector<8x8xf32>, vector<8x8xf32>, vector<8x8xf32> -> vector<8x8xf32>
    %cst_295 = arith.constant 0.353553385 : f32
    %550 = vector.broadcast %cst_295 : f32 to vector<8x8xf32>
    %551 = arith.mulf %549, %550 : vector<8x8xf32>
    %552 = arith.addf %551, %508 : vector<8x8xf32>
    %cst_296 = arith.constant dense<0xFF800000> : vector<8xf32>
    %553 = vector.multi_reduction <maximumf>, %552, %cst_296 [1] : vector<8x8xf32> to vector<8xf32>
    %554 = vector.shape_cast %553 : vector<8xf32> to vector<8x1xf32>
    %555 = vector.broadcast %554 : vector<8x1xf32> to vector<8x8xf32>
    %556 = arith.subf %552, %555 : vector<8x8xf32>
    %557 = math.exp %556 : vector<8x8xf32>
    %cst_297 = arith.constant dense<0.000000e+00> : vector<8xf32>
    %558 = vector.multi_reduction <add>, %557, %cst_297 [1] : vector<8x8xf32> to vector<8xf32>
    %559 = vector.shape_cast %558 : vector<8xf32> to vector<8x1xf32>
    %560 = tpu.reciprocal %559 : vector<8x1xf32> -> vector<8x1xf32>
    %561 = vector.broadcast %560 : vector<8x1xf32> to vector<8x8xf32>
    %562 = arith.mulf %557, %561 : vector<8x8xf32>
    %563 = vector.extract_strided_slice %506 {offsets = [0, 16], sizes = [8, 8], strides = [1, 1]} : vector<8x32xf32> to vector<8x8xf32>
    %cst_298 = arith.constant dense<0.000000e+00> : vector<8x8xf32>
    %564 = tpu.matmul %562, %563, %cst_298 {dimension_numbers = #tpu.dot_dimension_numbers<[1], [0], [0], [1], [0, 0, 1, 1], [], []>} : vector<8x8xf32>, vector<8x8xf32>, vector<8x8xf32> -> vector<8x8xf32>
    %c0_299 = arith.constant 0 : index
    %c16_300 = arith.constant 16 : index
    %565 = vector.load %arg18[%c0_299, %c16_300] : memref<16x32xf32, #tpu.memory_space<vmem>>, vector<8x8xf32>
    tpu.vector_store %arg18[%c0_299, %c16_300], %564 {strides = array<i32>} : memref<16x32xf32, #tpu.memory_space<vmem>>, vector<8x8xf32>,
    %566 = vector.extract_strided_slice %504 {offsets = [0, 24], sizes = [8, 8], strides = [1, 1]} : vector<8x32xf32> to vector<8x8xf32>
    %567 = vector.extract_strided_slice %505 {offsets = [0, 24], sizes = [8, 8], strides = [1, 1]} : vector<8x32xf32> to vector<8x8xf32>
    %cst_301 = arith.constant dense<0.000000e+00> : vector<8x8xf32>
    %568 = tpu.matmul %566, %567, %cst_301 {dimension_numbers = #tpu.dot_dimension_numbers<[1], [1], [0], [0], [0, 0, 1, 0], [], []>} : vector<8x8xf32>, vector<8x8xf32>, vector<8x8xf32> -> vector<8x8xf32>
    %cst_302 = arith.constant 0.353553385 : f32
    %569 = vector.broadcast %cst_302 : f32 to vector<8x8xf32>
    %570 = arith.mulf %568, %569 : vector<8x8xf32>
    %571 = arith.addf %570, %508 : vector<8x8xf32>
    %cst_303 = arith.constant dense<0xFF800000> : vector<8xf32>
    %572 = vector.multi_reduction <maximumf>, %571, %cst_303 [1] : vector<8x8xf32> to vector<8xf32>
    %573 = vector.shape_cast %572 : vector<8xf32> to vector<8x1xf32>
    %574 = vector.broadcast %573 : vector<8x1xf32> to vector<8x8xf32>
    %575 = arith.subf %571, %574 : vector<8x8xf32>
    %576 = math.exp %575 : vector<8x8xf32>
    %cst_304 = arith.constant dense<0.000000e+00> : vector<8xf32>
    %577 = vector.multi_reduction <add>, %576, %cst_304 [1] : vector<8x8xf32> to vector<8xf32>
    %578 = vector.shape_cast %577 : vector<8xf32> to vector<8x1xf32>
    %579 = tpu.reciprocal %578 : vector<8x1xf32> -> vector<8x1xf32>
    %580 = vector.broadcast %579 : vector<8x1xf32> to vector<8x8xf32>
    %581 = arith.mulf %576, %580 : vector<8x8xf32>
    %582 = vector.extract_strided_slice %506 {offsets = [0, 24], sizes = [8, 8], strides = [1, 1]} : vector<8x32xf32> to vector<8x8xf32>
    %cst_305 = arith.constant dense<0.000000e+00> : vector<8x8xf32>
    %583 = tpu.matmul %581, %582, %cst_305 {dimension_numbers = #tpu.dot_dimension_numbers<[1], [0], [0], [1], [0, 0, 1, 1], [], []>} : vector<8x8xf32>, vector<8x8xf32>, vector<8x8xf32> -> vector<8x8xf32>
    %c0_306 = arith.constant 0 : index
    %c24_307 = arith.constant 24 : index
    %584 = vector.load %arg18[%c0_306, %c24_307] : memref<16x32xf32, #tpu.memory_space<vmem>>, vector<8x8xf32>
    tpu.vector_store %arg18[%c0_306, %c24_307], %583 {strides = array<i32>} : memref<16x32xf32, #tpu.memory_space<vmem>>, vector<8x8xf32>,
    %585 = vector.extract_strided_slice %489 {offsets = [8, 0], sizes = [8, 32], strides = [1, 1]} : vector<16x32xf32> to vector<8x32xf32>
    %586 = vector.extract_strided_slice %496 {offsets = [8, 0], sizes = [8, 32], strides = [1, 1]} : vector<16x32xf32> to vector<8x32xf32>
    %587 = vector.extract_strided_slice %503 {offsets = [8, 0], sizes = [8, 32], strides = [1, 1]} : vector<16x32xf32> to vector<8x32xf32>
    %c1_308 = arith.constant 1 : index
    %c0_309 = arith.constant 0 : index
    %c0_310 = arith.constant 0 : index
    %588 = vector.load %arg2[%c1_308, %c0_309, %c0_310] : memref<2x8x8xf32, #tpu.memory_space<vmem>>, vector<1x8x8xf32>
    %589 = vector.shape_cast %588 : vector<1x8x8xf32> to vector<8x8xf32>
    %590 = vector.extract_strided_slice %585 {offsets = [0, 0], sizes = [8, 8], strides = [1, 1]} : vector<8x32xf32> to vector<8x8xf32>
    %591 = vector.extract_strided_slice %586 {offsets = [0, 0], sizes = [8, 8], strides = [1, 1]} : vector<8x32xf32> to vector<8x8xf32>
    %cst_311 = arith.constant dense<0.000000e+00> : vector<8x8xf32>
    %592 = tpu.matmul %590, %591, %cst_311 {dimension_numbers = #tpu.dot_dimension_numbers<[1], [1], [0], [0], [0, 0, 1, 0], [], []>} : vector<8x8xf32>, vector<8x8xf32>, vector<8x8xf32> -> vector<8x8xf32>
    %cst_312 = arith.constant 0.353553385 : f32
    %593 = vector.broadcast %cst_312 : f32 to vector<8x8xf32>
    %594 = arith.mulf %592, %593 : vector<8x8xf32>
    %595 = arith.addf %594, %589 : vector<8x8xf32>
    %cst_313 = arith.constant dense<0xFF800000> : vector<8xf32>
    %596 = vector.multi_reduction <maximumf>, %595, %cst_313 [1] : vector<8x8xf32> to vector<8xf32>
    %597 = vector.shape_cast %596 : vector<8xf32> to vector<8x1xf32>
    %598 = vector.broadcast %597 : vector<8x1xf32> to vector<8x8xf32>
    %599 = arith.subf %595, %598 : vector<8x8xf32>
    %600 = math.exp %599 : vector<8x8xf32>
    %cst_314 = arith.constant dense<0.000000e+00> : vector<8xf32>
    %601 = vector.multi_reduction <add>, %600, %cst_314 [1] : vector<8x8xf32> to vector<8xf32>
    %602 = vector.shape_cast %601 : vector<8xf32> to vector<8x1xf32>
    %603 = tpu.reciprocal %602 : vector<8x1xf32> -> vector<8x1xf32>
    %604 = vector.broadcast %603 : vector<8x1xf32> to vector<8x8xf32>
    %605 = arith.mulf %600, %604 : vector<8x8xf32>
    %606 = vector.extract_strided_slice %587 {offsets = [0, 0], sizes = [8, 8], strides = [1, 1]} : vector<8x32xf32> to vector<8x8xf32>
    %cst_315 = arith.constant dense<0.000000e+00> : vector<8x8xf32>
    %607 = tpu.matmul %605, %606, %cst_315 {dimension_numbers = #tpu.dot_dimension_numbers<[1], [0], [0], [1], [0, 0, 1, 1], [], []>} : vector<8x8xf32>, vector<8x8xf32>, vector<8x8xf32> -> vector<8x8xf32>
    %c8_316 = arith.constant 8 : index
    %c0_317 = arith.constant 0 : index
    %608 = vector.load %arg18[%c8_316, %c0_317] : memref<16x32xf32, #tpu.memory_space<vmem>>, vector<8x8xf32>
    tpu.vector_store %arg18[%c8_316, %c0_317], %607 {strides = array<i32>} : memref<16x32xf32, #tpu.memory_space<vmem>>, vector<8x8xf32>,
    %609 = vector.extract_strided_slice %585 {offsets = [0, 8], sizes = [8, 8], strides = [1, 1]} : vector<8x32xf32> to vector<8x8xf32>
    %610 = vector.extract_strided_slice %586 {offsets = [0, 8], sizes = [8, 8], strides = [1, 1]} : vector<8x32xf32> to vector<8x8xf32>
    %cst_318 = arith.constant dense<0.000000e+00> : vector<8x8xf32>
    %611 = tpu.matmul %609, %610, %cst_318 {dimension_numbers = #tpu.dot_dimension_numbers<[1], [1], [0], [0], [0, 0, 1, 0], [], []>} : vector<8x8xf32>, vector<8x8xf32>, vector<8x8xf32> -> vector<8x8xf32>
    %cst_319 = arith.constant 0.353553385 : f32
    %612 = vector.broadcast %cst_319 : f32 to vector<8x8xf32>
    %613 = arith.mulf %611, %612 : vector<8x8xf32>
    %614 = arith.addf %613, %589 : vector<8x8xf32>
    %cst_320 = arith.constant dense<0xFF800000> : vector<8xf32>
    %615 = vector.multi_reduction <maximumf>, %614, %cst_320 [1] : vector<8x8xf32> to vector<8xf32>
    %616 = vector.shape_cast %615 : vector<8xf32> to vector<8x1xf32>
    %617 = vector.broadcast %616 : vector<8x1xf32> to vector<8x8xf32>
    %618 = arith.subf %614, %617 : vector<8x8xf32>
    %619 = math.exp %618 : vector<8x8xf32>
    %cst_321 = arith.constant dense<0.000000e+00> : vector<8xf32>
    %620 = vector.multi_reduction <add>, %619, %cst_321 [1] : vector<8x8xf32> to vector<8xf32>
    %621 = vector.shape_cast %620 : vector<8xf32> to vector<8x1xf32>
    %622 = tpu.reciprocal %621 : vector<8x1xf32> -> vector<8x1xf32>
    %623 = vector.broadcast %622 : vector<8x1xf32> to vector<8x8xf32>
    %624 = arith.mulf %619, %623 : vector<8x8xf32>
    %625 = vector.extract_strided_slice %587 {offsets = [0, 8], sizes = [8, 8], strides = [1, 1]} : vector<8x32xf32> to vector<8x8xf32>
    %cst_322 = arith.constant dense<0.000000e+00> : vector<8x8xf32>
    %626 = tpu.matmul %624, %625, %cst_322 {dimension_numbers = #tpu.dot_dimension_numbers<[1], [0], [0], [1], [0, 0, 1, 1], [], []>} : vector<8x8xf32>, vector<8x8xf32>, vector<8x8xf32> -> vector<8x8xf32>
    %c8_323 = arith.constant 8 : index
    %c8_324 = arith.constant 8 : index
    %627 = vector.load %arg18[%c8_323, %c8_324] : memref<16x32xf32, #tpu.memory_space<vmem>>, vector<8x8xf32>
    tpu.vector_store %arg18[%c8_323, %c8_324], %626 {strides = array<i32>} : memref<16x32xf32, #tpu.memory_space<vmem>>, vector<8x8xf32>,
    %628 = vector.extract_strided_slice %585 {offsets = [0, 16], sizes = [8, 8], strides = [1, 1]} : vector<8x32xf32> to vector<8x8xf32>
    %629 = vector.extract_strided_slice %586 {offsets = [0, 16], sizes = [8, 8], strides = [1, 1]} : vector<8x32xf32> to vector<8x8xf32>
    %cst_325 = arith.constant dense<0.000000e+00> : vector<8x8xf32>
    %630 = tpu.matmul %628, %629, %cst_325 {dimension_numbers = #tpu.dot_dimension_numbers<[1], [1], [0], [0], [0, 0, 1, 0], [], []>} : vector<8x8xf32>, vector<8x8xf32>, vector<8x8xf32> -> vector<8x8xf32>
    %cst_326 = arith.constant 0.353553385 : f32
    %631 = vector.broadcast %cst_326 : f32 to vector<8x8xf32>
    %632 = arith.mulf %630, %631 : vector<8x8xf32>
    %633 = arith.addf %632, %589 : vector<8x8xf32>
    %cst_327 = arith.constant dense<0xFF800000> : vector<8xf32>
    %634 = vector.multi_reduction <maximumf>, %633, %cst_327 [1] : vector<8x8xf32> to vector<8xf32>
    %635 = vector.shape_cast %634 : vector<8xf32> to vector<8x1xf32>
    %636 = vector.broadcast %635 : vector<8x1xf32> to vector<8x8xf32>
    %637 = arith.subf %633, %636 : vector<8x8xf32>
    %638 = math.exp %637 : vector<8x8xf32>
    %cst_328 = arith.constant dense<0.000000e+00> : vector<8xf32>
    %639 = vector.multi_reduction <add>, %638, %cst_328 [1] : vector<8x8xf32> to vector<8xf32>
    %640 = vector.shape_cast %639 : vector<8xf32> to vector<8x1xf32>
    %641 = tpu.reciprocal %640 : vector<8x1xf32> -> vector<8x1xf32>
    %642 = vector.broadcast %641 : vector<8x1xf32> to vector<8x8xf32>
    %643 = arith.mulf %638, %642 : vector<8x8xf32>
    %644 = vector.extract_strided_slice %587 {offsets = [0, 16], sizes = [8, 8], strides = [1, 1]} : vector<8x32xf32> to vector<8x8xf32>
    %cst_329 = arith.constant dense<0.000000e+00> : vector<8x8xf32>
    %645 = tpu.matmul %643, %644, %cst_329 {dimension_numbers = #tpu.dot_dimension_numbers<[1], [0], [0], [1], [0, 0, 1, 1], [], []>} : vector<8x8xf32>, vector<8x8xf32>, vector<8x8xf32> -> vector<8x8xf32>
    %c8_330 = arith.constant 8 : index
    %c16_331 = arith.constant 16 : index
    %646 = vector.load %arg18[%c8_330, %c16_331] : memref<16x32xf32, #tpu.memory_space<vmem>>, vector<8x8xf32>
    tpu.vector_store %arg18[%c8_330, %c16_331], %645 {strides = array<i32>} : memref<16x32xf32, #tpu.memory_space<vmem>>, vector<8x8xf32>,
    %647 = vector.extract_strided_slice %585 {offsets = [0, 24], sizes = [8, 8], strides = [1, 1]} : vector<8x32xf32> to vector<8x8xf32>
    %648 = vector.extract_strided_slice %586 {offsets = [0, 24], sizes = [8, 8], strides = [1, 1]} : vector<8x32xf32> to vector<8x8xf32>
    %cst_332 = arith.constant dense<0.000000e+00> : vector<8x8xf32>
    %649 = tpu.matmul %647, %648, %cst_332 {dimension_numbers = #tpu.dot_dimension_numbers<[1], [1], [0], [0], [0, 0, 1, 0], [], []>} : vector<8x8xf32>, vector<8x8xf32>, vector<8x8xf32> -> vector<8x8xf32>
    %cst_333 = arith.constant 0.353553385 : f32
    %650 = vector.broadcast %cst_333 : f32 to vector<8x8xf32>
    %651 = arith.mulf %649, %650 : vector<8x8xf32>
    %652 = arith.addf %651, %589 : vector<8x8xf32>
    %cst_334 = arith.constant dense<0xFF800000> : vector<8xf32>
    %653 = vector.multi_reduction <maximumf>, %652, %cst_334 [1] : vector<8x8xf32> to vector<8xf32>
    %654 = vector.shape_cast %653 : vector<8xf32> to vector<8x1xf32>
    %655 = vector.broadcast %654 : vector<8x1xf32> to vector<8x8xf32>
    %656 = arith.subf %652, %655 : vector<8x8xf32>
    %657 = math.exp %656 : vector<8x8xf32>
    %cst_335 = arith.constant dense<0.000000e+00> : vector<8xf32>
    %658 = vector.multi_reduction <add>, %657, %cst_335 [1] : vector<8x8xf32> to vector<8xf32>
    %659 = vector.shape_cast %658 : vector<8xf32> to vector<8x1xf32>
    %660 = tpu.reciprocal %659 : vector<8x1xf32> -> vector<8x1xf32>
    %661 = vector.broadcast %660 : vector<8x1xf32> to vector<8x8xf32>
    %662 = arith.mulf %657, %661 : vector<8x8xf32>
    %663 = vector.extract_strided_slice %587 {offsets = [0, 24], sizes = [8, 8], strides = [1, 1]} : vector<8x32xf32> to vector<8x8xf32>
    %cst_336 = arith.constant dense<0.000000e+00> : vector<8x8xf32>
    %664 = tpu.matmul %662, %663, %cst_336 {dimension_numbers = #tpu.dot_dimension_numbers<[1], [0], [0], [1], [0, 0, 1, 1], [], []>} : vector<8x8xf32>, vector<8x8xf32>, vector<8x8xf32> -> vector<8x8xf32>
    %c8_337 = arith.constant 8 : index
    %c24_338 = arith.constant 24 : index
    %665 = vector.load %arg18[%c8_337, %c24_338] : memref<16x32xf32, #tpu.memory_space<vmem>>, vector<8x8xf32>
    tpu.vector_store %arg18[%c8_337, %c24_338], %664 {strides = array<i32>} : memref<16x32xf32, #tpu.memory_space<vmem>>, vector<8x8xf32>,
    %c0_339 = arith.constant 0 : index
    %c0_340 = arith.constant 0 : index
    %666 = vector.load %arg18[%c0_339, %c0_340] : memref<16x32xf32, #tpu.memory_space<vmem>>, vector<16x32xf32>
    %c1_341 = arith.constant 1 : index
    %c3_342 = arith.constant 3 : index
    %c0_343 = arith.constant 0 : index
    %c0_344 = arith.constant 0 : index
    %667 = vector.load %arg4[%c1_341, %c3_342, %c0_343, %c0_344] : memref<2x4x32x32xf32, #tpu.memory_space<vmem>>, vector<1x1x32x32xf32>
    %668 = vector.shape_cast %667 : vector<1x1x32x32xf32> to vector<32x32xf32>
    %cst_345 = arith.constant dense<0.000000e+00> : vector<16x32xf32>
    %669 = tpu.matmul %666, %668, %cst_345 {dimension_numbers = #tpu.dot_dimension_numbers<[1], [0], [0], [1], [0, 0, 1, 1], [], []>} : vector<16x32xf32>, vector<32x32xf32>, vector<16x32xf32> -> vector<16x32xf32>
    %c1_346 = arith.constant 1 : index
    %c3_347 = arith.constant 3 : index
    %c0_348 = arith.constant 0 : index
    %c0_349 = arith.constant 0 : index
    %670 = vector.load %arg5[%c1_346, %c3_347, %c0_348, %c0_349] : memref<2x4x1x32xf32, #tpu.memory_space<vmem>>, vector<1x1x1x32xf32>
    %671 = vector.shape_cast %670 : vector<1x1x1x32xf32> to vector<1x32xf32>
    %672 = vector.broadcast %671 : vector<1x32xf32> to vector<16x32xf32>
    %673 = arith.addf %669, %672 : vector<16x32xf32>
    %c1_350 = arith.constant 1 : index
    %c0_351 = arith.constant 0 : index
    %c0_352 = arith.constant 0 : index
    %c0_353 = arith.constant 0 : index
    %674 = vector.load %arg12[%c1_350, %c0_351, %c0_352, %c0_353] : memref<2x3x1x32xf32, #tpu.memory_space<vmem>>, vector<1x1x1x32xf32>
    %675 = vector.shape_cast %674 : vector<1x1x1x32xf32> to vector<1x32xf32>
    %c1_354 = arith.constant 1 : index
    %c0_355 = arith.constant 0 : index
    %c0_356 = arith.constant 0 : index
    %c0_357 = arith.constant 0 : index
    %676 = vector.load %arg13[%c1_354, %c0_355, %c0_356, %c0_357] : memref<2x3x1x32xf32, #tpu.memory_space<vmem>>, vector<1x1x1x32xf32>
    %677 = vector.shape_cast %676 : vector<1x1x1x32xf32> to vector<1x32xf32>
    %678 = arith.addf %673, %482 : vector<16x32xf32>
    %cst_358 = arith.constant dense<0.000000e+00> : vector<16xf32>
    %679 = vector.multi_reduction <add>, %678, %cst_358 [1] : vector<16x32xf32> to vector<16xf32>
    %680 = vector.shape_cast %679 : vector<16xf32> to vector<16x1xf32>
    %cst_359 = arith.constant 3.200000e+01 : f32
    %681 = vector.broadcast %cst_359 : f32 to vector<16x1xf32>
    %682 = arith.divf %680, %681 : vector<16x1xf32>
    %683 = vector.broadcast %682 : vector<16x1xf32> to vector<16x32xf32>
    %684 = arith.subf %678, %683 : vector<16x32xf32>
    %685 = arith.mulf %684, %684 : vector<16x32xf32>
    %cst_360 = arith.constant dense<0.000000e+00> : vector<16xf32>
    %686 = vector.multi_reduction <add>, %685, %cst_360 [1] : vector<16x32xf32> to vector<16xf32>
    %687 = vector.shape_cast %686 : vector<16xf32> to vector<16x1xf32>
    %cst_361 = arith.constant 3.200000e+01 : f32
    %688 = vector.broadcast %cst_361 : f32 to vector<16x1xf32>
    %689 = arith.divf %687, %688 : vector<16x1xf32>
    %cst_362 = arith.constant 9.99999974E-6 : f32
    %690 = vector.broadcast %cst_362 : f32 to vector<16x1xf32>
    %691 = arith.addf %689, %690 : vector<16x1xf32>
    %692 = math.rsqrt %691 : vector<16x1xf32>
    %693 = vector.broadcast %692 : vector<16x1xf32> to vector<16x32xf32>
    %694 = arith.mulf %684, %693 : vector<16x32xf32>
    %695 = vector.broadcast %675 : vector<1x32xf32> to vector<16x32xf32>
    %696 = arith.mulf %694, %695 : vector<16x32xf32>
    %697 = vector.broadcast %677 : vector<1x32xf32> to vector<16x32xf32>
    %698 = arith.addf %696, %697 : vector<16x32xf32>
    %c1_363 = arith.constant 1 : index
    %c0_364 = arith.constant 0 : index
    %c0_365 = arith.constant 0 : index
    %c0_366 = arith.constant 0 : index
    %699 = vector.load %arg6[%c1_363, %c0_364, %c0_365, %c0_366] : memref<2x4x32x32xf32, #tpu.memory_space<vmem>>, vector<1x1x32x32xf32>
    %700 = vector.shape_cast %699 : vector<1x1x32x32xf32> to vector<32x32xf32>
    %cst_367 = arith.constant dense<0.000000e+00> : vector<16x32xf32>
    %701 = tpu.matmul %698, %700, %cst_367 {dimension_numbers = #tpu.dot_dimension_numbers<[1], [0], [0], [1], [0, 0, 1, 1], [], []>} : vector<16x32xf32>, vector<32x32xf32>, vector<16x32xf32> -> vector<16x32xf32>
    %c1_368 = arith.constant 1 : index
    %c0_369 = arith.constant 0 : index
    %c0_370 = arith.constant 0 : index
    %c0_371 = arith.constant 0 : index
    %702 = vector.load %arg7[%c1_368, %c0_369, %c0_370, %c0_371] : memref<2x4x1x32xf32, #tpu.memory_space<vmem>>, vector<1x1x1x32xf32>
    %703 = vector.shape_cast %702 : vector<1x1x1x32xf32> to vector<1x32xf32>
    %704 = vector.broadcast %703 : vector<1x32xf32> to vector<16x32xf32>
    %705 = arith.addf %701, %704 : vector<16x32xf32>
    %c1_372 = arith.constant 1 : index
    %c1_373 = arith.constant 1 : index
    %c0_374 = arith.constant 0 : index
    %c0_375 = arith.constant 0 : index
    %706 = vector.load %arg6[%c1_372, %c1_373, %c0_374, %c0_375] : memref<2x4x32x32xf32, #tpu.memory_space<vmem>>, vector<1x1x32x32xf32>
    %707 = vector.shape_cast %706 : vector<1x1x32x32xf32> to vector<32x32xf32>
    %cst_376 = arith.constant dense<0.000000e+00> : vector<16x32xf32>
    %708 = tpu.matmul %1, %707, %cst_376 {dimension_numbers = #tpu.dot_dimension_numbers<[1], [0], [0], [1], [0, 0, 1, 1], [], []>} : vector<16x32xf32>, vector<32x32xf32>, vector<16x32xf32> -> vector<16x32xf32>
    %c1_377 = arith.constant 1 : index
    %c1_378 = arith.constant 1 : index
    %c0_379 = arith.constant 0 : index
    %c0_380 = arith.constant 0 : index
    %709 = vector.load %arg7[%c1_377, %c1_378, %c0_379, %c0_380] : memref<2x4x1x32xf32, #tpu.memory_space<vmem>>, vector<1x1x1x32xf32>
    %710 = vector.shape_cast %709 : vector<1x1x1x32xf32> to vector<1x32xf32>
    %711 = vector.broadcast %710 : vector<1x32xf32> to vector<16x32xf32>
    %712 = arith.addf %708, %711 : vector<16x32xf32>
    %c1_381 = arith.constant 1 : index
    %c2_382 = arith.constant 2 : index
    %c0_383 = arith.constant 0 : index
    %c0_384 = arith.constant 0 : index
    %713 = vector.load %arg6[%c1_381, %c2_382, %c0_383, %c0_384] : memref<2x4x32x32xf32, #tpu.memory_space<vmem>>, vector<1x1x32x32xf32>
    %714 = vector.shape_cast %713 : vector<1x1x32x32xf32> to vector<32x32xf32>
    %cst_385 = arith.constant dense<0.000000e+00> : vector<16x32xf32>
    %715 = tpu.matmul %1, %714, %cst_385 {dimension_numbers = #tpu.dot_dimension_numbers<[1], [0], [0], [1], [0, 0, 1, 1], [], []>} : vector<16x32xf32>, vector<32x32xf32>, vector<16x32xf32> -> vector<16x32xf32>
    %c1_386 = arith.constant 1 : index
    %c2_387 = arith.constant 2 : index
    %c0_388 = arith.constant 0 : index
    %c0_389 = arith.constant 0 : index
    %716 = vector.load %arg7[%c1_386, %c2_387, %c0_388, %c0_389] : memref<2x4x1x32xf32, #tpu.memory_space<vmem>>, vector<1x1x1x32xf32>
    %717 = vector.shape_cast %716 : vector<1x1x1x32xf32> to vector<1x32xf32>
    %718 = vector.broadcast %717 : vector<1x32xf32> to vector<16x32xf32>
    %719 = arith.addf %715, %718 : vector<16x32xf32>
    %720 = vector.extract_strided_slice %705 {offsets = [0, 0], sizes = [8, 32], strides = [1, 1]} : vector<16x32xf32> to vector<8x32xf32>
    %721 = vector.extract_strided_slice %712 {offsets = [0, 0], sizes = [8, 32], strides = [1, 1]} : vector<16x32xf32> to vector<8x32xf32>
    %722 = vector.extract_strided_slice %719 {offsets = [0, 0], sizes = [8, 32], strides = [1, 1]} : vector<16x32xf32> to vector<8x32xf32>
    %c0_390 = arith.constant 0 : index
    %c0_391 = arith.constant 0 : index
    %c0_392 = arith.constant 0 : index
    %723 = vector.load %arg3[%c0_390, %c0_391, %c0_392] : memref<2x1x8xf32, #tpu.memory_space<vmem>>, vector<1x1x8xf32>
    %724 = vector.shape_cast %723 : vector<1x1x8xf32> to vector<1x8xf32>
    %725 = vector.extract_strided_slice %720 {offsets = [0, 0], sizes = [8, 8], strides = [1, 1]} : vector<8x32xf32> to vector<8x8xf32>
    %726 = vector.extract_strided_slice %721 {offsets = [0, 0], sizes = [8, 8], strides = [1, 1]} : vector<8x32xf32> to vector<8x8xf32>
    %cst_393 = arith.constant dense<0.000000e+00> : vector<8x8xf32>
    %727 = tpu.matmul %725, %726, %cst_393 {dimension_numbers = #tpu.dot_dimension_numbers<[1], [1], [0], [0], [0, 0, 1, 0], [], []>} : vector<8x8xf32>, vector<8x8xf32>, vector<8x8xf32> -> vector<8x8xf32>
    %cst_394 = arith.constant 0.353553385 : f32
    %728 = vector.broadcast %cst_394 : f32 to vector<8x8xf32>
    %729 = arith.mulf %727, %728 : vector<8x8xf32>
    %730 = vector.broadcast %724 : vector<1x8xf32> to vector<8x8xf32>
    %731 = arith.addf %729, %730 : vector<8x8xf32>
    %cst_395 = arith.constant dense<0xFF800000> : vector<8xf32>
    %732 = vector.multi_reduction <maximumf>, %731, %cst_395 [1] : vector<8x8xf32> to vector<8xf32>
    %733 = vector.shape_cast %732 : vector<8xf32> to vector<8x1xf32>
    %734 = vector.broadcast %733 : vector<8x1xf32> to vector<8x8xf32>
    %735 = arith.subf %731, %734 : vector<8x8xf32>
    %736 = math.exp %735 : vector<8x8xf32>
    %cst_396 = arith.constant dense<0.000000e+00> : vector<8xf32>
    %737 = vector.multi_reduction <add>, %736, %cst_396 [1] : vector<8x8xf32> to vector<8xf32>
    %738 = vector.shape_cast %737 : vector<8xf32> to vector<8x1xf32>
    %739 = tpu.reciprocal %738 : vector<8x1xf32> -> vector<8x1xf32>
    %740 = vector.broadcast %739 : vector<8x1xf32> to vector<8x8xf32>
    %741 = arith.mulf %736, %740 : vector<8x8xf32>
    %742 = vector.extract_strided_slice %722 {offsets = [0, 0], sizes = [8, 8], strides = [1, 1]} : vector<8x32xf32> to vector<8x8xf32>
    %cst_397 = arith.constant dense<0.000000e+00> : vector<8x8xf32>
    %743 = tpu.matmul %741, %742, %cst_397 {dimension_numbers = #tpu.dot_dimension_numbers<[1], [0], [0], [1], [0, 0, 1, 1], [], []>} : vector<8x8xf32>, vector<8x8xf32>, vector<8x8xf32> -> vector<8x8xf32>
    %c0_398 = arith.constant 0 : index
    %c0_399 = arith.constant 0 : index
    %744 = vector.load %arg18[%c0_398, %c0_399] : memref<16x32xf32, #tpu.memory_space<vmem>>, vector<8x8xf32>
    tpu.vector_store %arg18[%c0_398, %c0_399], %743 {strides = array<i32>} : memref<16x32xf32, #tpu.memory_space<vmem>>, vector<8x8xf32>,
    %c0_400 = arith.constant 0 : index
    %c0_401 = arith.constant 0 : index
    %745 = vector.load %arg17[%c0_400, %c0_401] : memref<16x32xf32, #tpu.memory_space<vmem>>, vector<8x8xf32>
    tpu.vector_store %arg17[%c0_400, %c0_401], %741 {strides = array<i32>} : memref<16x32xf32, #tpu.memory_space<vmem>>, vector<8x8xf32>,
    %746 = vector.extract_strided_slice %720 {offsets = [0, 8], sizes = [8, 8], strides = [1, 1]} : vector<8x32xf32> to vector<8x8xf32>
    %747 = vector.extract_strided_slice %721 {offsets = [0, 8], sizes = [8, 8], strides = [1, 1]} : vector<8x32xf32> to vector<8x8xf32>
    %cst_402 = arith.constant dense<0.000000e+00> : vector<8x8xf32>
    %748 = tpu.matmul %746, %747, %cst_402 {dimension_numbers = #tpu.dot_dimension_numbers<[1], [1], [0], [0], [0, 0, 1, 0], [], []>} : vector<8x8xf32>, vector<8x8xf32>, vector<8x8xf32> -> vector<8x8xf32>
    %cst_403 = arith.constant 0.353553385 : f32
    %749 = vector.broadcast %cst_403 : f32 to vector<8x8xf32>
    %750 = arith.mulf %748, %749 : vector<8x8xf32>
    %751 = vector.broadcast %724 : vector<1x8xf32> to vector<8x8xf32>
    %752 = arith.addf %750, %751 : vector<8x8xf32>
    %cst_404 = arith.constant dense<0xFF800000> : vector<8xf32>
    %753 = vector.multi_reduction <maximumf>, %752, %cst_404 [1] : vector<8x8xf32> to vector<8xf32>
    %754 = vector.shape_cast %753 : vector<8xf32> to vector<8x1xf32>
    %755 = vector.broadcast %754 : vector<8x1xf32> to vector<8x8xf32>
    %756 = arith.subf %752, %755 : vector<8x8xf32>
    %757 = math.exp %756 : vector<8x8xf32>
    %cst_405 = arith.constant dense<0.000000e+00> : vector<8xf32>
    %758 = vector.multi_reduction <add>, %757, %cst_405 [1] : vector<8x8xf32> to vector<8xf32>
    %759 = vector.shape_cast %758 : vector<8xf32> to vector<8x1xf32>
    %760 = tpu.reciprocal %759 : vector<8x1xf32> -> vector<8x1xf32>
    %761 = vector.broadcast %760 : vector<8x1xf32> to vector<8x8xf32>
    %762 = arith.mulf %757, %761 : vector<8x8xf32>
    %763 = vector.extract_strided_slice %722 {offsets = [0, 8], sizes = [8, 8], strides = [1, 1]} : vector<8x32xf32> to vector<8x8xf32>
    %cst_406 = arith.constant dense<0.000000e+00> : vector<8x8xf32>
    %764 = tpu.matmul %762, %763, %cst_406 {dimension_numbers = #tpu.dot_dimension_numbers<[1], [0], [0], [1], [0, 0, 1, 1], [], []>} : vector<8x8xf32>, vector<8x8xf32>, vector<8x8xf32> -> vector<8x8xf32>
    %c0_407 = arith.constant 0 : index
    %c8_408 = arith.constant 8 : index
    %765 = vector.load %arg18[%c0_407, %c8_408] : memref<16x32xf32, #tpu.memory_space<vmem>>, vector<8x8xf32>
    tpu.vector_store %arg18[%c0_407, %c8_408], %764 {strides = array<i32>} : memref<16x32xf32, #tpu.memory_space<vmem>>, vector<8x8xf32>,
    %c0_409 = arith.constant 0 : index
    %c8_410 = arith.constant 8 : index
    %766 = vector.load %arg17[%c0_409, %c8_410] : memref<16x32xf32, #tpu.memory_space<vmem>>, vector<8x8xf32>
    tpu.vector_store %arg17[%c0_409, %c8_410], %762 {strides = array<i32>} : memref<16x32xf32, #tpu.memory_space<vmem>>, vector<8x8xf32>,
    %767 = vector.extract_strided_slice %720 {offsets = [0, 16], sizes = [8, 8], strides = [1, 1]} : vector<8x32xf32> to vector<8x8xf32>
    %768 = vector.extract_strided_slice %721 {offsets = [0, 16], sizes = [8, 8], strides = [1, 1]} : vector<8x32xf32> to vector<8x8xf32>
    %cst_411 = arith.constant dense<0.000000e+00> : vector<8x8xf32>
    %769 = tpu.matmul %767, %768, %cst_411 {dimension_numbers = #tpu.dot_dimension_numbers<[1], [1], [0], [0], [0, 0, 1, 0], [], []>} : vector<8x8xf32>, vector<8x8xf32>, vector<8x8xf32> -> vector<8x8xf32>
    %cst_412 = arith.constant 0.353553385 : f32
    %770 = vector.broadcast %cst_412 : f32 to vector<8x8xf32>
    %771 = arith.mulf %769, %770 : vector<8x8xf32>
    %772 = vector.broadcast %724 : vector<1x8xf32> to vector<8x8xf32>
    %773 = arith.addf %771, %772 : vector<8x8xf32>
    %cst_413 = arith.constant dense<0xFF800000> : vector<8xf32>
    %774 = vector.multi_reduction <maximumf>, %773, %cst_413 [1] : vector<8x8xf32> to vector<8xf32>
    %775 = vector.shape_cast %774 : vector<8xf32> to vector<8x1xf32>
    %776 = vector.broadcast %775 : vector<8x1xf32> to vector<8x8xf32>
    %777 = arith.subf %773, %776 : vector<8x8xf32>
    %778 = math.exp %777 : vector<8x8xf32>
    %cst_414 = arith.constant dense<0.000000e+00> : vector<8xf32>
    %779 = vector.multi_reduction <add>, %778, %cst_414 [1] : vector<8x8xf32> to vector<8xf32>
    %780 = vector.shape_cast %779 : vector<8xf32> to vector<8x1xf32>
    %781 = tpu.reciprocal %780 : vector<8x1xf32> -> vector<8x1xf32>
    %782 = vector.broadcast %781 : vector<8x1xf32> to vector<8x8xf32>
    %783 = arith.mulf %778, %782 : vector<8x8xf32>
    %784 = vector.extract_strided_slice %722 {offsets = [0, 16], sizes = [8, 8], strides = [1, 1]} : vector<8x32xf32> to vector<8x8xf32>
    %cst_415 = arith.constant dense<0.000000e+00> : vector<8x8xf32>
    %785 = tpu.matmul %783, %784, %cst_415 {dimension_numbers = #tpu.dot_dimension_numbers<[1], [0], [0], [1], [0, 0, 1, 1], [], []>} : vector<8x8xf32>, vector<8x8xf32>, vector<8x8xf32> -> vector<8x8xf32>
    %c0_416 = arith.constant 0 : index
    %c16_417 = arith.constant 16 : index
    %786 = vector.load %arg18[%c0_416, %c16_417] : memref<16x32xf32, #tpu.memory_space<vmem>>, vector<8x8xf32>
    tpu.vector_store %arg18[%c0_416, %c16_417], %785 {strides = array<i32>} : memref<16x32xf32, #tpu.memory_space<vmem>>, vector<8x8xf32>,
    %c0_418 = arith.constant 0 : index
    %c16_419 = arith.constant 16 : index
    %787 = vector.load %arg17[%c0_418, %c16_419] : memref<16x32xf32, #tpu.memory_space<vmem>>, vector<8x8xf32>
    tpu.vector_store %arg17[%c0_418, %c16_419], %783 {strides = array<i32>} : memref<16x32xf32, #tpu.memory_space<vmem>>, vector<8x8xf32>,
    %788 = vector.extract_strided_slice %720 {offsets = [0, 24], sizes = [8, 8], strides = [1, 1]} : vector<8x32xf32> to vector<8x8xf32>
    %789 = vector.extract_strided_slice %721 {offsets = [0, 24], sizes = [8, 8], strides = [1, 1]} : vector<8x32xf32> to vector<8x8xf32>
    %cst_420 = arith.constant dense<0.000000e+00> : vector<8x8xf32>
    %790 = tpu.matmul %788, %789, %cst_420 {dimension_numbers = #tpu.dot_dimension_numbers<[1], [1], [0], [0], [0, 0, 1, 0], [], []>} : vector<8x8xf32>, vector<8x8xf32>, vector<8x8xf32> -> vector<8x8xf32>
    %cst_421 = arith.constant 0.353553385 : f32
    %791 = vector.broadcast %cst_421 : f32 to vector<8x8xf32>
    %792 = arith.mulf %790, %791 : vector<8x8xf32>
    %793 = vector.broadcast %724 : vector<1x8xf32> to vector<8x8xf32>
    %794 = arith.addf %792, %793 : vector<8x8xf32>
    %cst_422 = arith.constant dense<0xFF800000> : vector<8xf32>
    %795 = vector.multi_reduction <maximumf>, %794, %cst_422 [1] : vector<8x8xf32> to vector<8xf32>
    %796 = vector.shape_cast %795 : vector<8xf32> to vector<8x1xf32>
    %797 = vector.broadcast %796 : vector<8x1xf32> to vector<8x8xf32>
    %798 = arith.subf %794, %797 : vector<8x8xf32>
    %799 = math.exp %798 : vector<8x8xf32>
    %cst_423 = arith.constant dense<0.000000e+00> : vector<8xf32>
    %800 = vector.multi_reduction <add>, %799, %cst_423 [1] : vector<8x8xf32> to vector<8xf32>
    %801 = vector.shape_cast %800 : vector<8xf32> to vector<8x1xf32>
    %802 = tpu.reciprocal %801 : vector<8x1xf32> -> vector<8x1xf32>
    %803 = vector.broadcast %802 : vector<8x1xf32> to vector<8x8xf32>
    %804 = arith.mulf %799, %803 : vector<8x8xf32>
    %805 = vector.extract_strided_slice %722 {offsets = [0, 24], sizes = [8, 8], strides = [1, 1]} : vector<8x32xf32> to vector<8x8xf32>
    %cst_424 = arith.constant dense<0.000000e+00> : vector<8x8xf32>
    %806 = tpu.matmul %804, %805, %cst_424 {dimension_numbers = #tpu.dot_dimension_numbers<[1], [0], [0], [1], [0, 0, 1, 1], [], []>} : vector<8x8xf32>, vector<8x8xf32>, vector<8x8xf32> -> vector<8x8xf32>
    %c0_425 = arith.constant 0 : index
    %c24_426 = arith.constant 24 : index
    %807 = vector.load %arg18[%c0_425, %c24_426] : memref<16x32xf32, #tpu.memory_space<vmem>>, vector<8x8xf32>
    tpu.vector_store %arg18[%c0_425, %c24_426], %806 {strides = array<i32>} : memref<16x32xf32, #tpu.memory_space<vmem>>, vector<8x8xf32>,
    %c0_427 = arith.constant 0 : index
    %c24_428 = arith.constant 24 : index
    %808 = vector.load %arg17[%c0_427, %c24_428] : memref<16x32xf32, #tpu.memory_space<vmem>>, vector<8x8xf32>
    tpu.vector_store %arg17[%c0_427, %c24_428], %804 {strides = array<i32>} : memref<16x32xf32, #tpu.memory_space<vmem>>, vector<8x8xf32>,
    %809 = vector.extract_strided_slice %705 {offsets = [8, 0], sizes = [8, 32], strides = [1, 1]} : vector<16x32xf32> to vector<8x32xf32>
    %810 = vector.extract_strided_slice %712 {offsets = [8, 0], sizes = [8, 32], strides = [1, 1]} : vector<16x32xf32> to vector<8x32xf32>
    %811 = vector.extract_strided_slice %719 {offsets = [8, 0], sizes = [8, 32], strides = [1, 1]} : vector<16x32xf32> to vector<8x32xf32>
    %c1_429 = arith.constant 1 : index
    %c0_430 = arith.constant 0 : index
    %c0_431 = arith.constant 0 : index
    %812 = vector.load %arg3[%c1_429, %c0_430, %c0_431] : memref<2x1x8xf32, #tpu.memory_space<vmem>>, vector<1x1x8xf32>
    %813 = vector.shape_cast %812 : vector<1x1x8xf32> to vector<1x8xf32>
    %814 = vector.extract_strided_slice %809 {offsets = [0, 0], sizes = [8, 8], strides = [1, 1]} : vector<8x32xf32> to vector<8x8xf32>
    %815 = vector.extract_strided_slice %810 {offsets = [0, 0], sizes = [8, 8], strides = [1, 1]} : vector<8x32xf32> to vector<8x8xf32>
    %cst_432 = arith.constant dense<0.000000e+00> : vector<8x8xf32>
    %816 = tpu.matmul %814, %815, %cst_432 {dimension_numbers = #tpu.dot_dimension_numbers<[1], [1], [0], [0], [0, 0, 1, 0], [], []>} : vector<8x8xf32>, vector<8x8xf32>, vector<8x8xf32> -> vector<8x8xf32>
    %cst_433 = arith.constant 0.353553385 : f32
    %817 = vector.broadcast %cst_433 : f32 to vector<8x8xf32>
    %818 = arith.mulf %816, %817 : vector<8x8xf32>
    %819 = vector.broadcast %813 : vector<1x8xf32> to vector<8x8xf32>
    %820 = arith.addf %818, %819 : vector<8x8xf32>
    %cst_434 = arith.constant dense<0xFF800000> : vector<8xf32>
    %821 = vector.multi_reduction <maximumf>, %820, %cst_434 [1] : vector<8x8xf32> to vector<8xf32>
    %822 = vector.shape_cast %821 : vector<8xf32> to vector<8x1xf32>
    %823 = vector.broadcast %822 : vector<8x1xf32> to vector<8x8xf32>
    %824 = arith.subf %820, %823 : vector<8x8xf32>
    %825 = math.exp %824 : vector<8x8xf32>
    %cst_435 = arith.constant dense<0.000000e+00> : vector<8xf32>
    %826 = vector.multi_reduction <add>, %825, %cst_435 [1] : vector<8x8xf32> to vector<8xf32>
    %827 = vector.shape_cast %826 : vector<8xf32> to vector<8x1xf32>
    %828 = tpu.reciprocal %827 : vector<8x1xf32> -> vector<8x1xf32>
    %829 = vector.broadcast %828 : vector<8x1xf32> to vector<8x8xf32>
    %830 = arith.mulf %825, %829 : vector<8x8xf32>
    %831 = vector.extract_strided_slice %811 {offsets = [0, 0], sizes = [8, 8], strides = [1, 1]} : vector<8x32xf32> to vector<8x8xf32>
    %cst_436 = arith.constant dense<0.000000e+00> : vector<8x8xf32>
    %832 = tpu.matmul %830, %831, %cst_436 {dimension_numbers = #tpu.dot_dimension_numbers<[1], [0], [0], [1], [0, 0, 1, 1], [], []>} : vector<8x8xf32>, vector<8x8xf32>, vector<8x8xf32> -> vector<8x8xf32>
    %c8_437 = arith.constant 8 : index
    %c0_438 = arith.constant 0 : index
    %833 = vector.load %arg18[%c8_437, %c0_438] : memref<16x32xf32, #tpu.memory_space<vmem>>, vector<8x8xf32>
    tpu.vector_store %arg18[%c8_437, %c0_438], %832 {strides = array<i32>} : memref<16x32xf32, #tpu.memory_space<vmem>>, vector<8x8xf32>,
    %c8_439 = arith.constant 8 : index
    %c0_440 = arith.constant 0 : index
    %834 = vector.load %arg17[%c8_439, %c0_440] : memref<16x32xf32, #tpu.memory_space<vmem>>, vector<8x8xf32>
    tpu.vector_store %arg17[%c8_439, %c0_440], %830 {strides = array<i32>} : memref<16x32xf32, #tpu.memory_space<vmem>>, vector<8x8xf32>,
    %835 = vector.extract_strided_slice %809 {offsets = [0, 8], sizes = [8, 8], strides = [1, 1]} : vector<8x32xf32> to vector<8x8xf32>
    %836 = vector.extract_strided_slice %810 {offsets = [0, 8], sizes = [8, 8], strides = [1, 1]} : vector<8x32xf32> to vector<8x8xf32>
    %cst_441 = arith.constant dense<0.000000e+00> : vector<8x8xf32>
    %837 = tpu.matmul %835, %836, %cst_441 {dimension_numbers = #tpu.dot_dimension_numbers<[1], [1], [0], [0], [0, 0, 1, 0], [], []>} : vector<8x8xf32>, vector<8x8xf32>, vector<8x8xf32> -> vector<8x8xf32>
    %cst_442 = arith.constant 0.353553385 : f32
    %838 = vector.broadcast %cst_442 : f32 to vector<8x8xf32>
    %839 = arith.mulf %837, %838 : vector<8x8xf32>
    %840 = vector.broadcast %813 : vector<1x8xf32> to vector<8x8xf32>
    %841 = arith.addf %839, %840 : vector<8x8xf32>
    %cst_443 = arith.constant dense<0xFF800000> : vector<8xf32>
    %842 = vector.multi_reduction <maximumf>, %841, %cst_443 [1] : vector<8x8xf32> to vector<8xf32>
    %843 = vector.shape_cast %842 : vector<8xf32> to vector<8x1xf32>
    %844 = vector.broadcast %843 : vector<8x1xf32> to vector<8x8xf32>
    %845 = arith.subf %841, %844 : vector<8x8xf32>
    %846 = math.exp %845 : vector<8x8xf32>
    %cst_444 = arith.constant dense<0.000000e+00> : vector<8xf32>
    %847 = vector.multi_reduction <add>, %846, %cst_444 [1] : vector<8x8xf32> to vector<8xf32>
    %848 = vector.shape_cast %847 : vector<8xf32> to vector<8x1xf32>
    %849 = tpu.reciprocal %848 : vector<8x1xf32> -> vector<8x1xf32>
    %850 = vector.broadcast %849 : vector<8x1xf32> to vector<8x8xf32>
    %851 = arith.mulf %846, %850 : vector<8x8xf32>
    %852 = vector.extract_strided_slice %811 {offsets = [0, 8], sizes = [8, 8], strides = [1, 1]} : vector<8x32xf32> to vector<8x8xf32>
    %cst_445 = arith.constant dense<0.000000e+00> : vector<8x8xf32>
    %853 = tpu.matmul %851, %852, %cst_445 {dimension_numbers = #tpu.dot_dimension_numbers<[1], [0], [0], [1], [0, 0, 1, 1], [], []>} : vector<8x8xf32>, vector<8x8xf32>, vector<8x8xf32> -> vector<8x8xf32>
    %c8_446 = arith.constant 8 : index
    %c8_447 = arith.constant 8 : index
    %854 = vector.load %arg18[%c8_446, %c8_447] : memref<16x32xf32, #tpu.memory_space<vmem>>, vector<8x8xf32>
    tpu.vector_store %arg18[%c8_446, %c8_447], %853 {strides = array<i32>} : memref<16x32xf32, #tpu.memory_space<vmem>>, vector<8x8xf32>,
    %c8_448 = arith.constant 8 : index
    %c8_449 = arith.constant 8 : index
    %855 = vector.load %arg17[%c8_448, %c8_449] : memref<16x32xf32, #tpu.memory_space<vmem>>, vector<8x8xf32>
    tpu.vector_store %arg17[%c8_448, %c8_449], %851 {strides = array<i32>} : memref<16x32xf32, #tpu.memory_space<vmem>>, vector<8x8xf32>,
    %856 = vector.extract_strided_slice %809 {offsets = [0, 16], sizes = [8, 8], strides = [1, 1]} : vector<8x32xf32> to vector<8x8xf32>
    %857 = vector.extract_strided_slice %810 {offsets = [0, 16], sizes = [8, 8], strides = [1, 1]} : vector<8x32xf32> to vector<8x8xf32>
    %cst_450 = arith.constant dense<0.000000e+00> : vector<8x8xf32>
    %858 = tpu.matmul %856, %857, %cst_450 {dimension_numbers = #tpu.dot_dimension_numbers<[1], [1], [0], [0], [0, 0, 1, 0], [], []>} : vector<8x8xf32>, vector<8x8xf32>, vector<8x8xf32> -> vector<8x8xf32>
    %cst_451 = arith.constant 0.353553385 : f32
    %859 = vector.broadcast %cst_451 : f32 to vector<8x8xf32>
    %860 = arith.mulf %858, %859 : vector<8x8xf32>
    %861 = vector.broadcast %813 : vector<1x8xf32> to vector<8x8xf32>
    %862 = arith.addf %860, %861 : vector<8x8xf32>
    %cst_452 = arith.constant dense<0xFF800000> : vector<8xf32>
    %863 = vector.multi_reduction <maximumf>, %862, %cst_452 [1] : vector<8x8xf32> to vector<8xf32>
    %864 = vector.shape_cast %863 : vector<8xf32> to vector<8x1xf32>
    %865 = vector.broadcast %864 : vector<8x1xf32> to vector<8x8xf32>
    %866 = arith.subf %862, %865 : vector<8x8xf32>
    %867 = math.exp %866 : vector<8x8xf32>
    %cst_453 = arith.constant dense<0.000000e+00> : vector<8xf32>
    %868 = vector.multi_reduction <add>, %867, %cst_453 [1] : vector<8x8xf32> to vector<8xf32>
    %869 = vector.shape_cast %868 : vector<8xf32> to vector<8x1xf32>
    %870 = tpu.reciprocal %869 : vector<8x1xf32> -> vector<8x1xf32>
    %871 = vector.broadcast %870 : vector<8x1xf32> to vector<8x8xf32>
    %872 = arith.mulf %867, %871 : vector<8x8xf32>
    %873 = vector.extract_strided_slice %811 {offsets = [0, 16], sizes = [8, 8], strides = [1, 1]} : vector<8x32xf32> to vector<8x8xf32>
    %cst_454 = arith.constant dense<0.000000e+00> : vector<8x8xf32>
    %874 = tpu.matmul %872, %873, %cst_454 {dimension_numbers = #tpu.dot_dimension_numbers<[1], [0], [0], [1], [0, 0, 1, 1], [], []>} : vector<8x8xf32>, vector<8x8xf32>, vector<8x8xf32> -> vector<8x8xf32>
    %c8_455 = arith.constant 8 : index
    %c16_456 = arith.constant 16 : index
    %875 = vector.load %arg18[%c8_455, %c16_456] : memref<16x32xf32, #tpu.memory_space<vmem>>, vector<8x8xf32>
    tpu.vector_store %arg18[%c8_455, %c16_456], %874 {strides = array<i32>} : memref<16x32xf32, #tpu.memory_space<vmem>>, vector<8x8xf32>,
    %c8_457 = arith.constant 8 : index
    %c16_458 = arith.constant 16 : index
    %876 = vector.load %arg17[%c8_457, %c16_458] : memref<16x32xf32, #tpu.memory_space<vmem>>, vector<8x8xf32>
    tpu.vector_store %arg17[%c8_457, %c16_458], %872 {strides = array<i32>} : memref<16x32xf32, #tpu.memory_space<vmem>>, vector<8x8xf32>,
    %877 = vector.extract_strided_slice %809 {offsets = [0, 24], sizes = [8, 8], strides = [1, 1]} : vector<8x32xf32> to vector<8x8xf32>
    %878 = vector.extract_strided_slice %810 {offsets = [0, 24], sizes = [8, 8], strides = [1, 1]} : vector<8x32xf32> to vector<8x8xf32>
    %cst_459 = arith.constant dense<0.000000e+00> : vector<8x8xf32>
    %879 = tpu.matmul %877, %878, %cst_459 {dimension_numbers = #tpu.dot_dimension_numbers<[1], [1], [0], [0], [0, 0, 1, 0], [], []>} : vector<8x8xf32>, vector<8x8xf32>, vector<8x8xf32> -> vector<8x8xf32>
    %cst_460 = arith.constant 0.353553385 : f32
    %880 = vector.broadcast %cst_460 : f32 to vector<8x8xf32>
    %881 = arith.mulf %879, %880 : vector<8x8xf32>
    %882 = vector.broadcast %813 : vector<1x8xf32> to vector<8x8xf32>
    %883 = arith.addf %881, %882 : vector<8x8xf32>
    %cst_461 = arith.constant dense<0xFF800000> : vector<8xf32>
    %884 = vector.multi_reduction <maximumf>, %883, %cst_461 [1] : vector<8x8xf32> to vector<8xf32>
    %885 = vector.shape_cast %884 : vector<8xf32> to vector<8x1xf32>
    %886 = vector.broadcast %885 : vector<8x1xf32> to vector<8x8xf32>
    %887 = arith.subf %883, %886 : vector<8x8xf32>
    %888 = math.exp %887 : vector<8x8xf32>
    %cst_462 = arith.constant dense<0.000000e+00> : vector<8xf32>
    %889 = vector.multi_reduction <add>, %888, %cst_462 [1] : vector<8x8xf32> to vector<8xf32>
    %890 = vector.shape_cast %889 : vector<8xf32> to vector<8x1xf32>
    %891 = tpu.reciprocal %890 : vector<8x1xf32> -> vector<8x1xf32>
    %892 = vector.broadcast %891 : vector<8x1xf32> to vector<8x8xf32>
    %893 = arith.mulf %888, %892 : vector<8x8xf32>
    %894 = vector.extract_strided_slice %811 {offsets = [0, 24], sizes = [8, 8], strides = [1, 1]} : vector<8x32xf32> to vector<8x8xf32>
    %cst_463 = arith.constant dense<0.000000e+00> : vector<8x8xf32>
    %895 = tpu.matmul %893, %894, %cst_463 {dimension_numbers = #tpu.dot_dimension_numbers<[1], [0], [0], [1], [0, 0, 1, 1], [], []>} : vector<8x8xf32>, vector<8x8xf32>, vector<8x8xf32> -> vector<8x8xf32>
    %c8_464 = arith.constant 8 : index
    %c24_465 = arith.constant 24 : index
    %896 = vector.load %arg18[%c8_464, %c24_465] : memref<16x32xf32, #tpu.memory_space<vmem>>, vector<8x8xf32>
    tpu.vector_store %arg18[%c8_464, %c24_465], %895 {strides = array<i32>} : memref<16x32xf32, #tpu.memory_space<vmem>>, vector<8x8xf32>,
    %c8_466 = arith.constant 8 : index
    %c24_467 = arith.constant 24 : index
    %897 = vector.load %arg17[%c8_466, %c24_467] : memref<16x32xf32, #tpu.memory_space<vmem>>, vector<8x8xf32>
    tpu.vector_store %arg17[%c8_466, %c24_467], %893 {strides = array<i32>} : memref<16x32xf32, #tpu.memory_space<vmem>>, vector<8x8xf32>,
    %c0_468 = arith.constant 0 : index
    %c0_469 = arith.constant 0 : index
    %898 = vector.load %arg18[%c0_468, %c0_469] : memref<16x32xf32, #tpu.memory_space<vmem>>, vector<16x32xf32>
    %c1_470 = arith.constant 1 : index
    %c3_471 = arith.constant 3 : index
    %c0_472 = arith.constant 0 : index
    %c0_473 = arith.constant 0 : index
    %899 = vector.load %arg6[%c1_470, %c3_471, %c0_472, %c0_473] : memref<2x4x32x32xf32, #tpu.memory_space<vmem>>, vector<1x1x32x32xf32>
    %900 = vector.shape_cast %899 : vector<1x1x32x32xf32> to vector<32x32xf32>
    %cst_474 = arith.constant dense<0.000000e+00> : vector<16x32xf32>
    %901 = tpu.matmul %898, %900, %cst_474 {dimension_numbers = #tpu.dot_dimension_numbers<[1], [0], [0], [1], [0, 0, 1, 1], [], []>} : vector<16x32xf32>, vector<32x32xf32>, vector<16x32xf32> -> vector<16x32xf32>
    %c1_475 = arith.constant 1 : index
    %c3_476 = arith.constant 3 : index
    %c0_477 = arith.constant 0 : index
    %c0_478 = arith.constant 0 : index
    %902 = vector.load %arg7[%c1_475, %c3_476, %c0_477, %c0_478] : memref<2x4x1x32xf32, #tpu.memory_space<vmem>>, vector<1x1x1x32xf32>
    %903 = vector.shape_cast %902 : vector<1x1x1x32xf32> to vector<1x32xf32>
    %904 = vector.broadcast %903 : vector<1x32xf32> to vector<16x32xf32>
    %905 = arith.addf %901, %904 : vector<16x32xf32>
    %c1_479 = arith.constant 1 : index
    %c1_480 = arith.constant 1 : index
    %c0_481 = arith.constant 0 : index
    %c0_482 = arith.constant 0 : index
    %906 = vector.load %arg12[%c1_479, %c1_480, %c0_481, %c0_482] : memref<2x3x1x32xf32, #tpu.memory_space<vmem>>, vector<1x1x1x32xf32>
    %907 = vector.shape_cast %906 : vector<1x1x1x32xf32> to vector<1x32xf32>
    %c1_483 = arith.constant 1 : index
    %c1_484 = arith.constant 1 : index
    %c0_485 = arith.constant 0 : index
    %c0_486 = arith.constant 0 : index
    %908 = vector.load %arg13[%c1_483, %c1_484, %c0_485, %c0_486] : memref<2x3x1x32xf32, #tpu.memory_space<vmem>>, vector<1x1x1x32xf32>
    %909 = vector.shape_cast %908 : vector<1x1x1x32xf32> to vector<1x32xf32>
    %910 = arith.addf %905, %698 : vector<16x32xf32>
    %cst_487 = arith.constant dense<0.000000e+00> : vector<16xf32>
    %911 = vector.multi_reduction <add>, %910, %cst_487 [1] : vector<16x32xf32> to vector<16xf32>
    %912 = vector.shape_cast %911 : vector<16xf32> to vector<16x1xf32>
    %cst_488 = arith.constant 3.200000e+01 : f32
    %913 = vector.broadcast %cst_488 : f32 to vector<16x1xf32>
    %914 = arith.divf %912, %913 : vector<16x1xf32>
    %915 = vector.broadcast %914 : vector<16x1xf32> to vector<16x32xf32>
    %916 = arith.subf %910, %915 : vector<16x32xf32>
    %917 = arith.mulf %916, %916 : vector<16x32xf32>
    %cst_489 = arith.constant dense<0.000000e+00> : vector<16xf32>
    %918 = vector.multi_reduction <add>, %917, %cst_489 [1] : vector<16x32xf32> to vector<16xf32>
    %919 = vector.shape_cast %918 : vector<16xf32> to vector<16x1xf32>
    %cst_490 = arith.constant 3.200000e+01 : f32
    %920 = vector.broadcast %cst_490 : f32 to vector<16x1xf32>
    %921 = arith.divf %919, %920 : vector<16x1xf32>
    %cst_491 = arith.constant 9.99999974E-6 : f32
    %922 = vector.broadcast %cst_491 : f32 to vector<16x1xf32>
    %923 = arith.addf %921, %922 : vector<16x1xf32>
    %924 = math.rsqrt %923 : vector<16x1xf32>
    %925 = vector.broadcast %924 : vector<16x1xf32> to vector<16x32xf32>
    %926 = arith.mulf %916, %925 : vector<16x32xf32>
    %927 = vector.broadcast %907 : vector<1x32xf32> to vector<16x32xf32>
    %928 = arith.mulf %926, %927 : vector<16x32xf32>
    %929 = vector.broadcast %909 : vector<1x32xf32> to vector<16x32xf32>
    %930 = arith.addf %928, %929 : vector<16x32xf32>
    %c1_492 = arith.constant 1 : index
    %c0_493 = arith.constant 0 : index
    %c0_494 = arith.constant 0 : index
    %931 = vector.load %arg8[%c1_492, %c0_493, %c0_494] : memref<2x32x64xf32, #tpu.memory_space<vmem>>, vector<1x32x64xf32>
    %932 = vector.shape_cast %931 : vector<1x32x64xf32> to vector<32x64xf32>
    %cst_495 = arith.constant dense<0.000000e+00> : vector<16x64xf32>
    %933 = tpu.matmul %930, %932, %cst_495 {dimension_numbers = #tpu.dot_dimension_numbers<[1], [0], [0], [1], [0, 0, 1, 1], [], []>} : vector<16x32xf32>, vector<32x64xf32>, vector<16x64xf32> -> vector<16x64xf32>
    %c1_496 = arith.constant 1 : index
    %c0_497 = arith.constant 0 : index
    %c0_498 = arith.constant 0 : index
    %934 = vector.load %arg9[%c1_496, %c0_497, %c0_498] : memref<2x1x64xf32, #tpu.memory_space<vmem>>, vector<1x1x64xf32>
    %935 = vector.shape_cast %934 : vector<1x1x64xf32> to vector<1x64xf32>
    %936 = vector.broadcast %935 : vector<1x64xf32> to vector<16x64xf32>
    %937 = arith.addf %933, %936 : vector<16x64xf32>
    %cst_499 = arith.constant 0.000000e+00 : f32
    %938 = vector.broadcast %cst_499 : f32 to vector<16x64xf32>
    %939 = arith.maximumf %937, %938 : vector<16x64xf32>
    %c1_500 = arith.constant 1 : index
    %c0_501 = arith.constant 0 : index
    %c0_502 = arith.constant 0 : index
    %940 = vector.load %arg10[%c1_500, %c0_501, %c0_502] : memref<2x64x32xf32, #tpu.memory_space<vmem>>, vector<1x64x32xf32>
    %941 = vector.shape_cast %940 : vector<1x64x32xf32> to vector<64x32xf32>
    %cst_503 = arith.constant dense<0.000000e+00> : vector<16x32xf32>
    %942 = tpu.matmul %939, %941, %cst_503 {dimension_numbers = #tpu.dot_dimension_numbers<[1], [0], [0], [1], [0, 0, 1, 1], [], []>} : vector<16x64xf32>, vector<64x32xf32>, vector<16x32xf32> -> vector<16x32xf32>
    %c1_504 = arith.constant 1 : index
    %c0_505 = arith.constant 0 : index
    %c0_506 = arith.constant 0 : index
    %943 = vector.load %arg11[%c1_504, %c0_505, %c0_506] : memref<2x1x32xf32, #tpu.memory_space<vmem>>, vector<1x1x32xf32>
    %944 = vector.shape_cast %943 : vector<1x1x32xf32> to vector<1x32xf32>
    %945 = vector.broadcast %944 : vector<1x32xf32> to vector<16x32xf32>
    %946 = arith.addf %942, %945 : vector<16x32xf32>
    %c1_507 = arith.constant 1 : index
    %c2_508 = arith.constant 2 : index
    %c0_509 = arith.constant 0 : index
    %c0_510 = arith.constant 0 : index
    %947 = vector.load %arg12[%c1_507, %c2_508, %c0_509, %c0_510] : memref<2x3x1x32xf32, #tpu.memory_space<vmem>>, vector<1x1x1x32xf32>
    %948 = vector.shape_cast %947 : vector<1x1x1x32xf32> to vector<1x32xf32>
    %c1_511 = arith.constant 1 : index
    %c2_512 = arith.constant 2 : index
    %c0_513 = arith.constant 0 : index
    %c0_514 = arith.constant 0 : index
    %949 = vector.load %arg13[%c1_511, %c2_512, %c0_513, %c0_514] : memref<2x3x1x32xf32, #tpu.memory_space<vmem>>, vector<1x1x1x32xf32>
    %950 = vector.shape_cast %949 : vector<1x1x1x32xf32> to vector<1x32xf32>
    %951 = arith.addf %946, %930 : vector<16x32xf32>
    %cst_515 = arith.constant dense<0.000000e+00> : vector<16xf32>
    %952 = vector.multi_reduction <add>, %951, %cst_515 [1] : vector<16x32xf32> to vector<16xf32>
    %953 = vector.shape_cast %952 : vector<16xf32> to vector<16x1xf32>
    %cst_516 = arith.constant 3.200000e+01 : f32
    %954 = vector.broadcast %cst_516 : f32 to vector<16x1xf32>
    %955 = arith.divf %953, %954 : vector<16x1xf32>
    %956 = vector.broadcast %955 : vector<16x1xf32> to vector<16x32xf32>
    %957 = arith.subf %951, %956 : vector<16x32xf32>
    %958 = arith.mulf %957, %957 : vector<16x32xf32>
    %cst_517 = arith.constant dense<0.000000e+00> : vector<16xf32>
    %959 = vector.multi_reduction <add>, %958, %cst_517 [1] : vector<16x32xf32> to vector<16xf32>
    %960 = vector.shape_cast %959 : vector<16xf32> to vector<16x1xf32>
    %cst_518 = arith.constant 3.200000e+01 : f32
    %961 = vector.broadcast %cst_518 : f32 to vector<16x1xf32>
    %962 = arith.divf %960, %961 : vector<16x1xf32>
    %cst_519 = arith.constant 9.99999974E-6 : f32
    %963 = vector.broadcast %cst_519 : f32 to vector<16x1xf32>
    %964 = arith.addf %962, %963 : vector<16x1xf32>
    %965 = math.rsqrt %964 : vector<16x1xf32>
    %966 = vector.broadcast %965 : vector<16x1xf32> to vector<16x32xf32>
    %967 = arith.mulf %957, %966 : vector<16x32xf32>
    %968 = vector.broadcast %948 : vector<1x32xf32> to vector<16x32xf32>
    %969 = arith.mulf %967, %968 : vector<16x32xf32>
    %970 = vector.broadcast %950 : vector<1x32xf32> to vector<16x32xf32>
    %971 = arith.addf %969, %970 : vector<16x32xf32>
    %c0_520 = arith.constant 0 : index
    %c0_521 = arith.constant 0 : index
    %972 = vector.load %arg14[%c0_520, %c0_521] : memref<32x16xf32, #tpu.memory_space<vmem>>, vector<32x16xf32>
    %cst_522 = arith.constant dense<0.000000e+00> : vector<16x16xf32>
    %973 = tpu.matmul %971, %972, %cst_522 {dimension_numbers = #tpu.dot_dimension_numbers<[1], [0], [0], [1], [0, 0, 1, 1], [], []>} : vector<16x32xf32>, vector<32x16xf32>, vector<16x16xf32> -> vector<16x16xf32>
    %c0_523 = arith.constant 0 : index
    %c0_524 = arith.constant 0 : index
    %974 = vector.load %arg15[%c0_523, %c0_524] : memref<1x16xf32, #tpu.memory_space<vmem>>, vector<1x16xf32>
    %975 = vector.broadcast %974 : vector<1x16xf32> to vector<16x16xf32>
    %976 = arith.addf %973, %975 : vector<16x16xf32>
    %c0_525 = arith.constant 0 : index
    %c0_526 = arith.constant 0 : index
    %977 = vector.load %arg16[%c0_525, %c0_526] : memref<16x16xf32, #tpu.memory_space<vmem>>, vector<16x16xf32>
    tpu.vector_store %arg16[%c0_525, %c0_526], %976 {strides = array<i32>} : memref<16x16xf32, #tpu.memory_space<vmem>>, vector<16x16xf32>,
    return
  }
}

</mosaic_0001>

<bundles_post_ra>
// kernel: decoder_forward.1
= control target key start
LH: loop header
LB: loop body
LE: loop exit
PB: predicated region body
PF: predicated region fallthrough
CT: control target
= control target key end

     0   :  { %s5553_s0 = inlined_call_operand.vmem [shape: f32[16,32], index: 0, kind: input, shape index: {}]   ;;  %s5554_s1 = inlined_call_operand.vmem [shape: f32[16,32], index: 1, kind: input, shape index: {}]   ;;  %s5555_s2 = inlined_call_operand.vmem [shape: f32[2,8,8], index: 2, kind: input, shape index: {}]   ;;  %s5556_s3 = inlined_call_operand.vmem [shape: f32[2,1,8], index: 3, kind: input, shape index: {}]   ;;  %s5557_s4 = inlined_call_operand.hbm [shape: f32[2,4,32,32], index: 4, kind: input, shape index: {}]   ;;  %s5558_s5 = inlined_call_operand.vmem [shape: f32[2,4,1,32], index: 5, kind: input, shape index: {}]   ;;  %s5559_s6 = inlined_call_operand.hbm [shape: f32[2,4,32,32], index: 6, kind: input, shape index: {}]   ;;  %s5560_s7 = inlined_call_operand.vmem [shape: f32[2,4,1,32], index: 7, kind: input, shape index: {}]   ;;  %s5561_s8 = inlined_call_operand.vmem [shape: f32[2,32,64], index: 8, kind: input, shape index: {}]   ;;  %s5562_s9 = inlined_call_operand.vmem [shape: f32[2,1,64], index: 9, kind: input, shape index: {}]   ;;  %s5563_s10 = inlined_call_operand.vmem [shape: f32[2,64,32], index: 10, kind: input, shape index: {}]   ;;  %s5564_s11 = inlined_call_operand.vmem [shape: f32[2,1,32], index: 11, kind: input, shape index: {}]   ;;  %s5565_s12 = inlined_call_operand.vmem [shape: f32[2,3,1,32], index: 12, kind: input, shape index: {}]   ;;  %s5566_s13 = inlined_call_operand.vmem [shape: f32[2,3,1,32], index: 13, kind: input, shape index: {}]   ;;  %s5567_s14 = inlined_call_operand.vmem [shape: f32[32,16], index: 14, kind: input, shape index: {}]   ;;  %s5568_s15 = inlined_call_operand.vmem [shape: f32[1,16], index: 15, kind: input, shape index: {}]   ;;  %s5569_s16 = inlined_call_operand.hbm [shape: f32[16,16], index: 16, kind: output, shape index: {0}]   ;;  %s5570_s17 = inlined_call_operand.vmem [shape: f32[16,32], index: 17, kind: output, shape index: {1}]  }
   0x1   :  { %5573 = sst [smem:[#allocation12_spill]] %s5553_s0 }
   0x2   :  { %5574 = sst [smem:[#allocation13_spill]] %s5554_s1 }
   0x3   :  { %23 = vsyncpa [#allocation4], 0 }
   0x4   :  { %24 = vsyncpa [#allocation7], 0 }
   0x5   :  { %25 = vsyncpa [#allocation5], 0  ;;  %s38_s26 = sshll.u32 %s5557_s4, 4  ;;  %s4447_s27 = smov [#allocation3]   ;;  %s39_s26 = int_to_ptr.hbm [resolvable:$true] %s38_s26 }
   0x6   :  { %s40_s28 = sshll.u32 %s4447_s27, 4  ;;  %s53_s30 = sshll.u32 %s5559_s6, 4  ;;  %s41_s28 = int_to_ptr.vmem [resolvable:$true] %s40_s28  ;;  %s54_s30 = int_to_ptr.hbm [resolvable:$true] %s53_s30 }
   0x7   :  { %s4448_s18 = smov 128   ;;  %s4449_s19 = smov 8  }
   0x8   :  { %46 = dma.hbm_to_vmem [thread:$0]  %s39_s26, 4096, %s41_s28, [#allocation4], %s4448_s18, %s4448_s18, %s4449_s19  }
   0x9   :  { %s4450_s1 = smov [#allocation6]  }
   0xa   :  { %s55_s20 = sshll.u32 %s4450_s1, 4  ;;  %s56_s20 = int_to_ptr.vmem [resolvable:$true] %s55_s20 }
   0xb   :  { %61 = dma.hbm_to_vmem [thread:$0]  %s54_s30, 4096, %s56_s20, [#allocation7], %s4448_s18, %s4448_s18, %s4449_s19  }
   0xc   :  { %4441 = dma.done.wait [#allocation4], 4096  }
   0xd   :  { %4442 = vsyncadd [#allocation4], 4294963200 }
   0xe   :  { %4443 = dma.done.wait [#allocation7], 4096  }
   0xf   :  { %4444 = vsyncadd [#allocation7], 4294963200  ;;  %v134_v0 = vld [vmem:[#allocation3 + $0x38] sm:$0xff]  ;;  %v133_v1 = vld [vmem:[#allocation3 + $0x30] sm:$0xff]  ;;  %s5575_s21 = sld [smem:[#allocation12_spill]]  ;;  %vm100_vm0 = vcmask 261120  }
  0x10   :  { %v95_v2 = vld [vmem:[#allocation3 + $0x18] sm:$0xff]  ;;  %152 = vmatpush.msra.mxu1 %v134_v0  ;;  %v94_v3 = vld [vmem:[#allocation3 + $0x10] sm:$0xff]  ;;  %v132_v4 = vld [vmem:[#allocation3 + $0x28] sm:$0xff]  ;;  %vm197_vm1 = vcmask 64512   ;;  %s4451_s28 = smov 112   ;;  %s4452_s29 = smov 120  }
  0x11   :  { %119 = vmatpush.msra.mxu0 %v95_v2  ;;  %v93_v5 = vld [vmem:[#allocation3 + $0x8] sm:$0xff]  ;;  %4161 = vmatpush.msra.mxu2 %v95_v2  ;;  %v131_v6 = vld [vmem:[#allocation3 + $0x20] sm:$0xff]  ;;  %v167_v10 = vld [vmem:[#allocation3 + $0x58] sm:$0xff]  ;;  %s4453_s0 = smov 104   ;;  %s4454_s22 = smov 16  }
  0x12   :  { %153 = vmatpush.msra.mxu1 %v133_v1  ;;  %v92_v7 = vld [vmem:[#allocation3] sm:$0xff]  ;;  %v166_v11 = vld [vmem:[#allocation3 + $0x50] sm:$0xff]  ;;  %v165_v12 = vld [vmem:[#allocation3 + $0x48] sm:$0xff]  ;;  %s4455_s23 = smov 24   ;;  %s5578_s30 = sld [smem:[#allocation13_spill]] }
  0x13   :  { %120 = vmatpush.msra.mxu0 %v94_v3  ;;  %4162 = vmatpush.msra.mxu2 %v94_v3  ;;  %v164_v13 = vld [vmem:[#allocation3 + $0x40] sm:$0xff]  ;;  %v4176_v14 = vld [vmem:[%s5558_s5 + $0x1] ss:$0 sm:$0xff]  ;;  %v4177_v15 = vld [vmem:[%s5558_s5] ss:$0 sm:$0xff]  ;;  %s4457_s24 = smov [#allocation8]  }
  0x14   :  { %154 = vmatpush.msra.mxu1 %v132_v4  ;;  %v4599_v22 = vld [vmem:[%s5558_s5 + $0x2] ss:$0 sm:$0xff]  ;;  %v4001_v3 = vld [vmem:[%s5555_s2 + $0x8] sm:$0xff]  ;;  %s3963_s25 = sshll.u32 %s5569_s16, 4  ;;  %s3964_s25 = int_to_ptr.hbm [resolvable:$true] %s3963_s25 }
  0x15   :  { %121 = vmatpush.msra.mxu0 %v93_v5  ;;  %v4563_v8 = vld [vmem:[%s5575_s21] sm:$0xff]  ;;  %4163 = vmatpush.msra.mxu2 %v93_v5  ;;  %v4568_v9 = vld [vmem:[%s5575_s21 + $0x8] sm:$0xff] }
  0x16   :  { %155 = vmatpush.msra.mxu1 %v131_v6  ;;  %v4610_v28 = vld [vmem:[%s5555_s2] sm:$0xff] }
  0x17   :  { %122 = vmatpush.msra.mxu0 %v92_v7  ;;  %3984 = vmatmul.msk.f32.vlgmr.msra.gmra.mxu1 %vm100_vm0, %v4563_v8 }
  0x18   :  { %3981 = vmatmul.msk.f32.vlgmr.msra.gmra.mxu0 %vm100_vm0, %v4563_v8  ;;  %4164 = vmatpush.msra.mxu2 %v92_v7 }
  0x19   :  { %3982 = vmatmul.msk.f32.vlgmr.msra.gmra.mxu2 %vm100_vm0, %v4568_v9 }
  0x1a   :  { %185 = vmatpush.msrb.mxu2 %v167_v10 }
  0x1c   :  { %186 = vmatpush.msrb.mxu2 %v166_v11 }
  0x1e   :  { %187 = vmatpush.msrb.mxu2 %v165_v12 }
  0x1f   :  { %3985 = vmatmul.msk.f32.gmra.mxu1 %vm100_vm0, %v4568_v9 }
  0x20   :  { %188 = vmatpush.msrb.mxu2 %v164_v13 }
  0x21   :  { %3987 = vmatmul.msk.f32.vlgmr.msrb.gmra.mxu2 %vm100_vm0, %v4563_v8 }
  0x29   :  { %3988 = vmatmul.msk.f32.gmra.mxu2 %vm100_vm0, %v4568_v9 }
  0x94   :  { %v157_v16 = vpop.f32.mrf.mxu1 }
  0x95   :  { %v124_v17 = vpop.f32.mrf.mxu0  ;;  %v158_v18 = vadd.f32 %v4176_v14, %v157_v16 }
  0x96   :  { %v125_v19 = vadd.f32 %v4177_v15, %v124_v17 }
  0x97   :  { %363 = vrot.lane.b32.xlu2 %v158_v18, %s4451_s28  ;;  %276 = vrot.lane.b32.xlu1 %v158_v18, %s4452_s29 }
  0x98   :  { %3989 = vmatpush.xpose.msk.msra.mxu3 %vm197_vm1, %v158_v18 }
  0x9b   :  { %3990 = vmatmul.msk.f32.vlgmr.msra.gmra.mxu3 %vm197_vm1, %v125_v19 }
  0x9c   :  { %v127_v20 = vpop.f32.mrf.mxu2  ;;  %v160_v34 = vpop.f32.mrf.mxu1 }
  0x9d   :  { %v128_v21 = vadd.f32 %v4177_v15, %v127_v20  ;;  %v161_v35 = vadd.f32 %v4176_v14, %v160_v34 }
  0x9f   :  { %449 = vrot.lane.b32.xlu2 %v158_v18, %s4453_s0  ;;  %274 = vrot.lane.b32.xlu1 %v125_v19, %s4452_s29 }
  0xa4   :  { %v190_v23 = vpop.f32.mrf.mxu2 }
  0xa5   :  { %v4602_v24 = vadd.f32 %v4599_v22, %v190_v23 }
  0xa7   :  { %447 = vrot.lane.b32.xlu1 %v125_v19, %s4453_s0  ;;  %268 = vmatpush.msrb.mxu3 %v4602_v24 }
  0xa8   :  { %613 = vrot.lane.b32.xlu2 %v161_v35, %s4452_s29 }
  0xaf   :  { %611 = vrot.lane.b32.xlu1 %v128_v21, %s4452_s29 }
  0xb0   :  { %699 = vrot.lane.b32.xlu2 %v161_v35, %s4451_s28 }
  0xb7   :  { %784 = vrot.lane.b32.xlu1 %v161_v35, %s4453_s0 }
  0xb8   :  { %697 = vrot.lane.b32.xlu2 %v128_v21, %s4451_s28 }
  0xf1   :  { %v364_v25 = vpop.permute.xlu2 %363 }
  0xf2   :  { %3995 = vmatpush.xpose.msk.msrb.mxu1 %vm197_vm1, %v364_v25 }
  0xf6   :  { %4002 = vmatpush.xpose.msk.msra.mxu1 %vm197_vm1, %v161_v35 }
  0xf9   :  { %v450_v40 = vpop.permute.xlu2 %449 }
 0x102   :  { %v614_v45 = vpop.permute.xlu2 %613 }
 0x109   :  { %v277_v26 = vpop.permute.xlu1 %276 }
 0x10a   :  { %3992 = vmatpush.xpose.msk.msra.mxu3 %vm197_vm1, %v277_v26  ;;  %v700_v56 = vpop.permute.xlu2 %699 }
 0x111   :  { %v275_v41 = vpop.permute.xlu1 %274 }
 0x112   :  { %v698_v58 = vpop.permute.xlu2 %697 }
 0x119   :  { %v448_v51 = vpop.permute.xlu1 %447 }
 0x11e   :  { %v221_v27 = vpop.f32.mrf.mxu3 }
 0x11f   :  { %v224_v29 = vmul.f32 0.35355338, %v221_v27 }
 0x121   :  { %v225_v30 = vadd.f32 %v224_v29, %v4610_v28  ;;  %v612_v57 = vpop.permute.xlu1 %611 }
 0x123   :  { %v226_v31 = vsel %vm197_vm1, %v225_v30, -inf }
 0x124   :  { %227 = vmax.xlane.f32.xlu0 %v226_v31 }
 0x129   :  { %v785_v59 = vpop.permute.xlu1 %784 }
 0x197   :  { %v228_v32 = vpop.xlane.xlu0 %227 }
 0x198   :  { %v229_v33 = vsub.f32 %v225_v30, %v228_v32 }
 0x19a   :  { %v230_v36 = vmul.f32 1.442695, %v229_v33 }
 0x19c   :  { %4213 = vpow2.f32 %v230_v36 }
 0x1a2   :  { %v4214_v37 = vpop.eup %4213 }
 0x1a3   :  { %v232_v38 = vsel %vm197_vm1, %v4214_v37, 0.0 }
 0x1a4   :  { %233 = vadd.xlane.f32.xlu0 %v232_v38 }
 0x1b8   :  { %361 = vrot.lane.b32.xlu0 %v125_v19, %s4451_s28 }
 0x1c0   :  { %782 = vrot.lane.b32.xlu0 %v128_v21, %s4453_s0 }
 0x217   :  { %v234_v39 = vpop.xlane.xlu0 %233 }
 0x218   :  { %4215 = vrcp.f32 %v234_v39  ;;  %v246_v46 = vand.u32 2147483648, %v234_v39  ;;  %v244_v48 = vand.u32 2147483647, %v234_v39  ;;  %vm240_vm3 = vweird.f32 %v234_v39 }
 0x21a   :  { %v247_v50 = vor.u32 1.1754944e-38, %v246_v46  ;;  %vm245_vm5 = vcmp.eq.f32.partialorder %v244_v48, 8.507059e+37 }
 0x21e   :  { %v4216_v42 = vpop.eup %4215 }
 0x21f   :  { %v236_v43 = vmul.f32 %v4216_v42, %v234_v39  ;;  %vm241_vm2 = vweird.f32 %v4216_v42 }
 0x220   :  { %vm242_vm4 = vmor %vm240_vm3, %vm241_vm2 }
 0x221   :  { %v237_v44 = vsub.f32 1.0, %v236_v43 }
 0x223   :  { %v238_v47 = vmul.f32 %v4216_v42, %v237_v44 }
 0x225   :  { %v239_v49 = vadd.f32 %v4216_v42, %v238_v47 }
 0x227   :  { %v243_v52 = vsel %vm242_vm4, %v4216_v42, %v239_v49 }
 0x228   :  { %v248_v53 = vsel %vm245_vm5, %v247_v50, %v243_v52 }
 0x229   :  { %v249_v54 = vmul.f32 %v4214_v37, %v248_v53 }
 0x22a   :  { %v362_v55 = vpop.permute.xlu0 %361 }
 0x22b   :  { %3991 = vmatmul.msk.f32.vlgmr.msrb.gmra.mxu3 %vm197_vm1, %v249_v54  ;;  %3996 = vmatmul.msk.f32.vlgmr.msrb.gmra.mxu1 %vm197_vm1, %v362_v55 }
 0x22c   :  { %3998 = vmatpush.xpose.msk.msrb.mxu3 %vm197_vm1, %v450_v40  ;;  %4008 = vmatpush.xpose.msk.msrb.mxu1 %vm197_vm1, %v700_v56 }
 0x232   :  { %v783_v60 = vpop.permute.xlu0 %782 }
 0x233   :  { %3993 = vmatmul.msk.f32.vlgmr.msra.gmra.mxu3 %vm197_vm1, %v275_v41  ;;  %4003 = vmatmul.msk.f32.vlgmr.msra.gmra.mxu1 %vm197_vm1, %v128_v21 }
 0x234   :  { %4005 = vmatpush.xpose.msk.msra.mxu3 %vm197_vm1, %v614_v45 }
 0x23b   :  { %3999 = vmatmul.msk.f32.vlgmr.msrb.gmra.mxu3 %vm197_vm1, %v448_v51  ;;  %4009 = vmatmul.msk.f32.vlgmr.msrb.gmra.mxu1 %vm197_vm1, %v698_v58 }
 0x23c   :  { %4011 = vmatpush.xpose.msk.msrb.mxu3 %vm197_vm1, %v785_v59 }
 0x243   :  { %4006 = vmatmul.msk.f32.vlgmr.msra.gmra.mxu3 %vm197_vm1, %v612_v57 }
 0x24b   :  { %4012 = vmatmul.msk.f32.vlgmr.msrb.gmra.mxu3 %vm197_vm1, %v783_v60 }
 0x2a8   :  { %v386_v61 = vpop.f32.mrf.mxu1 }
 0x2a9   :  { %v389_v62 = vmul.f32 0.35355338, %v386_v61 }
 0x2ab   :  { %v390_v63 = vadd.f32 %v389_v62, %v4610_v28 }
 0x2ad   :  { %v391_v0 = vsel %vm197_vm1, %v390_v63, -inf }
 0x2ae   :  { %v270_v1 = vpop.f32.mrf.mxu3  ;;  %392 = vmax.xlane.f32.xlu2 %v391_v0 }
 0x2af   :  { %273 = vst.msk [vmem:[#allocation2] sm:$0xff] %vm197_vm1, %v270_v1 }
 0x2b0   :  { %v558_v2 = vpop.f32.mrf.mxu1 }
 0x2b1   :  { %v561_v4 = vmul.f32 0.35355338, %v558_v2 }
 0x2b3   :  { %v562_v5 = vadd.f32 %v4001_v3, %v561_v4 }
 0x2b5   :  { %v563_v6 = vsel %vm197_vm1, %v562_v5, -inf }
 0x2b6   :  { %564 = vmax.xlane.f32.xlu2 %v563_v6  ;;  %v299_v13 = vpop.f32.mrf.mxu3  ;;  %v193_v6 = vpop.f32.mrf.mxu2 }
 0x2b7   :  { %v302_v33 = vmul.f32 0.35355338, %v299_v13 }
 0x2b8   :  { %v722_v7 = vpop.f32.mrf.mxu1 }
 0x2b9   :  { %v725_v10 = vmul.f32 0.35355338, %v722_v7  ;;  %v303_v36 = vadd.f32 %v302_v33, %v4610_v28 }
 0x2bb   :  { %v726_v11 = vadd.f32 %v4001_v3, %v725_v10  ;;  %v304_v41 = vsel %vm197_vm1, %v303_v36, -inf }
 0x2bd   :  { %v727_v12 = vsel %vm197_vm1, %v726_v11, -inf }
 0x2be   :  { %728 = vmax.xlane.f32.xlu0 %v727_v12  ;;  %v472_v17 = vpop.f32.mrf.mxu3 }
 0x2bf   :  { %v475_v23 = vmul.f32 0.35355338, %v472_v17 }
 0x2c1   :  { %v476_v29 = vadd.f32 %v475_v23, %v4610_v28 }
 0x2c3   :  { %v477_v34 = vsel %vm197_vm1, %v476_v29, -inf }
 0x2c6   :  { %v636_v26 = vpop.f32.mrf.mxu3 }
 0x2c7   :  { %v639_v39 = vmul.f32 0.35355338, %v636_v26 }
 0x2c9   :  { %v640_v43 = vadd.f32 %v4001_v3, %v639_v39 }
 0x2cb   :  { %v641_v45 = vsel %vm197_vm1, %v640_v43, -inf }
 0x2ce   :  { %v807_v37 = vpop.f32.mrf.mxu3 }
 0x2cf   :  { %v810_v40 = vmul.f32 0.35355338, %v807_v37 }
 0x2d1   :  { %v811_v44 = vadd.f32 %v4001_v3, %v810_v40 }
 0x2d3   :  { %v812_v46 = vsel %vm197_vm1, %v811_v44, -inf }
 0x321   :  { %v393_v14 = vpop.xlane.xlu2 %392 }
 0x322   :  { %v394_v15 = vsub.f32 %v390_v63, %v393_v14 }
 0x324   :  { %v395_v16 = vmul.f32 1.442695, %v394_v15 }
 0x326   :  { %4217 = vpow2.f32 %v395_v16  ;;  %v194_v16 = vadd.f32 %v4599_v22, %v193_v6 }
 0x329   :  { %v565_v18 = vpop.xlane.xlu2 %564 }
 0x32a   :  { %v566_v19 = vsub.f32 %v562_v5, %v565_v18 }
 0x32c   :  { %v4642_v20 = vpop.eup %4217  ;;  %v567_v21 = vmul.f32 1.442695, %v566_v19 }
 0x32d   :  { %v397_v25 = vsel %vm197_vm1, %v4642_v20, 0.0 }
 0x32e   :  { %4219 = vpow2.f32 %v567_v21  ;;  %398 = vadd.xlane.f32.xlu0 %v397_v25 }
 0x331   :  { %v729_v27 = vpop.xlane.xlu0 %728 }
 0x332   :  { %v730_v30 = vsub.f32 %v726_v11, %v729_v27 }
 0x334   :  { %v4647_v31 = vpop.eup %4219  ;;  %v731_v32 = vmul.f32 1.442695, %v730_v30 }
 0x335   :  { %v569_v35 = vsel %vm197_vm1, %v4647_v31, 0.0 }
 0x336   :  { %4221 = vpow2.f32 %v731_v32  ;;  %478 = vmax.xlane.f32.xlu0 %v477_v34  ;;  %570 = vadd.xlane.f32.xlu1 %v569_v35 }
 0x33c   :  { %v4653_v38 = vpop.eup %4221 }
 0x33d   :  { %v733_v42 = vsel %vm197_vm1, %v4653_v38, 0.0 }
 0x33e   :  { %305 = vmax.xlane.f32.xlu1 %v304_v41  ;;  %734 = vadd.xlane.f32.xlu2 %v733_v42 }
 0x346   :  { %642 = vmax.xlane.f32.xlu1 %v641_v45  ;;  %813 = vmax.xlane.f32.xlu2 %v812_v46 }
 0x34a   :  { %415 = vrot.lane.b32.xlu0 %v4602_v24, %s4451_s28 }
 0x35f   :  { %329 = vrot.lane.b32.xlu1 %v4602_v24, %s4452_s29 }
 0x3a1   :  { %v399_v28 = vpop.xlane.xlu0 %398 }
 0x3a2   :  { %4223 = vrcp.f32 %v399_v28  ;;  %v411_v61 = vand.u32 2147483648, %v399_v28  ;;  %vm405_vm7 = vweird.f32 %v399_v28  ;;  %v409_v63 = vand.u32 2147483647, %v399_v28 }
 0x3a4   :  { %v412_v5 = vor.u32 1.1754944e-38, %v411_v61  ;;  %vm410_vm9 = vcmp.eq.f32.partialorder %v409_v63, 8.507059e+37 }
 0x3a8   :  { %v4224_v47 = vpop.eup %4223 }
 0x3a9   :  { %v401_v48 = vmul.f32 %v4224_v47, %v399_v28  ;;  %v571_v49 = vpop.xlane.xlu1 %570  ;;  %v479_v50 = vpop.xlane.xlu0 %478  ;;  %vm406_vm6 = vweird.f32 %v4224_v47 }
 0x3aa   :  { %4225 = vrcp.f32 %v571_v49  ;;  %v480_v52 = vsub.f32 %v476_v29, %v479_v50  ;;  %vm407_vm8 = vmor %vm405_vm7, %vm406_vm6  ;;  %vm577_vm11 = vweird.f32 %v571_v49  ;;  %v583_v15 = vand.u32 2147483648, %v571_v49 }
 0x3ab   :  { %v402_v51 = vsub.f32 1.0, %v401_v48  ;;  %v581_v18 = vand.u32 2147483647, %v571_v49 }
 0x3ac   :  { %v481_v53 = vmul.f32 1.442695, %v480_v52  ;;  %v584_v29 = vor.u32 1.1754944e-38, %v583_v15 }
 0x3ad   :  { %v403_v54 = vmul.f32 %v4224_v47, %v402_v51  ;;  %vm582_vm13 = vcmp.eq.f32.partialorder %v581_v18, 8.507059e+37 }
 0x3ae   :  { %4227 = vpow2.f32 %v481_v53 }
 0x3af   :  { %v404_v59 = vadd.f32 %v4224_v47, %v403_v54 }
 0x3b0   :  { %v4226_v55 = vpop.eup %4225 }
 0x3b1   :  { %v573_v56 = vmul.f32 %v4226_v55, %v571_v49  ;;  %v306_v57 = vpop.xlane.xlu1 %305  ;;  %v4664_v58 = vpop.xlane.xlu2 %734  ;;  %v408_v2 = vsel %vm407_vm8, %v4224_v47, %v404_v59  ;;  %vm578_vm10 = vweird.f32 %v4226_v55 }
 0x3b2   :  { %v307_v60 = vsub.f32 %v303_v36, %v306_v57  ;;  %v413_v11 = vsel %vm410_vm9, %v412_v5, %v408_v2  ;;  %vm579_vm12 = vmor %vm577_vm11, %vm578_vm10  ;;  %vm741_vm2 = vweird.f32 %v4664_v58 }
 0x3b3   :  { %v574_v62 = vsub.f32 1.0, %v573_v56  ;;  %v414_v25 = vmul.f32 %v4642_v20, %v413_v11  ;;  %v747_v56 = vand.u32 2147483648, %v4664_v58 }
 0x3b4   :  { %v308_v0 = vmul.f32 1.442695, %v307_v60  ;;  %v4666_v1 = vpop.eup %4227 }
 0x3b5   :  { %v575_v3 = vmul.f32 %v4226_v55, %v574_v62  ;;  %v483_v4 = vsel %vm197_vm1, %v4666_v1, 0.0 }
 0x3b6   :  { %4229 = vpow2.f32 %v308_v0  ;;  %484 = vadd.xlane.f32.xlu2 %v483_v4 }
 0x3b7   :  { %v576_v12 = vadd.f32 %v4226_v55, %v575_v3 }
 0x3b9   :  { %v643_v7 = vpop.xlane.xlu1 %642  ;;  %v814_v10 = vpop.xlane.xlu2 %813  ;;  %v580_v27 = vsel %vm579_vm12, %v4226_v55, %v576_v12  ;;  %v745_v55 = vand.u32 2147483647, %v4664_v58 }
 0x3ba   :  { %v644_v13 = vsub.f32 %v640_v43, %v643_v7  ;;  %v815_v14 = vsub.f32 %v811_v44, %v814_v10  ;;  %v585_v22 = vsel %vm582_vm13, %v584_v29, %v580_v27  ;;  %v748_v10 = vor.u32 1.1754944e-38, %v747_v56 }
 0x3bb   :  { %v586_v32 = vmul.f32 %v4647_v31, %v585_v22  ;;  %vm746_vm10 = vcmp.eq.f32.partialorder %v745_v55, 8.507059e+37  ;;  %v4179_v55 = vld [vmem:[%s5558_s5 + $0x3] ss:$0 sm:$0xff] }
 0x3bc   :  { %v4671_v17 = vpop.eup %4229  ;;  %v645_v19 = vmul.f32 1.442695, %v644_v13  ;;  %v816_v21 = vmul.f32 1.442695, %v815_v14  ;;  %v416_v23 = vpop.permute.xlu0 %415 }
 0x3bd   :  { %436 = vmatpush.msra.mxu2 %v416_v23  ;;  %v310_v26 = vsel %vm197_vm1, %v4671_v17, 0.0 }
 0x3be   :  { %4231 = vpow2.f32 %v645_v19  ;;  %311 = vadd.xlane.f32.xlu1 %v310_v26  ;;  %3997 = vmatmul.msk.f32.vlgmr.msra.gmra.mxu2 %vm197_vm1, %v414_v25 }
 0x3bf   :  { %4233 = vpow2.f32 %v816_v21  ;;  %605 = vmatpush.msrb.mxu2 %v194_v16 }
 0x3c0   :  { %4235 = vrcp.f32 %v4664_v58 }
 0x3c4   :  { %v4677_v30 = vpop.eup %4231 }
 0x3c5   :  { %v4680_v20 = vpop.eup %4233  ;;  %v647_v33 = vsel %vm197_vm1, %v4677_v30, 0.0 }
 0x3c6   :  { %648 = vadd.xlane.f32.xlu0 %v647_v33  ;;  %v818_v34 = vsel %vm197_vm1, %v4680_v20, 0.0  ;;  %4004 = vmatmul.msk.f32.vlgmr.msrb.gmra.mxu2 %vm197_vm1, %v586_v32  ;;  %v4236_v36 = vpop.eup %4235 }
 0x3c7   :  { %819 = vadd.xlane.f32.xlu2 %v818_v34  ;;  %v737_v40 = vmul.f32 %v4236_v36, %v4664_v58  ;;  %vm742_vm15 = vweird.f32 %v4236_v36 }
 0x3c8   :  { %vm4703_vm6 = vmor %vm741_vm2, %vm742_vm15 }
 0x3c9   :  { %v738_v42 = vsub.f32 1.0, %v737_v40 }
 0x3d1   :  { %v330_v35 = vpop.permute.xlu1 %329 }
 0x3d2   :  { %350 = vmatpush.msrb.mxu0 %v330_v35 }
 0x3d7   :  { %751 = vrot.lane.b32.xlu1 %v194_v16, %s4451_s28 }
 0x3da   :  { %666 = vrot.lane.b32.xlu0 %v194_v16, %s4452_s29 }
 0x3df   :  { %501 = vrot.lane.b32.xlu2 %v4602_v24, %s4453_s0  ;;  %v739_v24 = vmul.f32 %v4236_v36, %v738_v42 }
 0x3e1   :  { %v740_v52 = vadd.f32 %v4236_v36, %v739_v24  ;;  %v871_v24 = vld [vmem:[#allocation3 + $0x68] sm:$0xff] }
 0x3e2   :  { %836 = vrot.lane.b32.xlu0 %v194_v16, %s4453_s0 }
 0x3e3   :  { %v744_v2 = vsel %vm4703_vm6, %v4236_v36, %v740_v52  ;;  %vm359_vm6 = vcmask 130112  }
 0x3e4   :  { %v749_v15 = vsel %vm746_vm10, %v748_v10, %v744_v2  ;;  %v4456_v2 = vmov 32.0   ;;  %v1012_v10 = vld [vmem:[#allocation6 + $0x28] sm:$0xff] }
 0x429   :  { %v485_v31 = vpop.xlane.xlu2 %484 }
 0x42a   :  { %4237 = vrcp.f32 %v485_v31  ;;  %v497_v3 = vand.u32 2147483648, %v485_v31  ;;  %vm491_vm8 = vweird.f32 %v485_v31  ;;  %v495_v5 = vand.u32 2147483647, %v485_v31 }
 0x42c   :  { %v498_v14 = vor.u32 1.1754944e-38, %v497_v3  ;;  %vm496_vm11 = vcmp.eq.f32.partialorder %v495_v5, 8.507059e+37 }
 0x430   :  { %v4238_v39 = vpop.eup %4237 }
 0x431   :  { %v312_v37 = vpop.xlane.xlu1 %311  ;;  %v487_v41 = vmul.f32 %v4238_v39, %v485_v31  ;;  %vm492_vm4 = vweird.f32 %v4238_v39 }
 0x432   :  { %4239 = vrcp.f32 %v312_v37  ;;  %v324_v48 = vand.u32 2147483648, %v312_v37  ;;  %v322_v51 = vand.u32 2147483647, %v312_v37  ;;  %vm318_vm3 = vweird.f32 %v312_v37  ;;  %vm493_vm9 = vmor %vm491_vm8, %vm492_vm4 }
 0x433   :  { %v488_v44 = vsub.f32 1.0, %v487_v41  ;;  %vm531_vm8 = vcmask 261312  }
 0x434   :  { %v325_v57 = vor.u32 1.1754944e-38, %v324_v48  ;;  %vm323_vm7 = vcmp.eq.f32.partialorder %v322_v51, 8.507059e+37 }
 0x435   :  { %v489_v49 = vmul.f32 %v4238_v39, %v488_v44 }
 0x437   :  { %v490_v60 = vadd.f32 %v4238_v39, %v489_v49 }
 0x438   :  { %v4240_v43 = vpop.eup %4239 }
 0x439   :  { %v314_v45 = vmul.f32 %v4240_v43, %v312_v37  ;;  %v4694_v46 = vpop.xlane.xlu0 %648  ;;  %vm319_vm14 = vweird.f32 %v4240_v43  ;;  %v494_v11 = vsel %vm493_vm9, %v4238_v39, %v490_v60 }
 0x43a   :  { %v4696_v28 = vpop.xlane.xlu2 %819  ;;  %4241 = vrcp.f32 %v4694_v46  ;;  %vm320_vm5 = vmor %vm318_vm3, %vm319_vm14  ;;  %v499_v16 = vsel %vm496_vm11, %v498_v14, %v494_v11  ;;  %v661_v25 = vand.u32 2147483648, %v4694_v46  ;;  %vm655_vm13 = vweird.f32 %v4694_v46  ;;  %v1011_v11 = vld [vmem:[#allocation6 + $0x20] sm:$0xff] }
 0x43b   :  { %v315_v47 = vsub.f32 1.0, %v314_v45  ;;  %4243 = vrcp.f32 %v4696_v28  ;;  %v659_v26 = vand.u32 2147483647, %v4694_v46  ;;  %v500_v27 = vmul.f32 %v4666_v1, %v499_v16 }
 0x43c   :  { %v832_v35 = vand.u32 2147483648, %v4696_v28  ;;  %vm826_vm3 = vweird.f32 %v4696_v28  ;;  %v830_v31 = vand.u32 2147483647, %v4696_v28  ;;  %4245 = vrcp.f32 %v4456_v2 }
 0x43d   :  { %v316_v50 = vmul.f32 %v4240_v43, %v315_v47  ;;  %vm660_vm15 = vcmp.eq.f32.partialorder %v659_v26, 8.507059e+37  ;;  %v976_v26 = vld [vmem:[#allocation6 + $0x18] sm:$0xff] }
 0x43e   :  { %v833_v39 = vor.u32 1.1754944e-38, %v832_v35 }
 0x43f   :  { %v317_v53 = vadd.f32 %v4240_v43, %v316_v50 }
 0x440   :  { %v4242_v54 = vpop.eup %4241 }
 0x441   :  { %v651_v61 = vmul.f32 %v4242_v54, %v4694_v46  ;;  %v438_v62 = vpop.f32.mrf.mxu2  ;;  %v321_v63 = vsel %vm320_vm5, %v4240_v43, %v317_v53  ;;  %v4244_v0 = vpop.eup %4243  ;;  %vm656_vm12 = vweird.f32 %v4242_v54  ;;  %vm831_vm5 = vcmp.eq.f32.partialorder %v830_v31, 8.507059e+37  ;;  %v873_v46 = vld [vmem:[#allocation3 + $0x78] sm:$0xff] }
 0x442   :  { %v502_v4 = vpop.permute.xlu2 %501  ;;  %442 = vrot.lane.b32.xlu2 %v438_v62, %s4454_s22  ;;  %v326_v58 = vsel %vm323_vm7, %v325_v57, %v321_v63  ;;  %v822_v12 = vmul.f32 %v4244_v0, %v4696_v28  ;;  %vm657_vm14 = vmor %vm655_vm13, %vm656_vm12  ;;  %vm827_vm2 = vweird.f32 %v4244_v0  ;;  %897 = vmatpush.msra.mxu1 %v873_v46  ;;  %v870_v28 = vld [vmem:[#allocation3 + $0x60] sm:$0xff]  ;;  %vm445_vm7 = vcmask 195712   ;;  %v4246_v3 = vpop.eup %4245 }
 0x443   :  { %v652_v6 = vsub.f32 1.0, %v651_v61  ;;  %522 = vmatpush.msra.mxu0 %v502_v4  ;;  %v327_v7 = vmul.f32 %v4671_v17, %v326_v58  ;;  %v750_v17 = vmul.f32 %v4653_v38, %v749_v15  ;;  %v662_v38 = vor.u32 1.1754944e-38, %v661_v25  ;;  %vm828_vm4 = vmor %vm826_vm3, %vm827_vm2 }
 0x444   :  { %v823_v18 = vsub.f32 1.0, %v822_v12  ;;  %v919_v4 = vmul.f32 32.0, %v4246_v3  ;;  %vm923_vm9 = vweird.f32 %v4246_v3 }
 0x445   :  { %v653_v13 = vmul.f32 %v4242_v54, %v652_v6  ;;  %3994 = vmatmul.msk.f32.vlgmr.msrb.gmra.mxu0 %vm197_vm1, %v327_v7  ;;  %v1014_v6 = vld [vmem:[#allocation6 + $0x38] sm:$0xff]  ;;  %v1013_v7 = vld [vmem:[#allocation6 + $0x30] sm:$0xff] }
 0x446   :  { %v824_v22 = vmul.f32 %v4244_v0, %v823_v18  ;;  %v920_v58 = vsub.f32 1.0, %v919_v4  ;;  %1038 = vmatpush.msra.mxu3 %v1014_v6  ;;  %v1052_v6 = vld [vmem:[#allocation6 + $0x50] sm:$0xff] }
 0x447   :  { %v654_v19 = vadd.f32 %v4242_v54, %v653_v13 }
 0x448   :  { %v825_v34 = vadd.f32 %v4244_v0, %v824_v22  ;;  %v921_v5 = vmul.f32 %v4246_v3, %v920_v58  ;;  %1039 = vmatpush.msra.mxu3 %v1013_v7  ;;  %v973_v22 = vld [vmem:[#allocation6] sm:$0xff]  ;;  %v1051_v7 = vld [vmem:[#allocation6 + $0x48] sm:$0xff] }
 0x449   :  { %v752_v21 = vpop.permute.xlu1 %751  ;;  %v607_v23 = vpop.f32.mrf.mxu2  ;;  %v658_v32 = vsel %vm657_vm14, %v4242_v54, %v654_v19 }
 0x44a   :  { %610 = vst.msk [vmem:[#allocation2 + $0x8] sm:$0xff] %vm197_vm1, %v607_v23  ;;  %772 = vmatpush.msra.mxu2 %v752_v21  ;;  %v663_v33 = vsel %vm660_vm15, %v662_v38, %v658_v32  ;;  %v829_v37 = vsel %vm828_vm4, %v4244_v0, %v825_v34  ;;  %1040 = vmatpush.msra.mxu3 %v1012_v10  ;;  %v4767_v34 = vld [vmem:[%s5578_s30 + $0x8] sm:$0xff] }
 0x44b   :  { %4010 = vmatmul.msk.f32.vlgmr.msra.gmra.mxu2 %vm197_vm1, %v750_v17  ;;  %v664_v1 = vmul.f32 %v4677_v30, %v663_v33  ;;  %v834_v40 = vsel %vm831_vm5, %v833_v39, %v829_v37 }
 0x44c   :  { %v667_v29 = vpop.permute.xlu0 %666  ;;  %v835_v41 = vmul.f32 %v4680_v20, %v834_v40  ;;  %v872_v20 = vld [vmem:[#allocation3 + $0x70] sm:$0xff]  ;;  %1041 = vmatpush.msra.mxu3 %v1011_v11  ;;  %999 = vmatpush.msrb.mxu2 %v976_v26 }
 0x44d   :  { %4000 = vmatmul.msk.f32.vlgmr.msra.gmra.mxu0 %vm197_vm1, %v500_v27  ;;  %898 = vmatpush.msra.mxu1 %v872_v20  ;;  %v975_v27 = vld [vmem:[#allocation6 + $0x10] sm:$0xff] }
 0x44e   :  { %687 = vmatpush.msrb.mxu0 %v667_v29  ;;  %1000 = vmatpush.msrb.mxu2 %v975_v27  ;;  %v974_v29 = vld [vmem:[#allocation6 + $0x8] sm:$0xff] }
 0x44f   :  { %899 = vmatpush.msra.mxu1 %v871_v24  ;;  %v4181_v24 = vld [vmem:[%s5566_s13] ss:$0 sm:$0xff] }
 0x450   :  { %1001 = vmatpush.msrb.mxu2 %v974_v29 }
 0x451   :  { %900 = vmatpush.msra.mxu1 %v870_v28 }
 0x452   :  { %1002 = vmatpush.msrb.mxu2 %v973_v22 }
 0x454   :  { %v837_v36 = vpop.permute.xlu0 %836 }
 0x455   :  { %4007 = vmatmul.msk.f32.vlgmr.msrb.gmra.mxu0 %vm197_vm1, %v664_v1  ;;  %v4182_v1 = vld [vmem:[%s5560_s7 + $0x1] ss:$0 sm:$0xff] }
 0x456   :  { %857 = vmatpush.msra.mxu0 %v837_v36 }
 0x45d   :  { %4013 = vmatmul.msk.f32.vlgmr.msra.gmra.mxu0 %vm197_vm1, %v835_v41 }
 0x49c   :  { %v443_v48 = vpop.permute.xlu2 %442 }
 0x4c2   :  { %v352_v42 = vpop.f32.mrf.mxu0 }
 0x4c3   :  { %356 = vrot.lane.b32.xlu1 %v352_v42, %s4449_s19 }
 0x4ca   :  { %v524_v43 = vpop.f32.mrf.mxu0 }
 0x4cb   :  { %528 = vrot.lane.b32.xlu0 %v524_v43, %s4455_s23 }
 0x4ce   :  { %v774_v30 = vpop.f32.mrf.mxu2 }
 0x4cf   :  { %778 = vrot.lane.b32.xlu2 %v774_v30, %s4454_s22 }
 0x4d2   :  { %v689_v44 = vpop.f32.mrf.mxu0 }
 0x4d3   :  { %693 = vrot.lane.b32.xlu1 %v689_v44, %s4449_s19 }
 0x4da   :  { %v859_v45 = vpop.f32.mrf.mxu0 }
 0x4db   :  { %863 = vrot.lane.b32.xlu0 %v859_v45, %s4455_s23  ;;  %v4180_v45 = vld [vmem:[%s5565_s12] ss:$0 sm:$0xff] }
 0x529   :  { %v779_v52 = vpop.permute.xlu2 %778 }
 0x535   :  { %v357_v47 = vpop.permute.xlu1 %356 }
 0x536   :  { %360 = vst.msk [vmem:[#allocation2] sm:$0xff] %vm359_vm6, %v357_v47 }
 0x537   :  { %446 = vst.msk [vmem:[#allocation2] sm:$0xff] %vm445_vm7, %v443_v48 }
 0x53d   :  { %v529_v49 = vpop.permute.xlu0 %528 }
 0x53e   :  { %532 = vst.msk [vmem:[#allocation2] sm:$0xff] %vm531_vm8, %v529_v49 }
 0x545   :  { %v694_v50 = vpop.permute.xlu1 %693  ;;  %v867_v51 = vld [vmem:[#allocation2] sm:$0xff] }
 0x546   :  { %696 = vst.msk [vmem:[#allocation2 + $0x8] sm:$0xff] %vm359_vm6, %v694_v50  ;;  %4015 = vmatmul.msk.f32.vlgmr.msra.gmra.mxu1 %vm100_vm0, %v867_v51 }
 0x547   :  { %781 = vst.msk [vmem:[#allocation2 + $0x8] sm:$0xff] %vm445_vm7, %v779_v52 }
 0x54d   :  { %v864_v53 = vpop.permute.xlu0 %863 }
 0x54e   :  { %866 = vst.msk [vmem:[#allocation2 + $0x8] sm:$0xff] %vm531_vm8, %v864_v53 }
 0x555   :  { %v868_v54 = vld [vmem:[#allocation2 + $0x8] sm:$0xff] }
 0x556   :  { %4016 = vmatmul.msk.f32.gmra.mxu1 %vm100_vm0, %v868_v54 }
 0x5c3   :  { %v902_v56 = vpop.f32.mrf.mxu1 }
 0x5c4   :  { %v903_v57 = vadd.f32 %v4179_v55, %v902_v56 }
 0x5c6   :  { %v910_v59 = vadd.f32 %v903_v57, %v4563_v8  ;;  %v922_v8 = vadd.f32 %v4246_v3, %v921_v5  ;;  %v1053_v5 = vld [vmem:[#allocation6 + $0x58] sm:$0xff] }
 0x5c7   :  { %1071 = vmatpush.msrb.mxu0 %v1053_v5 }
 0x5c8   :  { %v912_v60 = vsel %vm100_vm0, %v910_v59, 0.0  ;;  %v4755_v12 = vsel %vm923_vm9, %v4246_v3, %v922_v8 }
 0x5c9   :  { %913 = vadd.xlane.f32.xlu1 %v912_v60  ;;  %1072 = vmatpush.msrb.mxu0 %v1052_v6 }
 0x5cb   :  { %1073 = vmatpush.msrb.mxu0 %v1051_v7 }
 0x5d3   :  { %v905_v61 = vpop.f32.mrf.mxu1 }
 0x5d4   :  { %v906_v62 = vadd.f32 %v4179_v55, %v905_v61  ;;  %v4183_v61 = vld [vmem:[%s5560_s7] ss:$0 sm:$0xff] }
 0x5d6   :  { %v911_v63 = vadd.f32 %v906_v62, %v4568_v9  ;;  %v4753_v9 = vld [vmem:[%s5578_s30] sm:$0xff] }
 0x5d7   :  { %4020 = vmatmul.msk.f32.vlgmr.msra.gmra.mxu3 %vm100_vm0, %v4753_v9 }
 0x5d8   :  { %v915_v0 = vsel %vm100_vm0, %v911_v63, 0.0 }
 0x5d9   :  { %916 = vadd.xlane.f32.xlu2 %v915_v0 }
 0x5df   :  { %4021 = vmatmul.msk.f32.gmra.mxu3 %vm100_vm0, %v4767_v34 }
 0x63c   :  { %v914_v13 = vpop.xlane.xlu1 %913 }
 0x63d   :  { %v925_v14 = vmul.f32 %v4755_v12, %v914_v13  ;;  %v1050_v13 = vld [vmem:[#allocation6 + $0x40] sm:$0xff] }
 0x63e   :  { %1074 = vmatpush.msrb.mxu0 %v1050_v13 }
 0x63f   :  { %v927_v15 = vsub.f32 %v910_v59, %v925_v14  ;;  %4023 = vmatmul.msk.f32.vlgmr.msrb.gmra.mxu0 %vm100_vm0, %v4753_v9 }
 0x641   :  { %v929_v16 = vmul.f32 %v927_v15, %v927_v15 }
 0x643   :  { %v931_v18 = vsel %vm100_vm0, %v929_v16, 0.0 }
 0x644   :  { %932 = vadd.xlane.f32.xlu0 %v931_v18  ;;  %v4184_v18 = vld [vmem:[%s5556_s3] ss:$0 sm:$0xff] }
 0x647   :  { %4024 = vmatmul.msk.f32.gmra.mxu0 %vm100_vm0, %v4767_v34 }
 0x64c   :  { %v917_v19 = vpop.xlane.xlu2 %916 }
 0x64d   :  { %v926_v21 = vmul.f32 %v4755_v12, %v917_v19 }
 0x64f   :  { %v928_v23 = vsub.f32 %v911_v63, %v926_v21 }
 0x651   :  { %v930_v17 = vmul.f32 %v928_v23, %v928_v23 }
 0x653   :  { %v934_v25 = vsel %vm100_vm0, %v930_v17, 0.0 }
 0x654   :  { %935 = vadd.xlane.f32.xlu1 %v934_v25 }
 0x65a   :  { %v1043_v36 = vpop.f32.mrf.mxu3 }
 0x65b   :  { %v1044_v39 = vadd.f32 %v4182_v1, %v1043_v36 }
 0x65d   :  { %1164 = vrot.lane.b32.xlu2 %v1044_v39, %s4452_s29  ;;  %4025 = vmatpush.xpose.msk.msrb.mxu1 %vm197_vm1, %v1044_v39 }
 0x662   :  { %v1046_v63 = vpop.f32.mrf.mxu3 }
 0x663   :  { %v1047_v2 = vadd.f32 %v4182_v1, %v1046_v63 }
 0x66d   :  { %1250 = vrot.lane.b32.xlu1 %v1044_v39, %s4451_s28 }
 0x6b7   :  { %v933_v32 = vpop.xlane.xlu0 %932  ;;  %v1165_v60 = vpop.permute.xlu2 %1164 }
 0x6b8   :  { %v937_v38 = vmul.f32 %v933_v32, %v4755_v12  ;;  %4028 = vmatpush.xpose.msk.msrb.mxu3 %vm197_vm1, %v1165_v60 }
 0x6ba   :  { %v939_v33 = vadd.f32 1e-05, %v937_v38 }
 0x6bc   :  { %4247 = vrsqrt.f32 %v939_v33  ;;  %vm947_vm11 = vweird.f32 %v939_v33  ;;  %v1076_v1 = vpop.f32.mrf.mxu0 }
 0x6c2   :  { %v4248_v35 = vpop.eup %4247 }
 0x6c3   :  { %v942_v31 = vmul.f32 %v4248_v35, %v939_v33  ;;  %vm948_vm10 = vweird.f32 %v4248_v35 }
 0x6c4   :  { %vm949_vm12 = vmor %vm947_vm11, %vm948_vm10 }
 0x6c5   :  { %v943_v37 = vmul.f32 %v4248_v35, %v942_v31  ;;  %v4832_v31 = vld [vmem:[%s5560_s7 + $0x2] ss:$0 sm:$0xff] }
 0x6c7   :  { %v944_v40 = vmul.f32 0.5, %v943_v37  ;;  %v936_v41 = vpop.xlane.xlu1 %935 }
 0x6c8   :  { %v938_v42 = vmul.f32 %v936_v41, %v4755_v12 }
 0x6c9   :  { %v945_v43 = vsub.f32 1.5, %v944_v40  ;;  %v4835_v40 = vadd.f32 %v4832_v31, %v1076_v1 }
 0x6ca   :  { %v940_v30 = vadd.f32 1e-05, %v938_v42 }
 0x6cb   :  { %v946_v44 = vmul.f32 %v4248_v35, %v945_v43  ;;  %v4185_v43 = vld [vmem:[%s5556_s3 + $0x1] ss:$0 sm:$0xff]  ;;  %1156 = vmatpush.msra.mxu2 %v4835_v40 }
 0x6cc   :  { %4249 = vrsqrt.f32 %v940_v30  ;;  %vm957_vm14 = vweird.f32 %v940_v30 }
 0x6cd   :  { %v950_v46 = vsel %vm949_vm12, %v4248_v35, %v946_v44 }
 0x6ce   :  { %v961_v20 = vmul.f32 %v950_v46, %v927_v15 }
 0x6d0   :  { %v966_v28 = vmul.f32 %v4180_v45, %v961_v20 }
 0x6d2   :  { %v4250_v47 = vpop.eup %4249  ;;  %v4784_v48 = vadd.f32 %v4181_v24, %v966_v28 }
 0x6d3   :  { %v952_v49 = vmul.f32 %v4250_v47, %v940_v30  ;;  %vm958_vm13 = vweird.f32 %v4250_v47 }
 0x6d4   :  { %4017 = vmatmul.msk.f32.vlgmr.msrb.gmra.mxu2 %vm100_vm0, %v4784_v48  ;;  %vm959_vm15 = vmor %vm957_vm14, %vm958_vm13 }
 0x6d5   :  { %v953_v50 = vmul.f32 %v4250_v47, %v952_v49 }
 0x6d7   :  { %v954_v51 = vmul.f32 0.5, %v953_v50 }
 0x6d9   :  { %v955_v52 = vsub.f32 1.5, %v954_v51 }
 0x6db   :  { %v956_v53 = vmul.f32 %v4250_v47, %v955_v52 }
 0x6dd   :  { %v960_v54 = vsel %vm959_vm15, %v4250_v47, %v956_v53 }
 0x6de   :  { %v962_v55 = vmul.f32 %v960_v54, %v928_v23 }
 0x6df   :  { %v1251_v59 = vpop.permute.xlu1 %1250 }
 0x6e0   :  { %v967_v56 = vmul.f32 %v4180_v45, %v962_v55  ;;  %4031 = vmatpush.xpose.msk.msra.mxu1 %vm197_vm1, %v1251_v59 }
 0x6e2   :  { %v4788_v57 = vadd.f32 %v4181_v24, %v967_v56 }
 0x6e4   :  { %4018 = vmatmul.msk.f32.gmra.mxu2 %vm100_vm0, %v4788_v57 }
 0x757   :  { %v1004_v62 = vpop.f32.mrf.mxu2 }
 0x758   :  { %v1005_v0 = vadd.f32 %v4183_v61, %v1004_v62 }
 0x75a   :  { %1333 = vrot.lane.b32.xlu1 %v1005_v0, %s4453_s0  ;;  %1248 = vrot.lane.b32.xlu2 %v1005_v0, %s4451_s28 }
 0x75b   :  { %1162 = vrot.lane.b32.xlu0 %v1005_v0, %s4452_s29  ;;  %4026 = vmatmul.msk.f32.vlgmr.msrb.gmra.mxu1 %vm197_vm1, %v1005_v0 }
 0x75c   :  { %4038 = vmatpush.xpose.msk.msrb.mxu1 %vm197_vm1, %v1047_v2 }
 0x762   :  { %1587 = vrot.lane.b32.xlu1 %v1047_v2, %s4451_s28 }
 0x763   :  { %1335 = vrot.lane.b32.xlu0 %v1044_v39, %s4453_s0 }
 0x767   :  { %v1007_v3 = vpop.f32.mrf.mxu2 }
 0x768   :  { %v1008_v4 = vadd.f32 %v4183_v61, %v1007_v3 }
 0x76a   :  { %1670 = vrot.lane.b32.xlu1 %v1008_v4, %s4453_s0  ;;  %1499 = vrot.lane.b32.xlu2 %v1008_v4, %s4452_s29 }
 0x76b   :  { %1501 = vrot.lane.b32.xlu0 %v1047_v2, %s4452_s29 }
 0x772   :  { %1585 = vrot.lane.b32.xlu2 %v1008_v4, %s4451_s28 }
 0x773   :  { %1672 = vrot.lane.b32.xlu0 %v1047_v2, %s4453_s0 }
 0x7b4   :  { %v1249_v58 = vpop.permute.xlu2 %1248 }
 0x7b5   :  { %4032 = vmatmul.msk.f32.vlgmr.msra.gmra.mxu1 %vm197_vm1, %v1249_v58 }
 0x7bd   :  { %4039 = vmatmul.msk.f32.vlgmr.msrb.gmra.mxu1 %vm197_vm1, %v1008_v4 }
 0x7c4   :  { %v1500_v10 = vpop.permute.xlu2 %1499 }
 0x7cc   :  { %v1334_v8 = vpop.permute.xlu1 %1333  ;;  %v1586_v16 = vpop.permute.xlu2 %1585 }
 0x7cd   :  { %v1163_v11 = vpop.permute.xlu0 %1162 }
 0x7ce   :  { %4029 = vmatmul.msk.f32.vlgmr.msrb.gmra.mxu3 %vm197_vm1, %v1163_v11 }
 0x7d4   :  { %v1588_v14 = vpop.permute.xlu1 %1587 }
 0x7d5   :  { %v1336_v15 = vpop.permute.xlu0 %1335  ;;  %4044 = vmatpush.xpose.msk.msra.mxu1 %vm197_vm1, %v1588_v14 }
 0x7d6   :  { %4034 = vmatpush.xpose.msk.msra.mxu3 %vm197_vm1, %v1336_v15 }
 0x7d8   :  { %v1106_v19 = vpop.f32.mrf.mxu1  ;;  %4045 = vmatmul.msk.f32.vlgmr.msra.gmra.mxu1 %vm197_vm1, %v1586_v16 }
 0x7d9   :  { %v1109_v21 = vmul.f32 0.35355338, %v1106_v19  ;;  %4035 = vmatmul.msk.f32.vlgmr.msra.gmra.mxu3 %vm197_vm1, %v1334_v8 }
 0x7db   :  { %v1113_v9 = vadd.f32 %v4184_v18, %v1109_v21 }
 0x7dc   :  { %v1671_v26 = vpop.permute.xlu1 %1670 }
 0x7dd   :  { %v1502_v23 = vpop.permute.xlu0 %1501  ;;  %v1114_v17 = vsel %vm197_vm1, %v1113_v9, -inf }
 0x7de   :  { %4041 = vmatpush.xpose.msk.msrb.mxu3 %vm197_vm1, %v1502_v23  ;;  %1115 = vmax.xlane.f32.xlu0 %v1114_v17 }
 0x7e1   :  { %4042 = vmatmul.msk.f32.vlgmr.msrb.gmra.mxu3 %vm197_vm1, %v1500_v10 }
 0x7e5   :  { %v1673_v25 = vpop.permute.xlu0 %1672 }
 0x7e6   :  { %4047 = vmatpush.xpose.msk.msra.mxu3 %vm197_vm1, %v1673_v25 }
 0x7e9   :  { %4048 = vmatmul.msk.f32.vlgmr.msra.gmra.mxu3 %vm197_vm1, %v1671_v26 }
 0x832   :  { %v1273_v27 = vpop.f32.mrf.mxu1 }
 0x833   :  { %v1276_v29 = vmul.f32 0.35355338, %v1273_v27 }
 0x835   :  { %v1277_v22 = vadd.f32 %v4184_v18, %v1276_v29 }
 0x837   :  { %v1278_v32 = vsel %vm197_vm1, %v1277_v22, -inf }
 0x838   :  { %1279 = vmax.xlane.f32.xlu1 %v1278_v32 }
 0x83a   :  { %v1443_v36 = vpop.f32.mrf.mxu1 }
 0x83b   :  { %v1446_v41 = vmul.f32 0.35355338, %v1443_v36 }
 0x83d   :  { %v1450_v30 = vadd.f32 %v4185_v43, %v1446_v41 }
 0x83f   :  { %v1451_v28 = vsel %vm197_vm1, %v1450_v30, -inf }
 0x851   :  { %v1187_v38 = vpop.f32.mrf.mxu3  ;;  %v1116_v33 = vpop.xlane.xlu0 %1115 }
 0x852   :  { %v1190_v34 = vmul.f32 0.35355338, %v1187_v38  ;;  %v1117_v35 = vsub.f32 %v1113_v9, %v1116_v33 }
 0x854   :  { %v1118_v37 = vmul.f32 1.442695, %v1117_v35  ;;  %v1191_v39 = vadd.f32 %v4184_v18, %v1190_v34 }
 0x855   :  { %v1610_v24 = vpop.f32.mrf.mxu1 }
 0x856   :  { %4251 = vpow2.f32 %v1118_v37  ;;  %v1192_v42 = vsel %vm197_vm1, %v1191_v39, -inf  ;;  %v1613_v49 = vmul.f32 0.35355338, %v1610_v24 }
 0x857   :  { %1193 = vmax.xlane.f32.xlu2 %v1192_v42 }
 0x858   :  { %v1614_v53 = vadd.f32 %v4185_v43, %v1613_v49 }
 0x85a   :  { %v1615_v55 = vsel %vm197_vm1, %v1614_v53, -inf }
 0x85c   :  { %v4842_v44 = vpop.eup %4251  ;;  %v1358_v45 = vpop.f32.mrf.mxu3 }
 0x85d   :  { %v1361_v46 = vmul.f32 0.35355338, %v1358_v45  ;;  %v1120_v20 = vsel %vm197_vm1, %v4842_v44, 0.0 }
 0x85e   :  { %1121 = vadd.xlane.f32.xlu1 %v1120_v20 }
 0x85f   :  { %1452 = vmax.xlane.f32.xlu2 %v1451_v28  ;;  %v1362_v47 = vadd.f32 %v4184_v18, %v1361_v46 }
 0x861   :  { %v1363_v50 = vsel %vm197_vm1, %v1362_v47, -inf }
 0x862   :  { %1364 = vmax.xlane.f32.xlu0 %v1363_v50 }
 0x864   :  { %v1524_v51 = vpop.f32.mrf.mxu3 }
 0x865   :  { %v1527_v52 = vmul.f32 0.35355338, %v1524_v51 }
 0x867   :  { %v1528_v54 = vadd.f32 %v4185_v43, %v1527_v52 }
 0x869   :  { %v1529_v56 = vsel %vm197_vm1, %v1528_v54, -inf }
 0x86a   :  { %1616 = vmax.xlane.f32.xlu0 %v1615_v55  ;;  %1530 = vmax.xlane.f32.xlu1 %v1529_v56 }
 0x86c   :  { %v1695_v59 = vpop.f32.mrf.mxu3 }
 0x86d   :  { %v1698_v60 = vmul.f32 0.35355338, %v1695_v59 }
 0x86f   :  { %v1699_v61 = vadd.f32 %v4185_v43, %v1698_v60 }
 0x871   :  { %v1700_v62 = vsel %vm197_vm1, %v1699_v61, -inf }
 0x872   :  { %1701 = vmax.xlane.f32.xlu2 %v1700_v62 }
 0x87e   :  { %1217 = vrot.lane.b32.xlu0 %v4835_v40, %s4452_s29 }
 0x88a   :  { %1302 = vrot.lane.b32.xlu2 %v4835_v40, %s4451_s28 }
 0x8ab   :  { %v1280_v63 = vpop.xlane.xlu1 %1279 }
 0x8ac   :  { %v1281_v0 = vsub.f32 %v1277_v22, %v1280_v63 }
 0x8ae   :  { %v1282_v2 = vmul.f32 1.442695, %v1281_v0 }
 0x8b0   :  { %4253 = vpow2.f32 %v1282_v2 }
 0x8b6   :  { %v4855_v3 = vpop.eup %4253 }
 0x8b7   :  { %v1284_v4 = vsel %vm197_vm1, %v4855_v3, 0.0 }
 0x8b8   :  { %1285 = vadd.xlane.f32.xlu2 %v1284_v4 }
 0x8ca   :  { %v1194_v58 = vpop.xlane.xlu2 %1193 }
 0x8cb   :  { %v1195_v5 = vsub.f32 %v1191_v39, %v1194_v58 }
 0x8cd   :  { %v1196_v6 = vmul.f32 1.442695, %v1195_v5 }
 0x8cf   :  { %4255 = vpow2.f32 %v1196_v6 }
 0x8d1   :  { %v1122_v7 = vpop.xlane.xlu1 %1121 }
 0x8d2   :  { %4257 = vrcp.f32 %v1122_v7  ;;  %v1453_v8 = vpop.xlane.xlu2 %1452  ;;  %v1134_v23 = vand.u32 2147483648, %v1122_v7  ;;  %v1132_v26 = vand.u32 2147483647, %v1122_v7  ;;  %vm1128_vm3 = vweird.f32 %v1122_v7 }
 0x8d3   :  { %v1454_v10 = vsub.f32 %v1450_v30, %v1453_v8 }
 0x8d4   :  { %v1135_v35 = vor.u32 1.1754944e-38, %v1134_v23  ;;  %vm1133_vm5 = vcmp.eq.f32.partialorder %v1132_v26, 8.507059e+37 }
 0x8d5   :  { %v4859_v11 = vpop.eup %4255  ;;  %v1455_v13 = vmul.f32 1.442695, %v1454_v10  ;;  %v1365_v14 = vpop.xlane.xlu0 %1364 }
 0x8d6   :  { %v1366_v15 = vsub.f32 %v1362_v47, %v1365_v14  ;;  %v1198_v16 = vsel %vm197_vm1, %v4859_v11, 0.0  ;;  %v1079_v47 = vpop.f32.mrf.mxu0 }
 0x8d7   :  { %4259 = vpow2.f32 %v1455_v13  ;;  %1199 = vadd.xlane.f32.xlu0 %v1198_v16 }
 0x8d8   :  { %v4258_v18 = vpop.eup %4257  ;;  %v1367_v19 = vmul.f32 1.442695, %v1366_v15 }
 0x8d9   :  { %v1124_v21 = vmul.f32 %v4258_v18, %v1122_v7  ;;  %vm1129_vm2 = vweird.f32 %v4258_v18 }
 0x8da   :  { %4261 = vpow2.f32 %v1367_v19  ;;  %vm1130_vm4 = vmor %vm1128_vm3, %vm1129_vm2 }
 0x8db   :  { %v1125_v9 = vsub.f32 1.0, %v1124_v21 }
 0x8dd   :  { %v4863_v17 = vpop.eup %4259  ;;  %v1126_v25 = vmul.f32 %v4258_v18, %v1125_v9  ;;  %v1531_v27 = vpop.xlane.xlu1 %1530 }
 0x8de   :  { %v1617_v29 = vpop.xlane.xlu0 %1616  ;;  %v1532_v22 = vsub.f32 %v1528_v54, %v1531_v27  ;;  %v1457_v38 = vsel %vm197_vm1, %v4863_v17, 0.0 }
 0x8df   :  { %v1618_v32 = vsub.f32 %v1614_v53, %v1617_v29  ;;  %v1127_v33 = vadd.f32 %v4258_v18, %v1126_v25  ;;  %1458 = vadd.xlane.f32.xlu0 %v1457_v38 }
 0x8e0   :  { %v4867_v34 = vpop.eup %4261  ;;  %v1533_v1 = vmul.f32 1.442695, %v1532_v22 }
 0x8e1   :  { %v1619_v36 = vmul.f32 1.442695, %v1618_v32  ;;  %v1131_v37 = vsel %vm1130_vm4, %v4258_v18, %v1127_v33  ;;  %v1369_v39 = vsel %vm197_vm1, %v4867_v34, 0.0 }
 0x8e2   :  { %v1136_v41 = vsel %vm1133_vm5, %v1135_v35, %v1131_v37  ;;  %4263 = vpow2.f32 %v1533_v1  ;;  %1370 = vadd.xlane.f32.xlu1 %v1369_v39 }
 0x8e3   :  { %4265 = vpow2.f32 %v1619_v36  ;;  %v1137_v42 = vmul.f32 %v4842_v44, %v1136_v41  ;;  %v1080_v44 = vadd.f32 %v4832_v31, %v1079_v47 }
 0x8e5   :  { %v1702_v43 = vpop.xlane.xlu2 %1701  ;;  %4027 = vmatmul.msk.f32.vlgmr.msra.gmra.mxu2 %vm197_vm1, %v1137_v42 }
 0x8e6   :  { %v1703_v30 = vsub.f32 %v1699_v61, %v1702_v43 }
 0x8e8   :  { %v4873_v45 = vpop.eup %4263  ;;  %v1704_v46 = vmul.f32 1.442695, %v1703_v30 }
 0x8e9   :  { %v4875_v20 = vpop.eup %4265  ;;  %v1535_v24 = vsel %vm197_vm1, %v4873_v45, 0.0 }
 0x8ea   :  { %4267 = vpow2.f32 %v1704_v46  ;;  %1536 = vadd.xlane.f32.xlu2 %v1535_v24  ;;  %v1621_v28 = vsel %vm197_vm1, %v4875_v20, 0.0 }
 0x8eb   :  { %1622 = vadd.xlane.f32.xlu1 %v1621_v28 }
 0x8ed   :  { %v1303_v49 = vpop.permute.xlu2 %1302 }
 0x8ee   :  { %1323 = vmatpush.msrb.mxu2 %v1303_v49 }
 0x8f0   :  { %1493 = vmatpush.msra.mxu2 %v1080_v44  ;;  %v4882_v50 = vpop.eup %4267  ;;  %v1218_v52 = vpop.permute.xlu0 %1217 }
 0x8f1   :  { %v1706_v51 = vsel %vm197_vm1, %v4882_v50, 0.0  ;;  %1238 = vmatpush.msra.mxu0 %v1218_v52 }
 0x8f3   :  { %1707 = vadd.xlane.f32.xlu1 %v1706_v51  ;;  %1554 = vrot.lane.b32.xlu0 %v1080_v44, %s4452_s29 }
 0x8fb   :  { %1724 = vrot.lane.b32.xlu0 %v1080_v44, %s4453_s0 }
 0x902   :  { %1639 = vrot.lane.b32.xlu2 %v1080_v44, %s4451_s28 }
 0x90c   :  { %1387 = vrot.lane.b32.xlu1 %v4835_v40, %s4453_s0 }
 0x92b   :  { %v1286_v31 = vpop.xlane.xlu2 %1285 }
 0x92c   :  { %4269 = vrcp.f32 %v1286_v31  ;;  %v1298_v56 = vand.u32 2147483648, %v1286_v31  ;;  %v1296_v60 = vand.u32 2147483647, %v1286_v31  ;;  %vm1292_vm10 = vweird.f32 %v1286_v31 }
 0x92e   :  { %v1299_v62 = vor.u32 1.1754944e-38, %v1298_v56  ;;  %vm1297_vm12 = vcmp.eq.f32.partialorder %v1296_v60, 8.507059e+37 }
 0x932   :  { %v4270_v53 = vpop.eup %4269 }
 0x933   :  { %v1288_v54 = vmul.f32 %v4270_v53, %v1286_v31  ;;  %vm1293_vm9 = vweird.f32 %v4270_v53 }
 0x934   :  { %vm1294_vm11 = vmor %vm1292_vm10, %vm1293_vm9 }
 0x935   :  { %v1289_v55 = vsub.f32 1.0, %v1288_v54 }
 0x937   :  { %v1290_v59 = vmul.f32 %v4270_v53, %v1289_v55 }
 0x939   :  { %v1291_v61 = vadd.f32 %v4270_v53, %v1290_v59 }
 0x93b   :  { %v1295_v63 = vsel %vm1294_vm11, %v4270_v53, %v1291_v61 }
 0x93c   :  { %v1300_v0 = vsel %vm1297_vm12, %v1299_v62, %v1295_v63 }
 0x93d   :  { %v1301_v40 = vmul.f32 %v4855_v3, %v1300_v0 }
 0x93f   :  { %4033 = vmatmul.msk.f32.vlgmr.msrb.gmra.mxu2 %vm197_vm1, %v1301_v40 }
 0x94a   :  { %v1200_v2 = vpop.xlane.xlu0 %1199 }
 0x94b   :  { %4271 = vrcp.f32 %v1200_v2  ;;  %v1212_v7 = vand.u32 2147483648, %v1200_v2  ;;  %v1210_v13 = vand.u32 2147483647, %v1200_v2  ;;  %vm1206_vm14 = vweird.f32 %v1200_v2 }
 0x94d   :  { %v1213_v3 = vor.u32 1.1754944e-38, %v1212_v7  ;;  %vm1211_vm2 = vcmp.eq.f32.partialorder %v1210_v13, 8.507059e+37 }
 0x951   :  { %v4272_v4 = vpop.eup %4271 }
 0x952   :  { %v1202_v58 = vmul.f32 %v4272_v4, %v1200_v2  ;;  %v1459_v5 = vpop.xlane.xlu0 %1458  ;;  %vm1207_vm13 = vweird.f32 %v4272_v4 }
 0x953   :  { %4273 = vrcp.f32 %v1459_v5  ;;  %vm1208_vm15 = vmor %vm1206_vm14, %vm1207_vm13  ;;  %v1471_v23 = vand.u32 2147483648, %v1459_v5  ;;  %v1469_v27 = vand.u32 2147483647, %v1459_v5  ;;  %vm1465_vm4 = vweird.f32 %v1459_v5 }
 0x954   :  { %v1203_v6 = vsub.f32 1.0, %v1202_v58 }
 0x955   :  { %v4893_v8 = vpop.xlane.xlu1 %1370  ;;  %v1472_v32 = vor.u32 1.1754944e-38, %v1471_v23  ;;  %vm1470_vm9 = vcmp.eq.f32.partialorder %v1469_v27, 8.507059e+37 }
 0x956   :  { %v1204_v10 = vmul.f32 %v4272_v4, %v1203_v6  ;;  %4275 = vrcp.f32 %v4893_v8  ;;  %v1383_v59 = vand.u32 2147483648, %v4893_v8  ;;  %v1381_v61 = vand.u32 2147483647, %v4893_v8 }
 0x958   :  { %v1205_v14 = vadd.f32 %v4272_v4, %v1204_v10  ;;  %v1384_v40 = vor.u32 1.1754944e-38, %v1383_v59 }
 0x959   :  { %v4274_v15 = vpop.eup %4273 }
 0x95a   :  { %v1209_v16 = vsel %vm1208_vm15, %v4272_v4, %v1205_v14  ;;  %v1461_v18 = vmul.f32 %v4274_v15, %v1459_v5  ;;  %vm1466_vm3 = vweird.f32 %v4274_v15  ;;  %vm1377_vm15 = vweird.f32 %v4893_v8 }
 0x95b   :  { %v1214_v19 = vsel %vm1211_vm2, %v1213_v3, %v1209_v16  ;;  %vm1467_vm5 = vmor %vm1465_vm4, %vm1466_vm3  ;;  %vm1382_vm3 = vcmp.eq.f32.partialorder %v1381_v61, 8.507059e+37 }
 0x95c   :  { %v1462_v21 = vsub.f32 1.0, %v1461_v18  ;;  %v1215_v9 = vmul.f32 %v4859_v11, %v1214_v19  ;;  %v4276_v11 = vpop.eup %4275 }
 0x95d   :  { %v4896_v25 = vpop.xlane.xlu2 %1536  ;;  %v1373_v39 = vmul.f32 %v4276_v11, %v4893_v8  ;;  %vm1378_vm14 = vweird.f32 %v4276_v11 }
 0x95e   :  { %v1463_v26 = vmul.f32 %v4274_v15, %v1462_v21  ;;  %v1623_v29 = vpop.xlane.xlu1 %1622  ;;  %4030 = vmatmul.msk.f32.vlgmr.msra.gmra.mxu0 %vm197_vm1, %v1215_v9  ;;  %vm1379_vm2 = vmor %vm1377_vm15, %vm1378_vm14  ;;  %v1549_v58 = vand.u32 2147483648, %v4896_v25  ;;  %v1547_v5 = vand.u32 2147483647, %v4896_v25 }
 0x95f   :  { %4277 = vrcp.f32 %v1623_v29  ;;  %v1635_v43 = vand.u32 2147483648, %v1623_v29  ;;  %v1633_v46 = vand.u32 2147483647, %v1623_v29  ;;  %v1374_v24 = vsub.f32 1.0, %v1373_v39 }
 0x960   :  { %v1464_v22 = vadd.f32 %v4274_v15, %v1463_v26  ;;  %4279 = vrcp.f32 %v4896_v25  ;;  %vm1629_vm11 = vweird.f32 %v1623_v29  ;;  %v1550_v14 = vor.u32 1.1754944e-38, %v1549_v58 }
 0x961   :  { %v1636_v44 = vor.u32 1.1754944e-38, %v1635_v43  ;;  %vm1634_vm13 = vcmp.eq.f32.partialorder %v1633_v46, 8.507059e+37  ;;  %v1375_v52 = vmul.f32 %v4276_v11, %v1374_v24 }
 0x962   :  { %v1468_v38 = vsel %vm1467_vm5, %v4274_v15, %v1464_v22  ;;  %vm1543_vm5 = vweird.f32 %v4896_v25 }
 0x963   :  { %v1473_v33 = vsel %vm1470_vm9, %v1472_v32, %v1468_v38  ;;  %v1376_v54 = vadd.f32 %v4276_v11, %v1375_v52 }
 0x964   :  { %v1474_v35 = vmul.f32 %v4863_v17, %v1473_v33  ;;  %v1761_v33 = vld [vmem:[#allocation6 + $0x78] sm:$0xff] }
 0x965   :  { %v4278_v1 = vpop.eup %4277  ;;  %v1640_v36 = vpop.permute.xlu2 %1639  ;;  %v1380_v62 = vsel %vm1379_vm2, %v4276_v11, %v1376_v54  ;;  %v1760_v11 = vld [vmem:[#allocation6 + $0x70] sm:$0xff]  ;;  %1785 = vmatpush.msrb.mxu1 %v1761_v33 }
 0x966   :  { %v1625_v37 = vmul.f32 %v4278_v1, %v1623_v29  ;;  %4040 = vmatmul.msk.f32.vlgmr.msra.gmra.mxu2 %vm197_vm1, %v1474_v35  ;;  %vm1630_vm10 = vweird.f32 %v4278_v1  ;;  %v1708_v28 = vpop.xlane.xlu1 %1707  ;;  %v4280_v47 = vpop.eup %4279  ;;  %v1759_v35 = vld [vmem:[#allocation6 + $0x68] sm:$0xff] }
 0x967   :  { %1660 = vmatpush.msrb.mxu2 %v1640_v36  ;;  %vm1631_vm12 = vmor %vm1629_vm11, %vm1630_vm10  ;;  %4281 = vrcp.f32 %v1708_v28  ;;  %v1539_v31 = vmul.f32 %v4280_v47, %v4896_v25  ;;  %v1555_v60 = vpop.permute.xlu0 %1554  ;;  %vm1544_vm4 = vweird.f32 %v4280_v47  ;;  %vm1548_vm10 = vcmp.eq.f32.partialorder %v1547_v5, 8.507059e+37  ;;  %1786 = vmatpush.msrb.mxu1 %v1760_v11  ;;  %v1902_v5 = vld [vmem:[%s5563_s10 + $0x38] sm:$0xff] }
 0x968   :  { %v1626_v41 = vsub.f32 1.0, %v1625_v37  ;;  %v1158_v42 = vpop.f32.mrf.mxu2  ;;  %vm1545_vm9 = vmor %vm1543_vm5, %vm1544_vm4  ;;  %v1720_v16 = vand.u32 2147483648, %v1708_v28  ;;  %v1718_v18 = vand.u32 2147483647, %v1708_v28  ;;  %1922 = vmatpush.msrb.mxu3 %v1902_v5  ;;  %v1999_v5 = vld [vmem:[#allocation3 + $0x88] sm:$0xff] }
 0x969   :  { %1161 = vst.msk [vmem:[#allocation2] sm:$0xff] %vm197_vm1, %v1158_v42  ;;  %v1540_v55 = vsub.f32 1.0, %v1539_v31  ;;  %1787 = vmatpush.msrb.mxu1 %v1759_v35 }
 0x96a   :  { %v1627_v30 = vmul.f32 %v4278_v1, %v1626_v41  ;;  %v1721_v21 = vor.u32 1.1754944e-38, %v1720_v16  ;;  %vm1719_vm14 = vcmp.eq.f32.partialorder %v1718_v18, 8.507059e+37  ;;  %v1898_v18 = vld [vmem:[%s5563_s10 + $0x18] sm:$0xff] }
 0x96b   :  { %v1541_v63 = vmul.f32 %v4280_v47, %v1540_v55 }
 0x96c   :  { %v1628_v17 = vadd.f32 %v4278_v1, %v1627_v30  ;;  %v4187_v30 = vld [vmem:[%s5560_s7 + $0x3] ss:$0 sm:$0xff] }
 0x96d   :  { %v4282_v56 = vpop.eup %4281  ;;  %v1542_v2 = vadd.f32 %v4280_v47, %v1541_v63  ;;  %v1857_v63 = vld [vmem:[%s5561_s8 + $0x8] sm:$0xff] }
 0x96e   :  { %v1632_v49 = vsel %vm1631_vm12, %v4278_v1, %v1628_v17  ;;  %v1710_v0 = vmul.f32 %v4282_v56, %v1708_v28  ;;  %vm1715_vm11 = vweird.f32 %v4282_v56  ;;  %vm1714_vm12 = vweird.f32 %v1708_v28  ;;  %v1758_v1 = vld [vmem:[#allocation6 + $0x60] sm:$0xff] }
 0x96f   :  { %v1637_v51 = vsel %vm1634_vm13, %v1636_v44, %v1632_v49  ;;  %v1725_v8 = vpop.permute.xlu0 %1724  ;;  %v1546_v10 = vsel %vm1545_vm9, %v4280_v47, %v1542_v2  ;;  %vm1716_vm13 = vmor %vm1714_vm12, %vm1715_vm11  ;;  %1788 = vmatpush.msrb.mxu1 %v1758_v1  ;;  %v1897_v1 = vld [vmem:[%s5563_s10 + $0x10] sm:$0xff] }
 0x970   :  { %v1638_v53 = vmul.f32 %v4875_v20, %v1637_v51  ;;  %v1385_v20 = vsel %vm1382_vm3, %v1384_v40, %v1380_v62  ;;  %v1711_v4 = vsub.f32 1.0, %v1710_v0  ;;  %v1551_v15 = vsel %vm1548_vm10, %v1550_v14, %v1546_v10  ;;  %v1858_v62 = vld [vmem:[%s5561_s8 + $0x10] sm:$0xff]  ;;  %v1856_v0 = vld [vmem:[%s5561_s8] sm:$0xff] }
 0x971   :  { %v1386_v7 = vmul.f32 %v4867_v34, %v1385_v20  ;;  %v1552_v19 = vmul.f32 %v4873_v45, %v1551_v15  ;;  %v1899_v15 = vld [vmem:[%s5563_s10 + $0x20] sm:$0xff]  ;;  %vm1907_vm10 = vcmask 523264  }
 0x972   :  { %4046 = vmatmul.msk.f32.vlgmr.msrb.gmra.mxu2 %vm197_vm1, %v1638_v53  ;;  %v1712_v13 = vmul.f32 %v4282_v56, %v1711_v4 }
 0x974   :  { %v1713_v3 = vadd.f32 %v4282_v56, %v1712_v13 }
 0x976   :  { %v1717_v34 = vsel %vm1716_vm13, %v4282_v56, %v1713_v3 }
 0x977   :  { %v1722_v9 = vsel %vm1719_vm14, %v1721_v21, %v1717_v34  ;;  %v4188_v34 = vld [vmem:[%s5565_s12 + $0x1] ss:$0 sm:$0xff] }
 0x978   :  { %v1723_v23 = vmul.f32 %v4882_v50, %v1722_v9 }
 0x97e   :  { %v1388_v6 = vpop.permute.xlu1 %1387 }
 0x97f   :  { %1408 = vmatpush.msrb.mxu0 %v1388_v6  ;;  %v1901_v6 = vld [vmem:[%s5563_s10 + $0x30] sm:$0xff] }
 0x980   :  { %4036 = vmatmul.msk.f32.vlgmr.msrb.gmra.mxu0 %vm197_vm1, %v1386_v7  ;;  %1923 = vmatpush.msrb.mxu3 %v1901_v6  ;;  %v2038_v6 = vld [vmem:[#allocation3 + $0xa8] sm:$0xff] }
 0x981   :  { %1575 = vmatpush.msra.mxu0 %v1555_v60 }
 0x983   :  { %1745 = vmatpush.msrb.mxu0 %v1725_v8  ;;  %v1900_v8 = vld [vmem:[%s5563_s10 + $0x28] sm:$0xff] }
 0x984   :  { %1924 = vmatpush.msrb.mxu3 %v1900_v8  ;;  %v1998_v8 = vld [vmem:[#allocation3 + $0x80] sm:$0xff] }
 0x986   :  { %1925 = vmatpush.msrb.mxu3 %v1899_v15 }
 0x988   :  { %4043 = vmatmul.msk.f32.vlgmr.msra.gmra.mxu0 %vm197_vm1, %v1552_v19  ;;  %1926 = vmatpush.msrb.mxu3 %v1898_v18 }
 0x98a   :  { %1927 = vmatpush.msrb.mxu3 %v1897_v1 }
 0x990   :  { %4049 = vmatmul.msk.f32.vlgmr.msrb.gmra.mxu0 %vm197_vm1, %v1723_v23  ;;  %v4189_v23 = vld [vmem:[%s5566_s13 + $0x1] ss:$0 sm:$0xff] }
 0x9c2   :  { %v1325_v25 = vpop.f32.mrf.mxu2 }
 0x9c3   :  { %1329 = vrot.lane.b32.xlu0 %v1325_v25, %s4454_s22 }
 0x9db   :  { %v1240_v26 = vpop.f32.mrf.mxu0 }
 0x9dc   :  { %1244 = vrot.lane.b32.xlu2 %v1240_v26, %s4449_s19 }
 0x9e9   :  { %v1495_v27 = vpop.f32.mrf.mxu2 }
 0x9ea   :  { %1498 = vst.msk [vmem:[#allocation2 + $0x8] sm:$0xff] %vm197_vm1, %v1495_v27 }
 0x9f5   :  { %v1662_v45 = vpop.f32.mrf.mxu2 }
 0x9f6   :  { %1666 = vrot.lane.b32.xlu0 %v1662_v45, %s4454_s22 }
 0x9fd   :  { %v1410_v29 = vpop.f32.mrf.mxu0 }
 0x9fe   :  { %1414 = vrot.lane.b32.xlu1 %v1410_v29, %s4455_s23 }
 0xa05   :  { %v1577_v22 = vpop.f32.mrf.mxu0 }
 0xa06   :  { %1581 = vrot.lane.b32.xlu2 %v1577_v22, %s4449_s19 }
 0xa0d   :  { %v1747_v50 = vpop.f32.mrf.mxu0 }
 0xa0e   :  { %1751 = vrot.lane.b32.xlu1 %v1747_v50, %s4455_s23 }
 0xa35   :  { %v1330_v32 = vpop.permute.xlu0 %1329 }
 0xa36   :  { %v1245_v38 = vpop.permute.xlu2 %1244 }
 0xa37   :  { %1247 = vst.msk [vmem:[#allocation2] sm:$0xff] %vm359_vm6, %v1245_v38 }
 0xa38   :  { %1332 = vst.msk [vmem:[#allocation2] sm:$0xff] %vm445_vm7, %v1330_v32 }
 0xa60   :  { %v1582_v36 = vpop.permute.xlu2 %1581 }
 0xa61   :  { %1584 = vst.msk [vmem:[#allocation2 + $0x8] sm:$0xff] %vm359_vm6, %v1582_v36  ;;  %v1896_v36 = vld [vmem:[%s5563_s10 + $0x8] sm:$0xff] }
 0xa62   :  { %1928 = vmatpush.msrb.mxu3 %v1896_v36 }
 0xa68   :  { %v1667_v37 = vpop.permute.xlu0 %1666 }
 0xa69   :  { %1669 = vst.msk [vmem:[#allocation2 + $0x8] sm:$0xff] %vm445_vm7, %v1667_v37  ;;  %v1895_v37 = vld [vmem:[%s5563_s10] sm:$0xff] }
 0xa6a   :  { %1929 = vmatpush.msrb.mxu3 %v1895_v37 }
 0xa70   :  { %v1415_v39 = vpop.permute.xlu1 %1414 }
 0xa71   :  { %1417 = vst.msk [vmem:[#allocation2] sm:$0xff] %vm531_vm8, %v1415_v39  ;;  %v4190_v39 = vld [vmem:[%s5562_s9] ss:$0 sm:$0xff] }
 0xa78   :  { %v1755_v41 = vld [vmem:[#allocation2] sm:$0xff] }
 0xa79   :  { %4051 = vmatmul.msk.f32.vlgmr.msrb.gmra.mxu1 %vm100_vm0, %v1755_v41 }
 0xa80   :  { %v1752_v42 = vpop.permute.xlu1 %1751 }
 0xa81   :  { %1754 = vst.msk [vmem:[#allocation2 + $0x8] sm:$0xff] %vm531_vm8, %v1752_v42 }
 0xa88   :  { %v1756_v43 = vld [vmem:[#allocation2 + $0x8] sm:$0xff] }
 0xa89   :  { %4052 = vmatmul.msk.f32.gmra.mxu1 %vm100_vm0, %v1756_v43 }
 0xaf6   :  { %v1790_v46 = vpop.f32.mrf.mxu1 }
 0xaf7   :  { %v1791_v24 = vadd.f32 %v4187_v30, %v1790_v46 }
 0xaf9   :  { %v1800_v17 = vadd.f32 %v1791_v24, %v4784_v48 }
 0xafb   :  { %v1802_v28 = vsel %vm100_vm0, %v1800_v17, 0.0 }
 0xafc   :  { %1803 = vadd.xlane.f32.xlu2 %v1802_v28 }
 0xb06   :  { %v1793_v47 = vpop.f32.mrf.mxu1 }
 0xb07   :  { %v1794_v44 = vadd.f32 %v4187_v30, %v1793_v47 }
 0xb09   :  { %v1801_v49 = vadd.f32 %v1794_v44, %v4788_v57  ;;  %v1859_v57 = vld [vmem:[%s5561_s8 + $0x18] sm:$0xff] }
 0xb0a   :  { %1882 = vmatpush.msra.mxu2 %v1859_v57 }
 0xb0b   :  { %v1805_v51 = vsel %vm100_vm0, %v1801_v49, 0.0 }
 0xb0c   :  { %1806 = vadd.xlane.f32.xlu0 %v1805_v51  ;;  %1883 = vmatpush.msra.mxu2 %v1858_v62 }
 0xb0e   :  { %1884 = vmatpush.msra.mxu2 %v1857_v63 }
 0xb10   :  { %1885 = vmatpush.msra.mxu2 %v1856_v0  ;;  %v2001_v0 = vld [vmem:[#allocation3 + $0x98] sm:$0xff] }
 0xb11   :  { %2025 = vmatpush.msra.mxu0 %v2001_v0 }
 0xb6f   :  { %v1804_v52 = vpop.xlane.xlu2 %1803 }
 0xb70   :  { %v1808_v31 = vmul.f32 %v1804_v52, %v4755_v12 }
 0xb72   :  { %v1810_v53 = vsub.f32 %v1800_v17, %v1808_v31  ;;  %v4191_v17 = vld [vmem:[%s5564_s11] ss:$0 sm:$0xff] }
 0xb74   :  { %v1812_v54 = vmul.f32 %v1810_v53, %v1810_v53 }
 0xb76   :  { %v1814_v55 = vsel %vm100_vm0, %v1812_v54, 0.0 }
 0xb77   :  { %1815 = vadd.xlane.f32.xlu1 %v1814_v55 }
 0xb7f   :  { %v1807_v56 = vpop.xlane.xlu0 %1806 }
 0xb80   :  { %v1809_v48 = vmul.f32 %v1807_v56, %v4755_v12 }
 0xb82   :  { %v1811_v59 = vsub.f32 %v1801_v49, %v1809_v48 }
 0xb84   :  { %v1813_v60 = vmul.f32 %v1811_v59, %v1811_v59 }
 0xb86   :  { %v1817_v61 = vsel %vm100_vm0, %v1813_v60, 0.0 }
 0xb87   :  { %1818 = vadd.xlane.f32.xlu2 %v1817_v61 }
 0xbea   :  { %v1816_v40 = vpop.xlane.xlu1 %1815 }
 0xbeb   :  { %v1820_v20 = vmul.f32 %v1816_v40, %v4755_v12  ;;  %v2040_v40 = vld [vmem:[#allocation3 + $0xb8] sm:$0xff] }
 0xbec   :  { %2058 = vmatpush.msra.mxu1 %v2040_v40 }
 0xbed   :  { %v1822_v2 = vadd.f32 1e-05, %v1820_v20  ;;  %v2073_v20 = vld [vmem:[#allocation3 + $0xd8] sm:$0xff] }
 0xbee   :  { %2091 = vmatpush.msrb.mxu2 %v2073_v20 }
 0xbef   :  { %4283 = vrsqrt.f32 %v1822_v2  ;;  %vm1830_vm2 = vweird.f32 %v1822_v2 }
 0xbf5   :  { %v4284_v4 = vpop.eup %4283 }
 0xbf6   :  { %v1825_v58 = vmul.f32 %v4284_v4, %v1822_v2  ;;  %vm1831_vm15 = vweird.f32 %v4284_v4  ;;  %v2000_v2 = vld [vmem:[#allocation3 + $0x90] sm:$0xff] }
 0xbf7   :  { %vm1832_vm3 = vmor %vm1830_vm2, %vm1831_vm15  ;;  %2026 = vmatpush.msra.mxu0 %v2000_v2 }
 0xbf8   :  { %v1826_v7 = vmul.f32 %v4284_v4, %v1825_v58  ;;  %v2072_v58 = vld [vmem:[#allocation3 + $0xd0] sm:$0xff] }
 0xbf9   :  { %2092 = vmatpush.msrb.mxu2 %v2072_v58  ;;  %2027 = vmatpush.msra.mxu0 %v1999_v5 }
 0xbfa   :  { %v1827_v10 = vmul.f32 0.5, %v1826_v7  ;;  %v1819_v13 = vpop.xlane.xlu2 %1818  ;;  %v2071_v7 = vld [vmem:[#allocation3 + $0xc8] sm:$0xff] }
 0xbfb   :  { %v1821_v14 = vmul.f32 %v1819_v13, %v4755_v12  ;;  %2093 = vmatpush.msrb.mxu2 %v2071_v7  ;;  %v2070_v13 = vld [vmem:[#allocation3 + $0xc0] sm:$0xff]  ;;  %2028 = vmatpush.msra.mxu0 %v1998_v8 }
 0xbfc   :  { %v1828_v3 = vsub.f32 1.5, %v1827_v10  ;;  %v2037_v10 = vld [vmem:[#allocation3 + $0xa0] sm:$0xff] }
 0xbfd   :  { %v1823_v16 = vadd.f32 1e-05, %v1821_v14  ;;  %2094 = vmatpush.msrb.mxu2 %v2070_v13 }
 0xbfe   :  { %v1829_v19 = vmul.f32 %v4284_v4, %v1828_v3 }
 0xbff   :  { %4285 = vrsqrt.f32 %v1823_v16  ;;  %vm1840_vm5 = vweird.f32 %v1823_v16 }
 0xc00   :  { %v1833_v21 = vsel %vm1832_vm3, %v4284_v4, %v1829_v19  ;;  %v2039_v4 = vld [vmem:[#allocation3 + $0xb0] sm:$0xff] }
 0xc01   :  { %v1844_v9 = vmul.f32 %v1833_v21, %v1810_v53  ;;  %2059 = vmatpush.msra.mxu1 %v2039_v4 }
 0xc03   :  { %v1849_v25 = vmul.f32 %v4188_v34, %v1844_v9  ;;  %2060 = vmatpush.msra.mxu1 %v2038_v6 }
 0xc05   :  { %v4286_v26 = vpop.eup %4285  ;;  %v1854_v27 = vadd.f32 %v4189_v23, %v1849_v25  ;;  %2061 = vmatpush.msra.mxu1 %v2037_v10 }
 0xc06   :  { %v1835_v45 = vmul.f32 %v4286_v26, %v1823_v16  ;;  %vm1841_vm4 = vweird.f32 %v4286_v26 }
 0xc07   :  { %4055 = vmatmul.msk.f32.vlgmr.msra.gmra.mxu2 %vm100_vm0, %v1854_v27  ;;  %vm1842_vm9 = vmor %vm1840_vm5, %vm1841_vm4 }
 0xc08   :  { %v1836_v29 = vmul.f32 %v4286_v26, %v1835_v45 }
 0xc0a   :  { %v1837_v22 = vmul.f32 0.5, %v1836_v29 }
 0xc0c   :  { %v1838_v50 = vsub.f32 1.5, %v1837_v22  ;;  %v4193_v22 = vld [vmem:[%s5566_s13 + $0x2] ss:$0 sm:$0xff] }
 0xc0e   :  { %v1839_v32 = vmul.f32 %v4286_v26, %v1838_v50 }
 0xc10   :  { %v1843_v38 = vsel %vm1842_vm9, %v4286_v26, %v1839_v32 }
 0xc11   :  { %v1845_v33 = vmul.f32 %v1843_v38, %v1811_v59 }
 0xc13   :  { %v1850_v11 = vmul.f32 %v4188_v34, %v1845_v33 }
 0xc15   :  { %v1855_v35 = vadd.f32 %v4189_v23, %v1850_v11 }
 0xc17   :  { %4056 = vmatmul.msk.f32.gmra.mxu2 %vm100_vm0, %v1855_v35 }
 0xc8a   :  { %v1887_v41 = vpop.f32.mrf.mxu2 }
 0xc8b   :  { %v1888_v42 = vadd.f32 %v4190_v39, %v1887_v41 }
 0xc8d   :  { %v1893_v43 = vmax.f32 %v1888_v42, 0.0 }
 0xc8f   :  { %4057 = vmatmul.msk.f32.vlgmr.msrb.gmra.mxu3 %vm1907_vm10, %v1893_v43  ;;  %v4194_v43 = vld [vmem:[%s5558_s5 + $0x4] ss:$0 sm:$0xff] }
 0xc9a   :  { %v1890_v30 = vpop.f32.mrf.mxu2 }
 0xc9b   :  { %v1891_v46 = vadd.f32 %v4190_v39, %v1890_v30  ;;  %v4195_v30 = vld [vmem:[%s5558_s5 + $0x5] ss:$0 sm:$0xff] }
 0xc9d   :  { %v1894_v24 = vmax.f32 %v1891_v46, 0.0 }
 0xc9f   :  { %4058 = vmatmul.msk.f32.gmra.mxu3 %vm1907_vm10, %v1894_v24 }
 0xd12   :  { %v1931_v28 = vpop.f32.mrf.mxu3 }
 0xd13   :  { %v1932_v47 = vadd.f32 %v4191_v17, %v1931_v28 }
 0xd15   :  { %v1941_v44 = vadd.f32 %v1932_v47, %v1854_v27  ;;  %v4192_v27 = vld [vmem:[%s5565_s12 + $0x2] ss:$0 sm:$0xff]  ;;  %v5048_v47 = vld [vmem:[%s5558_s5 + $0x6] ss:$0 sm:$0xff] }
 0xd17   :  { %v1943_v49 = vsel %vm100_vm0, %v1941_v44, 0.0 }
 0xd18   :  { %1944 = vadd.xlane.f32.xlu0 %v1943_v49 }
 0xd22   :  { %v1934_v51 = vpop.f32.mrf.mxu3 }
 0xd23   :  { %v1935_v52 = vadd.f32 %v4191_v17, %v1934_v51 }
 0xd25   :  { %v1942_v31 = vadd.f32 %v1935_v52, %v1855_v35 }
 0xd27   :  { %v1946_v53 = vsel %vm100_vm0, %v1942_v31, 0.0 }
 0xd28   :  { %1947 = vadd.xlane.f32.xlu1 %v1946_v53 }
 0xd8b   :  { %v1945_v54 = vpop.xlane.xlu0 %1944 }
 0xd8c   :  { %v1949_v55 = vmul.f32 %v1945_v54, %v4755_v12 }
 0xd8e   :  { %v1951_v56 = vsub.f32 %v1941_v44, %v1949_v55 }
 0xd90   :  { %v1953_v48 = vmul.f32 %v1951_v56, %v1951_v56 }
 0xd92   :  { %v1955_v59 = vsel %vm100_vm0, %v1953_v48, 0.0 }
 0xd93   :  { %1956 = vadd.xlane.f32.xlu2 %v1955_v59 }
 0xd9b   :  { %v1948_v60 = vpop.xlane.xlu1 %1947 }
 0xd9c   :  { %v1950_v61 = vmul.f32 %v1948_v60, %v4755_v12 }
 0xd9e   :  { %v5005_v57 = vsub.f32 %v1942_v31, %v1950_v61 }
 0xda0   :  { %v1954_v62 = vmul.f32 %v5005_v57, %v5005_v57 }
 0xda2   :  { %v1958_v63 = vsel %vm100_vm0, %v1954_v62, 0.0  ;;  %v2102_v62 = vld [vmem:[%s5555_s2] sm:$0xff] }
 0xda3   :  { %1959 = vadd.xlane.f32.xlu0 %v1958_v63 }
 0xe06   :  { %v1957_v14 = vpop.xlane.xlu2 %1956 }
 0xe07   :  { %v1961_v15 = vmul.f32 %v1957_v14, %v4755_v12 }
 0xe09   :  { %v1963_v3 = vadd.f32 1e-05, %v1961_v15 }
 0xe0b   :  { %4287 = vrsqrt.f32 %v1963_v3  ;;  %vm1971_vm12 = vweird.f32 %v1963_v3 }
 0xe11   :  { %v4288_v16 = vpop.eup %4287 }
 0xe12   :  { %v1966_v18 = vmul.f32 %v4288_v16, %v1963_v3  ;;  %vm1972_vm11 = vweird.f32 %v4288_v16 }
 0xe13   :  { %vm1973_vm13 = vmor %vm1971_vm12, %vm1972_vm11 }
 0xe14   :  { %v1967_v19 = vmul.f32 %v4288_v16, %v1966_v18 }
 0xe16   :  { %v1968_v34 = vmul.f32 0.5, %v1967_v19  ;;  %v1960_v21 = vpop.xlane.xlu0 %1959 }
 0xe17   :  { %v1962_v9 = vmul.f32 %v1960_v21, %v4755_v12 }
 0xe18   :  { %v1969_v23 = vsub.f32 1.5, %v1968_v34 }
 0xe19   :  { %v1964_v25 = vadd.f32 1e-05, %v1962_v9 }
 0xe1a   :  { %v1970_v26 = vmul.f32 %v4288_v16, %v1969_v23 }
 0xe1b   :  { %4289 = vrsqrt.f32 %v1964_v25  ;;  %vm1981_vm15 = vweird.f32 %v1964_v25 }
 0xe1c   :  { %v1974_v45 = vsel %vm1973_vm13, %v4288_v16, %v1970_v26 }
 0xe1d   :  { %v1985_v29 = vmul.f32 %v1974_v45, %v1951_v56 }
 0xe1f   :  { %v1990_v50 = vmul.f32 %v4192_v27, %v1985_v29 }
 0xe21   :  { %v4290_v32 = vpop.eup %4289  ;;  %v5018_v38 = vadd.f32 %v4193_v22, %v1990_v50 }
 0xe22   :  { %v1976_v33 = vmul.f32 %v4290_v32, %v1964_v25  ;;  %vm1982_vm14 = vweird.f32 %v4290_v32  ;;  %v4082_v25 = vld [vmem:[%s5555_s2 + $0x8] sm:$0xff] }
 0xe23   :  { %4062 = vmatmul.msk.f32.vlgmr.msra.gmra.mxu0 %vm100_vm0, %v5018_v38  ;;  %4065 = vmatmul.msk.f32.vlgmr.msra.gmra.mxu1 %vm100_vm0, %v5018_v38  ;;  %vm1983_vm2 = vmor %vm1981_vm15, %vm1982_vm14 }
 0xe24   :  { %v1977_v11 = vmul.f32 %v4290_v32, %v1976_v33  ;;  %4068 = vmatmul.msk.f32.vlgmr.msrb.gmra.mxu2 %vm100_vm0, %v5018_v38 }
 0xe26   :  { %v1978_v35 = vmul.f32 0.5, %v1977_v11 }
 0xe28   :  { %v1979_v1 = vsub.f32 1.5, %v1978_v35 }
 0xe2a   :  { %v1980_v36 = vmul.f32 %v4290_v32, %v1979_v1 }
 0xe2c   :  { %v1984_v37 = vsel %vm1983_vm2, %v4290_v32, %v1980_v36 }
 0xe2d   :  { %v1986_v39 = vmul.f32 %v1984_v37, %v5005_v57 }
 0xe2f   :  { %v1991_v41 = vmul.f32 %v4192_v27, %v1986_v39 }
 0xe31   :  { %v5027_v42 = vadd.f32 %v4193_v22, %v1991_v41 }
 0xe33   :  { %4063 = vmatmul.msk.f32.gmra.mxu0 %vm100_vm0, %v5027_v42  ;;  %4066 = vmatmul.msk.f32.gmra.mxu1 %vm100_vm0, %v5027_v42 }
 0xe34   :  { %4069 = vmatmul.msk.f32.gmra.mxu2 %vm100_vm0, %v5027_v42 }
 0xea0   :  { %v2030_v46 = vpop.f32.mrf.mxu0  ;;  %v2063_v24 = vpop.f32.mrf.mxu1 }
 0xea1   :  { %v2031_v17 = vadd.f32 %v4194_v43, %v2030_v46  ;;  %v2064_v28 = vadd.f32 %v4195_v30, %v2063_v24 }
 0xea3   :  { %2181 = vrot.lane.b32.xlu0 %v2064_v28, %s4452_s29  ;;  %2267 = vrot.lane.b32.xlu1 %v2064_v28, %s4451_s28 }
 0xea4   :  { %4070 = vmatpush.xpose.msk.msrb.mxu0 %vm197_vm1, %v2064_v28  ;;  %2265 = vrot.lane.b32.xlu2 %v2031_v17, %s4451_s28 }
 0xea7   :  { %v2096_v44 = vpop.f32.mrf.mxu2  ;;  %4071 = vmatmul.msk.f32.vlgmr.msrb.gmra.mxu0 %vm197_vm1, %v2031_v17 }
 0xea8   :  { %v5052_v49 = vadd.f32 %v5048_v47, %v2096_v44 }
 0xeaa   :  { %2173 = vmatpush.msra.mxu3 %v5052_v49 }
 0xeab   :  { %2352 = vrot.lane.b32.xlu1 %v2064_v28, %s4453_s0  ;;  %2179 = vrot.lane.b32.xlu0 %v2031_v17, %s4452_s29 }
 0xeac   :  { %2350 = vrot.lane.b32.xlu2 %v2031_v17, %s4453_s0 }
 0xeb0   :  { %v2033_v51 = vpop.f32.mrf.mxu0  ;;  %v2066_v52 = vpop.f32.mrf.mxu1 }
 0xeb1   :  { %v2034_v31 = vadd.f32 %v4194_v43, %v2033_v51  ;;  %v2067_v53 = vadd.f32 %v4195_v30, %v2066_v52 }
 0xeb3   :  { %2600 = vrot.lane.b32.xlu0 %v2067_v53, %s4451_s28  ;;  %2598 = vrot.lane.b32.xlu1 %v2034_v31, %s4451_s28 }
 0xeb4   :  { %2514 = vrot.lane.b32.xlu2 %v2067_v53, %s4452_s29 }
 0xeb7   :  { %v5082_v6 = vpop.f32.mrf.mxu2 }
 0xebb   :  { %2512 = vrot.lane.b32.xlu0 %v2034_v31, %s4452_s29  ;;  %2685 = vrot.lane.b32.xlu1 %v2067_v53, %s4453_s0 }
 0xebc   :  { %2683 = vrot.lane.b32.xlu2 %v2034_v31, %s4453_s0 }
 0xefe   :  { %v2266_v54 = vpop.permute.xlu2 %2265 }
 0xf06   :  { %v2351_v55 = vpop.permute.xlu2 %2350 }
 0xf0e   :  { %v2515_v61 = vpop.permute.xlu2 %2514 }
 0xf15   :  { %v2268_v56 = vpop.permute.xlu1 %2267  ;;  %v2182_v48 = vpop.permute.xlu0 %2181 }
 0xf16   :  { %4073 = vmatpush.xpose.msk.msra.mxu0 %vm197_vm1, %v2182_v48  ;;  %4076 = vmatpush.xpose.msk.msra.mxu2 %vm197_vm1, %v2268_v56  ;;  %v2684_v5 = vpop.permute.xlu2 %2683 }
 0xf19   :  { %4077 = vmatmul.msk.f32.vlgmr.msra.gmra.mxu2 %vm197_vm1, %v2266_v54 }
 0xf1a   :  { %4083 = vmatpush.xpose.msk.msrb.mxu2 %vm197_vm1, %v2067_v53 }
 0xf1d   :  { %v2353_v59 = vpop.permute.xlu1 %2352  ;;  %v2180_v60 = vpop.permute.xlu0 %2179 }
 0xf1e   :  { %4074 = vmatmul.msk.f32.vlgmr.msra.gmra.mxu0 %vm197_vm1, %v2180_v60 }
 0xf1f   :  { %4079 = vmatpush.xpose.msk.msrb.mxu0 %vm197_vm1, %v2353_v59 }
 0xf21   :  { %4084 = vmatmul.msk.f32.vlgmr.msrb.gmra.mxu2 %vm197_vm1, %v2034_v31 }
 0xf23   :  { %4086 = vmatpush.xpose.msk.msra.mxu0 %vm197_vm1, %v2515_v61 }
 0xf24   :  { %v2126_v57 = vpop.f32.mrf.mxu0 }
 0xf25   :  { %v2129_v63 = vmul.f32 0.35355338, %v2126_v57  ;;  %v2599_v0 = vpop.permute.xlu1 %2598  ;;  %v2601_v40 = vpop.permute.xlu0 %2600 }
 0xf26   :  { %4080 = vmatmul.msk.f32.vlgmr.msrb.gmra.mxu0 %vm197_vm1, %v2351_v55  ;;  %4089 = vmatpush.xpose.msk.msra.mxu2 %vm197_vm1, %v2601_v40 }
 0xf27   :  { %v2130_v20 = vadd.f32 %v2129_v63, %v2102_v62 }
 0xf29   :  { %v2131_v2 = vsel %vm197_vm1, %v2130_v20, -inf  ;;  %4090 = vmatmul.msk.f32.vlgmr.msra.gmra.mxu2 %vm197_vm1, %v2599_v0 }
 0xf2a   :  { %2132 = vmax.xlane.f32.xlu0 %v2131_v2 }
 0xf2d   :  { %v2686_v4 = vpop.permute.xlu1 %2685  ;;  %v2513_v58 = vpop.permute.xlu0 %2512 }
 0xf2e   :  { %4087 = vmatmul.msk.f32.vlgmr.msra.gmra.mxu0 %vm197_vm1, %v2513_v58 }
 0xf2f   :  { %4092 = vmatpush.xpose.msk.msrb.mxu0 %vm197_vm1, %v2686_v4 }
 0xf36   :  { %4093 = vmatmul.msk.f32.vlgmr.msrb.gmra.mxu0 %vm197_vm1, %v2684_v5 }
 0xf9b   :  { %v2204_v7 = vpop.f32.mrf.mxu0 }
 0xf9c   :  { %v2207_v8 = vmul.f32 0.35355338, %v2204_v7  ;;  %v2290_v10 = vpop.f32.mrf.mxu2 }
 0xf9d   :  { %v2293_v13 = vmul.f32 0.35355338, %v2290_v10  ;;  %v2133_v14 = vpop.xlane.xlu0 %2132 }
 0xf9e   :  { %v2134_v15 = vsub.f32 %v2130_v20, %v2133_v14  ;;  %v2208_v3 = vadd.f32 %v2207_v8, %v2102_v62 }
 0xf9f   :  { %v2294_v16 = vadd.f32 %v2293_v13, %v2102_v62 }
 0xfa0   :  { %v2135_v18 = vmul.f32 1.442695, %v2134_v15  ;;  %v2209_v19 = vsel %vm197_vm1, %v2208_v3, -inf }
 0xfa1   :  { %2210 = vmax.xlane.f32.xlu1 %v2209_v19  ;;  %v2295_v34 = vsel %vm197_vm1, %v2294_v16, -inf }
 0xfa2   :  { %4291 = vpow2.f32 %v2135_v18  ;;  %2296 = vmax.xlane.f32.xlu2 %v2295_v34 }
 0xfa3   :  { %v2375_v21 = vpop.f32.mrf.mxu0 }
 0xfa4   :  { %v2378_v9 = vmul.f32 0.35355338, %v2375_v21  ;;  %v2459_v23 = vpop.f32.mrf.mxu2 }
 0xfa5   :  { %v2462_v26 = vmul.f32 0.35355338, %v2459_v23 }
 0xfa6   :  { %v2379_v27 = vadd.f32 %v2378_v9, %v2102_v62 }
 0xfa7   :  { %v2463_v45 = vadd.f32 %v4082_v25, %v2462_v26 }
 0xfa8   :  { %v5089_v29 = vpop.eup %4291  ;;  %v2380_v22 = vsel %vm197_vm1, %v2379_v27, -inf }
 0xfa9   :  { %v2137_v50 = vsel %vm197_vm1, %v5089_v29, 0.0  ;;  %v2464_v32 = vsel %vm197_vm1, %v2463_v45, -inf }
 0xfaa   :  { %2138 = vadd.xlane.f32.xlu1 %v2137_v50  ;;  %2465 = vmax.xlane.f32.xlu0 %v2464_v32 }
 0xfab   :  { %2381 = vmax.xlane.f32.xlu2 %v2380_v22  ;;  %v2537_v33 = vpop.f32.mrf.mxu0 }
 0xfac   :  { %v2540_v11 = vmul.f32 0.35355338, %v2537_v33  ;;  %v2623_v35 = vpop.f32.mrf.mxu2 }
 0xfad   :  { %v2626_v1 = vmul.f32 0.35355338, %v2623_v35  ;;  %v2100_v35 = vadd.f32 %v5048_v47, %v5082_v6 }
 0xfae   :  { %v2541_v36 = vadd.f32 %v4082_v25, %v2540_v11 }
 0xfaf   :  { %v2627_v37 = vadd.f32 %v4082_v25, %v2626_v1 }
 0xfb0   :  { %v2542_v39 = vsel %vm197_vm1, %v2541_v36, -inf }
 0xfb1   :  { %v2628_v41 = vsel %vm197_vm1, %v2627_v37, -inf }
 0xfb2   :  { %2543 = vmax.xlane.f32.xlu1 %v2542_v39 }
 0xfb3   :  { %2629 = vmax.xlane.f32.xlu2 %v2628_v41  ;;  %v2708_v43 = vpop.f32.mrf.mxu0 }
 0xfb4   :  { %v2711_v30 = vmul.f32 0.35355338, %v2708_v43 }
 0xfb6   :  { %v2712_v46 = vadd.f32 %v4082_v25, %v2711_v30 }
 0xfb8   :  { %v2713_v24 = vsel %vm197_vm1, %v2712_v46, -inf }
 0xfb9   :  { %2714 = vmax.xlane.f32.xlu0 %v2713_v24 }
 0xfcb   :  { %2234 = vrot.lane.b32.xlu2 %v5052_v49, %s4452_s29 }
 0xfcd   :  { %2319 = vrot.lane.b32.xlu0 %v5052_v49, %s4451_s28 }
0x1014   :  { %v2211_v17 = vpop.xlane.xlu1 %2210 }
0x1015   :  { %v2212_v28 = vsub.f32 %v2208_v3, %v2211_v17  ;;  %v2297_v44 = vpop.xlane.xlu2 %2296 }
0x1016   :  { %v2298_v51 = vsub.f32 %v2294_v16, %v2297_v44 }
0x1017   :  { %v2213_v52 = vmul.f32 1.442695, %v2212_v28 }
0x1018   :  { %v2299_v31 = vmul.f32 1.442695, %v2298_v51 }
0x1019   :  { %4293 = vpow2.f32 %v2213_v52 }
0x101a   :  { %4295 = vpow2.f32 %v2299_v31 }
0x101d   :  { %v2139_v53 = vpop.xlane.xlu1 %2138  ;;  %v2466_v54 = vpop.xlane.xlu0 %2465 }
0x101e   :  { %4297 = vrcp.f32 %v2139_v53  ;;  %v2382_v55 = vpop.xlane.xlu2 %2381  ;;  %v2467_v59 = vsub.f32 %v2463_v45, %v2466_v54  ;;  %v2151_v7 = vand.u32 2147483648, %v2139_v53  ;;  %v2149_v14 = vand.u32 2147483647, %v2139_v53 }
0x101f   :  { %v5102_v56 = vpop.eup %4293  ;;  %v2383_v48 = vsub.f32 %v2379_v27, %v2382_v55  ;;  %vm2145_vm4 = vweird.f32 %v2139_v53 }
0x1020   :  { %v5104_v60 = vpop.eup %4295  ;;  %v2215_v61 = vsel %vm197_vm1, %v5102_v56, 0.0  ;;  %v2468_v62 = vmul.f32 1.442695, %v2467_v59  ;;  %v2152_v34 = vor.u32 1.1754944e-38, %v2151_v7  ;;  %vm2150_vm9 = vcmp.eq.f32.partialorder %v2149_v14, 8.507059e+37 }
0x1021   :  { %v2384_v57 = vmul.f32 1.442695, %v2383_v48  ;;  %2216 = vadd.xlane.f32.xlu2 %v2215_v61  ;;  %v2301_v63 = vsel %vm197_vm1, %v5104_v60, 0.0 }
0x1022   :  { %2302 = vadd.xlane.f32.xlu0 %v2301_v63 }
0x1023   :  { %4299 = vpow2.f32 %v2384_v57 }
0x1024   :  { %v4298_v0 = vpop.eup %4297  ;;  %4301 = vpow2.f32 %v2468_v62 }
0x1025   :  { %v2141_v40 = vmul.f32 %v4298_v0, %v2139_v53  ;;  %v2544_v20 = vpop.xlane.xlu1 %2543  ;;  %vm2146_vm3 = vweird.f32 %v4298_v0 }
0x1026   :  { %v2545_v2 = vsub.f32 %v2541_v36, %v2544_v20  ;;  %v2630_v4 = vpop.xlane.xlu2 %2629  ;;  %vm2147_vm5 = vmor %vm2145_vm4, %vm2146_vm3 }
0x1027   :  { %v2142_v58 = vsub.f32 1.0, %v2141_v40  ;;  %v2631_v5 = vsub.f32 %v2627_v37, %v2630_v4 }
0x1028   :  { %v2546_v8 = vmul.f32 1.442695, %v2545_v2 }
0x1029   :  { %v5110_v10 = vpop.eup %4299  ;;  %v2143_v13 = vmul.f32 %v4298_v0, %v2142_v58  ;;  %v2632_v15 = vmul.f32 1.442695, %v2631_v5 }
0x102a   :  { %v5112_v3 = vpop.eup %4301  ;;  %4303 = vpow2.f32 %v2546_v8  ;;  %v2386_v16 = vsel %vm197_vm1, %v5110_v10, 0.0 }
0x102b   :  { %v2144_v18 = vadd.f32 %v4298_v0, %v2143_v13  ;;  %4305 = vpow2.f32 %v2632_v15  ;;  %2387 = vadd.xlane.f32.xlu1 %v2386_v16  ;;  %v2470_v19 = vsel %vm197_vm1, %v5112_v3, 0.0 }
0x102c   :  { %2471 = vadd.xlane.f32.xlu2 %v2470_v19  ;;  %v2715_v21 = vpop.xlane.xlu0 %2714 }
0x102d   :  { %v2148_v9 = vsel %vm2147_vm5, %v4298_v0, %v2144_v18  ;;  %v2716_v23 = vsub.f32 %v2712_v46, %v2715_v21 }
0x102e   :  { %v2153_v25 = vsel %vm2150_vm9, %v2152_v34, %v2148_v9  ;;  %v2235_v26 = vpop.permute.xlu2 %2234 }
0x102f   :  { %v2717_v27 = vmul.f32 1.442695, %v2716_v23  ;;  %2255 = vmatpush.msrb.mxu1 %v2235_v26  ;;  %v2154_v45 = vmul.f32 %v5089_v29, %v2153_v25 }
0x1030   :  { %v5119_v22 = vpop.eup %4303 }
0x1031   :  { %v5121_v50 = vpop.eup %4305  ;;  %4307 = vpow2.f32 %v2717_v27  ;;  %4072 = vmatmul.msk.f32.vlgmr.msra.gmra.mxu3 %vm197_vm1, %v2154_v45  ;;  %v2548_v32 = vsel %vm197_vm1, %v5119_v22, 0.0 }
0x1032   :  { %2549 = vadd.xlane.f32.xlu0 %v2548_v32  ;;  %v2634_v33 = vsel %vm197_vm1, %v5121_v50, 0.0 }
0x1033   :  { %2635 = vadd.xlane.f32.xlu1 %v2634_v33 }
0x1037   :  { %v5128_v11 = vpop.eup %4307 }
0x1038   :  { %v2719_v29 = vsel %vm197_vm1, %v5128_v11, 0.0 }
0x103b   :  { %2720 = vadd.xlane.f32.xlu1 %v2719_v29 }
0x103f   :  { %v2320_v1 = vpop.permute.xlu0 %2319 }
0x1040   :  { %2340 = vmatpush.msrb.mxu3 %v2320_v1 }
0x1042   :  { %2506 = vmatpush.msra.mxu3 %v2100_v35 }
0x1044   :  { %2652 = vrot.lane.b32.xlu2 %v2100_v35, %s4451_s28 }
0x1046   :  { %2567 = vrot.lane.b32.xlu0 %v2100_v35, %s4452_s29 }
0x104e   :  { %2737 = vrot.lane.b32.xlu0 %v2100_v35, %s4453_s0 }
0x1054   :  { %2404 = vrot.lane.b32.xlu1 %v5052_v49, %s4453_s0 }
0x1094   :  { %v2217_v36 = vpop.xlane.xlu2 %2216 }
0x1095   :  { %4309 = vrcp.f32 %v2217_v36  ;;  %v2303_v37 = vpop.xlane.xlu0 %2302  ;;  %v2229_v28 = vand.u32 2147483648, %v2217_v36  ;;  %vm2223_vm13 = vweird.f32 %v2217_v36  ;;  %v2227_v52 = vand.u32 2147483647, %v2217_v36 }
0x1096   :  { %4311 = vrcp.f32 %v2303_v37  ;;  %v2315_v49 = vand.u32 2147483648, %v2303_v37  ;;  %v2313_v31 = vand.u32 2147483647, %v2303_v37  ;;  %vm2309_vm15 = vweird.f32 %v2303_v37 }
0x1097   :  { %v2230_v55 = vor.u32 1.1754944e-38, %v2229_v28  ;;  %vm2228_vm3 = vcmp.eq.f32.partialorder %v2227_v52, 8.507059e+37 }
0x1098   :  { %v2316_v59 = vor.u32 1.1754944e-38, %v2315_v49  ;;  %vm2314_vm4 = vcmp.eq.f32.partialorder %v2313_v31, 8.507059e+37 }
0x109b   :  { %v4310_v39 = vpop.eup %4309 }
0x109c   :  { %v4312_v41 = vpop.eup %4311  ;;  %v2219_v43 = vmul.f32 %v4310_v39, %v2217_v36  ;;  %vm2224_vm11 = vweird.f32 %v4310_v39 }
0x109d   :  { %v2305_v47 = vmul.f32 %v4312_v41, %v2303_v37  ;;  %vm2310_vm12 = vweird.f32 %v4312_v41  ;;  %vm2225_vm14 = vmor %vm2223_vm13, %vm2224_vm11 }
0x109e   :  { %v2220_v6 = vsub.f32 1.0, %v2219_v43  ;;  %v5139_v30 = vpop.xlane.xlu1 %2387  ;;  %vm2311_vm2 = vmor %vm2309_vm15, %vm2310_vm12 }
0x109f   :  { %v2306_v46 = vsub.f32 1.0, %v2305_v47  ;;  %v2472_v24 = vpop.xlane.xlu2 %2471  ;;  %v2400_v47 = vand.u32 2147483648, %v5139_v30 }
0x10a0   :  { %v2221_v17 = vmul.f32 %v4310_v39, %v2220_v6  ;;  %4313 = vrcp.f32 %v2472_v24  ;;  %v2484_v20 = vand.u32 2147483648, %v2472_v24  ;;  %v2482_v5 = vand.u32 2147483647, %v2472_v24 }
0x10a1   :  { %v2307_v44 = vmul.f32 %v4312_v41, %v2306_v46  ;;  %4315 = vrcp.f32 %v5139_v30  ;;  %vm2478_vm9 = vweird.f32 %v2472_v24  ;;  %v2398_v6 = vand.u32 2147483647, %v5139_v30 }
0x10a2   :  { %v2222_v51 = vadd.f32 %v4310_v39, %v2221_v17  ;;  %v2485_v16 = vor.u32 1.1754944e-38, %v2484_v20  ;;  %vm2483_vm12 = vcmp.eq.f32.partialorder %v2482_v5, 8.507059e+37 }
0x10a3   :  { %v2308_v53 = vadd.f32 %v4312_v41, %v2307_v44  ;;  %v2401_v44 = vor.u32 1.1754944e-38, %v2400_v47 }
0x10a4   :  { %v2226_v54 = vsel %vm2225_vm14, %v4310_v39, %v2222_v51 }
0x10a5   :  { %v2312_v48 = vsel %vm2311_vm2, %v4312_v41, %v2308_v53  ;;  %v2231_v62 = vsel %vm2228_vm3, %v2230_v55, %v2226_v54  ;;  %v5144_v7 = vpop.xlane.xlu0 %2549 }
0x10a6   :  { %v4314_v61 = vpop.eup %4313  ;;  %v2636_v57 = vpop.xlane.xlu1 %2635  ;;  %v2317_v63 = vsel %vm2314_vm4, %v2316_v59, %v2312_v48  ;;  %v2232_v2 = vmul.f32 %v5102_v56, %v2231_v62  ;;  %vm2394_vm4 = vweird.f32 %v5139_v30  ;;  %v2562_v52 = vand.u32 2147483648, %v5144_v7 }
0x10a7   :  { %v2474_v0 = vmul.f32 %v4314_v61, %v2472_v24  ;;  %4317 = vrcp.f32 %v2636_v57  ;;  %v2318_v4 = vmul.f32 %v5104_v60, %v2317_v63  ;;  %vm2479_vm5 = vweird.f32 %v4314_v61  ;;  %v2653_v8 = vpop.permute.xlu2 %2652  ;;  %v4316_v13 = vpop.eup %4315 }
0x10a8   :  { %4075 = vmatmul.msk.f32.vlgmr.msrb.gmra.mxu1 %vm197_vm1, %v2232_v2  ;;  %vm2480_vm11 = vmor %vm2478_vm9, %vm2479_vm5  ;;  %4319 = vrcp.f32 %v5144_v7  ;;  %v2390_v18 = vmul.f32 %v4316_v13, %v5139_v30  ;;  %v2648_v21 = vand.u32 2147483648, %v2636_v57  ;;  %v2646_v25 = vand.u32 2147483647, %v2636_v57 }
0x10a9   :  { %v2475_v40 = vsub.f32 1.0, %v2474_v0  ;;  %4078 = vmatmul.msk.f32.vlgmr.msrb.gmra.mxu3 %vm197_vm1, %v2318_v4  ;;  %vm2642_vm14 = vweird.f32 %v2636_v57  ;;  %vm2395_vm3 = vweird.f32 %v4316_v13  ;;  %vm2399_vm9 = vcmp.eq.f32.partialorder %v2398_v6, 8.507059e+37 }
0x10aa   :  { %2673 = vmatpush.msrb.mxu3 %v2653_v8  ;;  %v2391_v26 = vsub.f32 1.0, %v2390_v18  ;;  %v2649_v29 = vor.u32 1.1754944e-38, %v2648_v21  ;;  %vm2647_vm2 = vcmp.eq.f32.partialorder %v2646_v25, 8.507059e+37  ;;  %vm2396_vm5 = vmor %vm2394_vm4, %vm2395_vm3  ;;  %v2560_v31 = vand.u32 2147483647, %v5144_v7 }
0x10ab   :  { %v2476_v58 = vmul.f32 %v4314_v61, %v2475_v40  ;;  %v2563_v48 = vor.u32 1.1754944e-38, %v2562_v52  ;;  %v4197_v25 = vld [vmem:[%s5558_s5 + $0x7] ss:$0 sm:$0xff]  ;;  %v2871_v52 = vld [vmem:[#allocation6 + $0x88] sm:$0xff] }
0x10ac   :  { %v2392_v1 = vmul.f32 %v4316_v13, %v2391_v26 }
0x10ad   :  { %v2477_v14 = vadd.f32 %v4314_v61, %v2476_v58  ;;  %v4318_v15 = vpop.eup %4317 }
0x10ae   :  { %v2638_v60 = vmul.f32 %v4318_v15, %v2636_v57  ;;  %vm2643_vm13 = vweird.f32 %v4318_v15  ;;  %v2721_v27 = vpop.xlane.xlu1 %2720  ;;  %v4320_v32 = vpop.eup %4319  ;;  %v2393_v39 = vadd.f32 %v4316_v13, %v2392_v1 }
0x10af   :  { %v2481_v56 = vsel %vm2480_vm11, %v4314_v61, %v2477_v14  ;;  %vm2644_vm15 = vmor %vm2642_vm14, %vm2643_vm13  ;;  %4321 = vrcp.f32 %v2721_v27  ;;  %vm2557_vm11 = vweird.f32 %v4320_v32  ;;  %vm2561_vm14 = vcmp.eq.f32.partialorder %v2560_v31, 8.507059e+37  ;;  %v2774_v14 = vld [vmem:[#allocation3 + $0xf8] sm:$0xff]  ;;  %v2870_v31 = vld [vmem:[#allocation6 + $0x80] sm:$0xff] }
0x10b0   :  { %v2486_v19 = vsel %vm2483_vm12, %v2485_v16, %v2481_v56  ;;  %v2639_v34 = vsub.f32 1.0, %v2638_v60  ;;  %v2397_v24 = vsel %vm2396_vm5, %v4316_v13, %v2393_v39  ;;  %vm2556_vm12 = vweird.f32 %v5144_v7  ;;  %2798 = vmatpush.msrb.mxu2 %v2774_v14  ;;  %v2772_v16 = vld [vmem:[#allocation3 + $0xe8] sm:$0xff]  ;;  %v2771_v56 = vld [vmem:[#allocation3 + $0xe0] sm:$0xff] }
0x10b1   :  { %v2487_v9 = vmul.f32 %v5112_v3, %v2486_v19  ;;  %v2552_v3 = vmul.f32 %v4320_v32, %v5144_v7  ;;  %vm2558_vm13 = vmor %vm2556_vm12, %vm2557_vm11  ;;  %v2733_v62 = vand.u32 2147483648, %v2721_v27  ;;  %v2731_v63 = vand.u32 2147483647, %v2721_v27  ;;  %v2909_v39 = vld [vmem:[#allocation6 + $0xa0] sm:$0xff] }
0x10b2   :  { %v2640_v23 = vmul.f32 %v4318_v15, %v2639_v34 }
0x10b3   :  { %4085 = vmatmul.msk.f32.vlgmr.msra.gmra.mxu3 %vm197_vm1, %v2487_v9  ;;  %v2553_v41 = vsub.f32 1.0, %v2552_v3  ;;  %v2734_v40 = vor.u32 1.1754944e-38, %v2733_v62  ;;  %vm2732_vm4 = vcmp.eq.f32.partialorder %v2731_v63, 8.507059e+37  ;;  %v2912_v3 = vld [vmem:[#allocation6 + $0xb8] sm:$0xff] }
0x10b4   :  { %v2175_v45 = vpop.f32.mrf.mxu3  ;;  %v2641_v33 = vadd.f32 %v4318_v15, %v2640_v23  ;;  %2930 = vmatpush.msra.mxu0 %v2912_v3  ;;  %v2945_v3 = vld [vmem:[#allocation6 + $0xd8] sm:$0xff] }
0x10b5   :  { %2178 = vst.msk [vmem:[#allocation2] sm:$0xff] %vm197_vm1, %v2175_v45  ;;  %v4322_v43 = vpop.eup %4321  ;;  %v2554_v17 = vmul.f32 %v4320_v32, %v2553_v41 }
0x10b6   :  { %v2645_v35 = vsel %vm2644_vm15, %v4318_v15, %v2641_v33  ;;  %v2723_v28 = vmul.f32 %v4322_v43, %v2721_v27  ;;  %vm2728_vm15 = vweird.f32 %v4322_v43  ;;  %v2773_v15 = vld [vmem:[#allocation3 + $0xf0] sm:$0xff] }
0x10b7   :  { %v2650_v36 = vsel %vm2647_vm2, %v2649_v29, %v2645_v35  ;;  %v2555_v49 = vadd.f32 %v4320_v32, %v2554_v17  ;;  %vm2727_vm2 = vweird.f32 %v2721_v27  ;;  %2799 = vmatpush.msrb.mxu2 %v2773_v15 }
0x10b8   :  { %v2651_v37 = vmul.f32 %v5121_v50, %v2650_v36  ;;  %v2568_v46 = vpop.permute.xlu0 %2567  ;;  %v2402_v50 = vsel %vm2399_vm9, %v2401_v44, %v2397_v24  ;;  %v2724_v51 = vsub.f32 1.0, %v2723_v28  ;;  %vm2729_vm3 = vmor %vm2727_vm2, %vm2728_vm15  ;;  %v2911_v36 = vld [vmem:[#allocation6 + $0xb0] sm:$0xff] }
0x10b9   :  { %v2403_v30 = vmul.f32 %v5110_v10, %v2402_v50  ;;  %v2559_v54 = vsel %vm2558_vm13, %v4320_v32, %v2555_v49  ;;  %2800 = vmatpush.msrb.mxu2 %v2772_v16  ;;  %2931 = vmatpush.msra.mxu0 %v2911_v36  ;;  %v2873_v49 = vld [vmem:[#allocation6 + $0x98] sm:$0xff]  ;;  %v2944_v36 = vld [vmem:[#allocation6 + $0xd0] sm:$0xff] }
0x10ba   :  { %v2725_v55 = vmul.f32 %v4322_v43, %v2724_v51  ;;  %v2564_v61 = vsel %vm2561_vm14, %v2563_v48, %v2559_v54  ;;  %2897 = vmatpush.msra.mxu3 %v2873_v49  ;;  %v2872_v51 = vld [vmem:[#allocation6 + $0x90] sm:$0xff] }
0x10bb   :  { %4091 = vmatmul.msk.f32.vlgmr.msrb.gmra.mxu3 %vm197_vm1, %v2651_v37  ;;  %v2565_v0 = vmul.f32 %v5119_v22, %v2564_v61  ;;  %2801 = vmatpush.msrb.mxu2 %v2771_v56  ;;  %v2910_v37 = vld [vmem:[#allocation6 + $0xa8] sm:$0xff] }
0x10bc   :  { %v2726_v57 = vadd.f32 %v4322_v43, %v2725_v55  ;;  %2932 = vmatpush.msra.mxu0 %v2910_v37  ;;  %2898 = vmatpush.msra.mxu3 %v2872_v51  ;;  %v2943_v37 = vld [vmem:[#allocation6 + $0xc8] sm:$0xff] }
0x10be   :  { %v2730_v10 = vsel %vm2729_vm3, %v4322_v43, %v2726_v57  ;;  %2933 = vmatpush.msra.mxu0 %v2909_v39  ;;  %2899 = vmatpush.msra.mxu3 %v2871_v52  ;;  %v2942_v39 = vld [vmem:[#allocation6 + $0xc0] sm:$0xff] }
0x10bf   :  { %v2735_v20 = vsel %vm2732_vm4, %v2734_v40, %v2730_v10 }
0x10c0   :  { %v2738_v59 = vpop.permute.xlu0 %2737  ;;  %v2736_v2 = vmul.f32 %v5128_v11, %v2735_v20  ;;  %2900 = vmatpush.msra.mxu3 %v2870_v31 }
0x10c6   :  { %v2405_v53 = vpop.permute.xlu1 %2404 }
0x10c7   :  { %2425 = vmatpush.msra.mxu1 %v2405_v53 }
0x10c8   :  { %4081 = vmatmul.msk.f32.vlgmr.msra.gmra.mxu1 %vm197_vm1, %v2403_v30 }
0x10c9   :  { %2588 = vmatpush.msrb.mxu1 %v2568_v46  ;;  %v5202_v46 = vld [vmem:[%s5578_s30 + $0x8] sm:$0xff] }
0x10cb   :  { %2758 = vmatpush.msra.mxu1 %v2738_v59  ;;  %v4200_v59 = vld [vmem:[%s5560_s7 + $0x5] ss:$0 sm:$0xff] }
0x10d0   :  { %4088 = vmatmul.msk.f32.vlgmr.msrb.gmra.mxu1 %vm197_vm1, %v2565_v0 }
0x10d1   :  { %2963 = vmatpush.msrb.mxu1 %v2945_v3 }
0x10d3   :  { %2964 = vmatpush.msrb.mxu1 %v2944_v36 }
0x10d5   :  { %2965 = vmatpush.msrb.mxu1 %v2943_v37 }
0x10d7   :  { %2966 = vmatpush.msrb.mxu1 %v2942_v39 }
0x10d8   :  { %4094 = vmatmul.msk.f32.vlgmr.msra.gmra.mxu1 %vm197_vm1, %v2736_v2 }
0x1125   :  { %v2257_v4 = vpop.f32.mrf.mxu1 }
0x1126   :  { %2261 = vrot.lane.b32.xlu2 %v2257_v4, %s4449_s19  ;;  %v4198_v4 = vld [vmem:[%s5565_s12 + $0x3] ss:$0 sm:$0xff] }
0x112c   :  { %v2342_v58 = vpop.f32.mrf.mxu3 }
0x112d   :  { %2346 = vrot.lane.b32.xlu1 %v2342_v58, %s4454_s22 }
0x1136   :  { %v2508_v5 = vpop.f32.mrf.mxu3 }
0x1137   :  { %2511 = vst.msk [vmem:[#allocation2 + $0x8] sm:$0xff] %vm197_vm1, %v2508_v5 }
0x113e   :  { %v2675_v22 = vpop.f32.mrf.mxu3 }
0x113f   :  { %2679 = vrot.lane.b32.xlu1 %v2675_v22, %s4454_s22  ;;  %v4199_v22 = vld [vmem:[%s5566_s13 + $0x3] ss:$0 sm:$0xff] }
0x1145   :  { %v2427_v7 = vpop.f32.mrf.mxu1 }
0x1146   :  { %2431 = vrot.lane.b32.xlu0 %v2427_v7, %s4455_s23 }
0x114d   :  { %v2590_v8 = vpop.f32.mrf.mxu1 }
0x114e   :  { %2594 = vrot.lane.b32.xlu2 %v2590_v8, %s4449_s19 }
0x1155   :  { %v2760_v11 = vpop.f32.mrf.mxu1 }
0x1156   :  { %2764 = vrot.lane.b32.xlu0 %v2760_v11, %s4455_s23 }
0x1180   :  { %v2262_v13 = vpop.permute.xlu2 %2261 }
0x1181   :  { %2264 = vst.msk [vmem:[#allocation2] sm:$0xff] %vm359_vm6, %v2262_v13 }
0x119f   :  { %v2347_v60 = vpop.permute.xlu1 %2346 }
0x11a0   :  { %2349 = vst.msk [vmem:[#allocation2] sm:$0xff] %vm445_vm7, %v2347_v60 }
0x11a8   :  { %v2595_v18 = vpop.permute.xlu2 %2594 }
0x11a9   :  { %2597 = vst.msk [vmem:[#allocation2 + $0x8] sm:$0xff] %vm359_vm6, %v2595_v18 }
0x11b1   :  { %v2680_v19 = vpop.permute.xlu1 %2679 }
0x11b2   :  { %2682 = vst.msk [vmem:[#allocation2 + $0x8] sm:$0xff] %vm445_vm7, %v2680_v19 }
0x11b8   :  { %v2432_v34 = vpop.permute.xlu0 %2431 }
0x11b9   :  { %2434 = vst.msk [vmem:[#allocation2] sm:$0xff] %vm531_vm8, %v2432_v34 }
0x11c0   :  { %v2768_v21 = vld [vmem:[#allocation2] sm:$0xff] }
0x11c1   :  { %4096 = vmatmul.msk.f32.vlgmr.msrb.gmra.mxu2 %vm100_vm0, %v2768_v21 }
0x11c8   :  { %v2765_v9 = vpop.permute.xlu0 %2764 }
0x11c9   :  { %2767 = vst.msk [vmem:[#allocation2 + $0x8] sm:$0xff] %vm531_vm8, %v2765_v9 }
0x11d0   :  { %v2769_v23 = vld [vmem:[#allocation2 + $0x8] sm:$0xff] }
0x11d1   :  { %4097 = vmatmul.msk.f32.gmra.mxu2 %vm100_vm0, %v2769_v23  ;;  %v4201_v23 = vld [vmem:[%s5560_s7 + $0x4] ss:$0 sm:$0xff] }
0x1244   :  { %v2803_v26 = vpop.f32.mrf.mxu2 }
0x1245   :  { %v2804_v27 = vadd.f32 %v4197_v25, %v2803_v26 }
0x1247   :  { %v2813_v45 = vadd.f32 %v2804_v27, %v5018_v38  ;;  %v5193_v38 = vld [vmem:[%s5578_s30] sm:$0xff] }
0x1248   :  { %4104 = vmatmul.msk.f32.vlgmr.msra.gmra.mxu0 %vm100_vm0, %v5193_v38  ;;  %4107 = vmatmul.msk.f32.vlgmr.msrb.gmra.mxu1 %vm100_vm0, %v5193_v38 }
0x1249   :  { %v2815_v32 = vsel %vm100_vm0, %v2813_v45, 0.0 }
0x124a   :  { %2816 = vadd.xlane.f32.xlu2 %v2815_v32 }
0x1250   :  { %4105 = vmatmul.msk.f32.gmra.mxu0 %vm100_vm0, %v5202_v46  ;;  %4108 = vmatmul.msk.f32.gmra.mxu1 %vm100_vm0, %v5202_v46  ;;  %v5269_v46 = vld [vmem:[%s5560_s7 + $0x6] ss:$0 sm:$0xff] }
0x1254   :  { %v2806_v33 = vpop.f32.mrf.mxu2 }
0x1255   :  { %v2807_v29 = vadd.f32 %v4197_v25, %v2806_v33 }
0x1257   :  { %v2814_v35 = vadd.f32 %v2807_v29, %v5027_v42 }
0x1259   :  { %v2818_v1 = vsel %vm100_vm0, %v2814_v35, 0.0 }
0x125a   :  { %2819 = vadd.xlane.f32.xlu1 %v2818_v1 }
0x12bd   :  { %v2817_v41 = vpop.xlane.xlu2 %2816 }
0x12be   :  { %v2821_v42 = vmul.f32 %v2817_v41, %v4755_v12 }
0x12c0   :  { %v2823_v43 = vsub.f32 %v2813_v45, %v2821_v42 }
0x12c2   :  { %v2825_v47 = vmul.f32 %v2823_v43, %v2823_v43 }
0x12c4   :  { %v2827_v6 = vsel %vm100_vm0, %v2825_v47, 0.0 }
0x12c5   :  { %2828 = vadd.xlane.f32.xlu0 %v2827_v6  ;;  %v2935_v61 = vpop.f32.mrf.mxu0  ;;  %v4202_v6 = vld [vmem:[%s5556_s3] ss:$0 sm:$0xff] }
0x12c6   :  { %v2936_v62 = vadd.f32 %v4200_v59, %v2935_v61 }
0x12c8   :  { %3147 = vrot.lane.b32.xlu1 %v2936_v62, %s4451_s28  ;;  %4109 = vmatpush.xpose.msk.msra.mxu2 %vm197_vm1, %v2936_v62 }
0x12cd   :  { %v2820_v24 = vpop.xlane.xlu1 %2819  ;;  %v2938_v26 = vpop.f32.mrf.mxu0 }
0x12ce   :  { %v2822_v17 = vmul.f32 %v2820_v24, %v4755_v12  ;;  %v2939_v45 = vadd.f32 %v4200_v59, %v2938_v26 }
0x12d0   :  { %v2824_v28 = vsub.f32 %v2814_v35, %v2822_v17  ;;  %3236 = vrot.lane.b32.xlu1 %v2936_v62, %s4453_s0 }
0x12d2   :  { %v2826_v44 = vmul.f32 %v2824_v28, %v2824_v28 }
0x12d4   :  { %v2830_v50 = vsel %vm100_vm0, %v2826_v44, 0.0 }
0x12d5   :  { %2831 = vadd.xlane.f32.xlu2 %v2830_v50 }
0x12ed   :  { %3057 = vrot.lane.b32.xlu2 %v2936_v62, %s4452_s29 }
0x1338   :  { %v2829_v53 = vpop.xlane.xlu0 %2828 }
0x1339   :  { %v2833_v30 = vmul.f32 %v2829_v53, %v4755_v12 }
0x133a   :  { %v3148_v21 = vpop.permute.xlu1 %3147 }
0x133b   :  { %v2835_v54 = vadd.f32 1e-05, %v2833_v30  ;;  %4115 = vmatpush.xpose.msk.msrb.mxu2 %vm197_vm1, %v3148_v21 }
0x133d   :  { %4323 = vrsqrt.f32 %v2835_v54  ;;  %vm2843_vm9 = vweird.f32 %v2835_v54 }
0x1342   :  { %v3237_v29 = vpop.permute.xlu1 %3236 }
0x1343   :  { %v4324_v55 = vpop.eup %4323 }
0x1344   :  { %v2838_v48 = vmul.f32 %v4324_v55, %v2835_v54  ;;  %vm2844_vm5 = vweird.f32 %v4324_v55  ;;  %v2968_v54 = vpop.f32.mrf.mxu1 }
0x1345   :  { %vm2845_vm11 = vmor %vm2843_vm9, %vm2844_vm5  ;;  %v5273_v59 = vadd.f32 %v5269_v46, %v2968_v54 }
0x1346   :  { %v2839_v57 = vmul.f32 %v4324_v55, %v2838_v48 }
0x1347   :  { %3048 = vmatpush.msrb.mxu3 %v5273_v59 }
0x1348   :  { %v2840_v63 = vmul.f32 0.5, %v2839_v57  ;;  %v2832_v0 = vpop.xlane.xlu2 %2831  ;;  %v4203_v57 = vld [vmem:[%s5556_s3 + $0x1] ss:$0 sm:$0xff] }
0x1349   :  { %v2834_v10 = vmul.f32 %v2832_v0, %v4755_v12 }
0x134a   :  { %v2841_v40 = vsub.f32 1.5, %v2840_v63 }
0x134b   :  { %v2836_v20 = vadd.f32 1e-05, %v2834_v10 }
0x134c   :  { %v2842_v2 = vmul.f32 %v4324_v55, %v2841_v40 }
0x134d   :  { %4325 = vrsqrt.f32 %v2836_v20  ;;  %vm2853_vm13 = vweird.f32 %v2836_v20 }
0x134e   :  { %v2846_v58 = vsel %vm2845_vm11, %v4324_v55, %v2842_v2 }
0x134f   :  { %v2857_v5 = vmul.f32 %v2846_v58, %v2823_v43 }
0x1350   :  { %v3058_v9 = vpop.permute.xlu2 %3057 }
0x1351   :  { %v2862_v7 = vmul.f32 %v4198_v4, %v2857_v5  ;;  %4112 = vmatpush.xpose.msk.msrb.mxu0 %vm197_vm1, %v3058_v9 }
0x1353   :  { %v4326_v8 = vpop.eup %4325  ;;  %v5223_v11 = vadd.f32 %v4199_v22, %v2862_v7 }
0x1354   :  { %v2848_v13 = vmul.f32 %v4326_v8, %v2836_v20  ;;  %vm2854_vm12 = vweird.f32 %v4326_v8 }
0x1355   :  { %4101 = vmatmul.msk.f32.vlgmr.msra.gmra.mxu3 %vm100_vm0, %v5223_v11  ;;  %vm2855_vm14 = vmor %vm2853_vm13, %vm2854_vm12  ;;  %4118 = vmatpush.xpose.msk.msra.mxu0 %vm197_vm1, %v3237_v29 }
0x1356   :  { %v2849_v14 = vmul.f32 %v4326_v8, %v2848_v13 }
0x1358   :  { %v2850_v15 = vmul.f32 0.5, %v2849_v14 }
0x135a   :  { %v2851_v16 = vsub.f32 1.5, %v2850_v15 }
0x135c   :  { %v2852_v56 = vmul.f32 %v4326_v8, %v2851_v16 }
0x135e   :  { %v2856_v60 = vsel %vm2855_vm14, %v4326_v8, %v2852_v56 }
0x135f   :  { %v2858_v18 = vmul.f32 %v2856_v60, %v2824_v28 }
0x1361   :  { %v2863_v19 = vmul.f32 %v4198_v4, %v2858_v18 }
0x1363   :  { %v5227_v34 = vadd.f32 %v4199_v22, %v2863_v19 }
0x1365   :  { %4102 = vmatmul.msk.f32.gmra.mxu3 %vm100_vm0, %v5227_v34 }
0x13d8   :  { %v2902_v25 = vpop.f32.mrf.mxu3 }
0x13d9   :  { %v2903_v27 = vadd.f32 %v4201_v23, %v2902_v25 }
0x13db   :  { %3234 = vrot.lane.b32.xlu2 %v2903_v27, %s4453_s0  ;;  %3145 = vrot.lane.b32.xlu0 %v2903_v27, %s4451_s28 }
0x13dc   :  { %4110 = vmatmul.msk.f32.vlgmr.msra.gmra.mxu2 %vm197_vm1, %v2903_v27 }
0x13dd   :  { %4122 = vmatpush.xpose.msk.msra.mxu2 %vm197_vm1, %v2939_v45 }
0x13e3   :  { %3406 = vrot.lane.b32.xlu2 %v2939_v45, %s4452_s29  ;;  %3055 = vrot.lane.b32.xlu0 %v2903_v27, %s4452_s29 }
0x13e8   :  { %v2905_v32 = vpop.f32.mrf.mxu3 }
0x13e9   :  { %v2906_v33 = vadd.f32 %v4201_v23, %v2905_v32 }
0x13eb   :  { %3494 = vrot.lane.b32.xlu1 %v2906_v33, %s4451_s28  ;;  %3583 = vrot.lane.b32.xlu2 %v2906_v33, %s4453_s0 }
0x13ec   :  { %3496 = vrot.lane.b32.xlu0 %v2939_v45, %s4451_s28 }
0x13f3   :  { %3585 = vrot.lane.b32.xlu1 %v2939_v45, %s4453_s0 }
0x13f4   :  { %3404 = vrot.lane.b32.xlu0 %v2906_v33, %s4452_s29 }
0x1435   :  { %v3235_v35 = vpop.permute.xlu2 %3234 }
0x143d   :  { %v3407_v42 = vpop.permute.xlu2 %3406 }
0x1445   :  { %v3584_v49 = vpop.permute.xlu2 %3583 }
0x144d   :  { %v3146_v1 = vpop.permute.xlu0 %3145 }
0x144e   :  { %4116 = vmatmul.msk.f32.vlgmr.msrb.gmra.mxu2 %vm197_vm1, %v3146_v1 }
0x1455   :  { %v3056_v41 = vpop.permute.xlu0 %3055 }
0x1456   :  { %4113 = vmatmul.msk.f32.vlgmr.msrb.gmra.mxu0 %vm197_vm1, %v3056_v41  ;;  %4123 = vmatmul.msk.f32.vlgmr.msra.gmra.mxu2 %vm197_vm1, %v2906_v33 }
0x1457   :  { %4125 = vmatpush.xpose.msk.msrb.mxu0 %vm197_vm1, %v3407_v42 }
0x145d   :  { %v3495_v43 = vpop.permute.xlu1 %3494 }
0x145e   :  { %v3497_v47 = vpop.permute.xlu0 %3496  ;;  %4119 = vmatmul.msk.f32.vlgmr.msra.gmra.mxu0 %vm197_vm1, %v3235_v35 }
0x145f   :  { %v2998_v24 = vpop.f32.mrf.mxu2  ;;  %4128 = vmatpush.xpose.msk.msrb.mxu2 %vm197_vm1, %v3497_v47 }
0x1460   :  { %v3001_v17 = vmul.f32 0.35355338, %v2998_v24 }
0x1462   :  { %v3005_v28 = vadd.f32 %v4202_v6, %v3001_v17  ;;  %4129 = vmatmul.msk.f32.vlgmr.msrb.gmra.mxu2 %vm197_vm1, %v3495_v43 }
0x1464   :  { %v3006_v38 = vsel %vm197_vm1, %v3005_v28, -inf }
0x1465   :  { %3007 = vmax.xlane.f32.xlu0 %v3006_v38  ;;  %v3586_v44 = vpop.permute.xlu1 %3585 }
0x1466   :  { %v3405_v50 = vpop.permute.xlu0 %3404  ;;  %4131 = vmatpush.xpose.msk.msra.mxu0 %vm197_vm1, %v3586_v44 }
0x1467   :  { %4126 = vmatmul.msk.f32.vlgmr.msrb.gmra.mxu0 %vm197_vm1, %v3405_v50 }
0x146f   :  { %4132 = vmatmul.msk.f32.vlgmr.msra.gmra.mxu0 %vm197_vm1, %v3584_v49 }
0x14d1   :  { %v3170_v51 = vpop.f32.mrf.mxu2 }
0x14d2   :  { %v3173_v52 = vmul.f32 0.35355338, %v3170_v51 }
0x14d3   :  { %v3080_v31 = vpop.f32.mrf.mxu0 }
0x14d4   :  { %v3174_v53 = vadd.f32 %v4202_v6, %v3173_v52  ;;  %v3083_v30 = vmul.f32 0.35355338, %v3080_v31 }
0x14d6   :  { %v3175_v55 = vsel %vm197_vm1, %v3174_v53, -inf  ;;  %v3084_v48 = vadd.f32 %v4202_v6, %v3083_v30 }
0x14d7   :  { %3176 = vmax.xlane.f32.xlu2 %v3175_v55 }
0x14d8   :  { %v3085_v61 = vsel %vm197_vm1, %v3084_v48, -inf  ;;  %v3008_v20 = vpop.xlane.xlu0 %3007 }
0x14d9   :  { %3086 = vmax.xlane.f32.xlu1 %v3085_v61  ;;  %v3347_v62 = vpop.f32.mrf.mxu2  ;;  %v3009_v4 = vsub.f32 %v3005_v28, %v3008_v20 }
0x14da   :  { %v3350_v63 = vmul.f32 0.35355338, %v3347_v62 }
0x14db   :  { %v3259_v0 = vpop.f32.mrf.mxu0  ;;  %v3010_v22 = vmul.f32 1.442695, %v3009_v4 }
0x14dc   :  { %v3354_v10 = vadd.f32 %v4203_v57, %v3350_v63  ;;  %v3262_v40 = vmul.f32 0.35355338, %v3259_v0  ;;  %v2971_v0 = vpop.f32.mrf.mxu1 }
0x14dd   :  { %4327 = vpow2.f32 %v3010_v22 }
0x14de   :  { %v3263_v2 = vadd.f32 %v4202_v6, %v3262_v40  ;;  %v3355_v58 = vsel %vm197_vm1, %v3354_v10, -inf }
0x14e0   :  { %v3264_v5 = vsel %vm197_vm1, %v3263_v2, -inf }
0x14e1   :  { %3356 = vmax.xlane.f32.xlu1 %v3355_v58  ;;  %3265 = vmax.xlane.f32.xlu0 %v3264_v5 }
0x14e3   :  { %v5284_v21 = vpop.eup %4327 }
0x14e4   :  { %v3429_v7 = vpop.f32.mrf.mxu0  ;;  %v3012_v25 = vsel %vm197_vm1, %v5284_v21, 0.0 }
0x14e5   :  { %v3432_v8 = vmul.f32 0.35355338, %v3429_v7  ;;  %v3519_v13 = vpop.f32.mrf.mxu2 }
0x14e6   :  { %v3522_v14 = vmul.f32 0.35355338, %v3519_v13 }
0x14e7   :  { %v3433_v15 = vadd.f32 %v4203_v57, %v3432_v8 }
0x14e8   :  { %v3523_v16 = vadd.f32 %v4203_v57, %v3522_v14 }
0x14e9   :  { %v3434_v56 = vsel %vm197_vm1, %v3433_v15, -inf }
0x14ea   :  { %3435 = vmax.xlane.f32.xlu2 %v3434_v56  ;;  %v3524_v60 = vsel %vm197_vm1, %v3523_v16, -inf }
0x14eb   :  { %3525 = vmax.xlane.f32.xlu0 %v3524_v60 }
0x14ec   :  { %v3608_v18 = vpop.f32.mrf.mxu0 }
0x14ed   :  { %v3611_v19 = vmul.f32 0.35355338, %v3608_v18 }
0x14ef   :  { %v3612_v9 = vadd.f32 %v4203_v57, %v3611_v19 }
0x14f1   :  { %v3613_v23 = vsel %vm197_vm1, %v3612_v9, -inf }
0x14f2   :  { %3614 = vmax.xlane.f32.xlu1 %v3613_v23  ;;  %3013 = vadd.xlane.f32.xlu2 %v3012_v25 }
0x14ff   :  { %3110 = vrot.lane.b32.xlu0 %v5273_v59, %s4452_s29 }
0x150b   :  { %3199 = vrot.lane.b32.xlu1 %v5273_v59, %s4451_s28 }
0x154a   :  { %v3177_v26 = vpop.xlane.xlu2 %3176 }
0x154b   :  { %v3178_v27 = vsub.f32 %v3174_v53, %v3177_v26 }
0x154c   :  { %v3087_v45 = vpop.xlane.xlu1 %3086 }
0x154d   :  { %v3179_v32 = vmul.f32 1.442695, %v3178_v27  ;;  %v3088_v33 = vsub.f32 %v3084_v48, %v3087_v45 }
0x154f   :  { %4329 = vpow2.f32 %v3179_v32  ;;  %v3089_v29 = vmul.f32 1.442695, %v3088_v33 }
0x1551   :  { %4331 = vpow2.f32 %v3089_v29 }
0x1554   :  { %v3357_v35 = vpop.xlane.xlu1 %3356  ;;  %v3266_v1 = vpop.xlane.xlu0 %3265 }
0x1555   :  { %v5293_v3 = vpop.eup %4329  ;;  %v3358_v36 = vsub.f32 %v3354_v10, %v3357_v35  ;;  %v3267_v37 = vsub.f32 %v3263_v2, %v3266_v1  ;;  %v2972_v2 = vadd.f32 %v5269_v46, %v2971_v0 }
0x1556   :  { %v3181_v39 = vsel %vm197_vm1, %v5293_v3, 0.0 }
0x1557   :  { %v5297_v41 = vpop.eup %4331  ;;  %v3359_v42 = vmul.f32 1.442695, %v3358_v36  ;;  %v3268_v43 = vmul.f32 1.442695, %v3267_v37  ;;  %3182 = vadd.xlane.f32.xlu1 %v3181_v39 }
0x1558   :  { %v3091_v47 = vsel %vm197_vm1, %v5297_v41, 0.0 }
0x1559   :  { %4333 = vpow2.f32 %v3359_v42  ;;  %3092 = vadd.xlane.f32.xlu0 %v3091_v47 }
0x155a   :  { %4335 = vpow2.f32 %v3268_v43 }
0x155d   :  { %v3436_v6 = vpop.xlane.xlu2 %3435 }
0x155e   :  { %v3437_v24 = vsub.f32 %v3433_v15, %v3436_v6  ;;  %v3526_v17 = vpop.xlane.xlu0 %3525 }
0x155f   :  { %v5301_v28 = vpop.eup %4333  ;;  %v3527_v38 = vsub.f32 %v3523_v16, %v3526_v17 }
0x1560   :  { %v5303_v44 = vpop.eup %4335  ;;  %v3438_v50 = vmul.f32 1.442695, %v3437_v24  ;;  %v3361_v49 = vsel %vm197_vm1, %v5301_v28, 0.0 }
0x1561   :  { %v3528_v51 = vmul.f32 1.442695, %v3527_v38  ;;  %3362 = vadd.xlane.f32.xlu0 %v3361_v49  ;;  %v3270_v52 = vsel %vm197_vm1, %v5303_v44, 0.0 }
0x1562   :  { %4337 = vpow2.f32 %v3438_v50  ;;  %3271 = vadd.xlane.f32.xlu2 %v3270_v52 }
0x1563   :  { %4339 = vpow2.f32 %v3528_v51 }
0x1565   :  { %v3615_v31 = vpop.xlane.xlu1 %3614  ;;  %v3014_v53 = vpop.xlane.xlu2 %3013 }
0x1566   :  { %v3616_v30 = vsub.f32 %v3612_v9, %v3615_v31  ;;  %4341 = vrcp.f32 %v3014_v53  ;;  %v3026_v20 = vand.u32 2147483648, %v3014_v53  ;;  %v3024_v58 = vand.u32 2147483647, %v3014_v53 }
0x1567   :  { %vm3020_vm2 = vweird.f32 %v3014_v53 }
0x1568   :  { %v5309_v54 = vpop.eup %4337  ;;  %v3617_v55 = vmul.f32 1.442695, %v3616_v30  ;;  %v3027_v8 = vor.u32 1.1754944e-38, %v3026_v20  ;;  %vm3025_vm4 = vcmp.eq.f32.partialorder %v3024_v58, 8.507059e+37 }
0x1569   :  { %v5311_v48 = vpop.eup %4339  ;;  %v3440_v61 = vsel %vm197_vm1, %v5309_v54, 0.0 }
0x156a   :  { %4343 = vpow2.f32 %v3617_v55  ;;  %3441 = vadd.xlane.f32.xlu1 %v3440_v61  ;;  %v3530_v57 = vsel %vm197_vm1, %v5311_v48, 0.0 }
0x156b   :  { %3531 = vadd.xlane.f32.xlu2 %v3530_v57 }
0x156c   :  { %v4342_v62 = vpop.eup %4341 }
0x156d   :  { %v3016_v63 = vmul.f32 %v4342_v62, %v3014_v53  ;;  %vm3021_vm15 = vweird.f32 %v4342_v62 }
0x156e   :  { %vm3022_vm3 = vmor %vm3020_vm2, %vm3021_vm15 }
0x156f   :  { %v3017_v10 = vsub.f32 1.0, %v3016_v63 }
0x1570   :  { %v5317_v40 = vpop.eup %4343 }
0x1571   :  { %v3018_v4 = vmul.f32 %v4342_v62, %v3017_v10  ;;  %v3619_v5 = vsel %vm197_vm1, %v5317_v40, 0.0  ;;  %v3111_v22 = vpop.permute.xlu0 %3110 }
0x1572   :  { %3131 = vmatpush.msra.mxu1 %v3111_v22 }
0x1573   :  { %v3019_v7 = vadd.f32 %v4342_v62, %v3018_v4  ;;  %3620 = vadd.xlane.f32.xlu2 %v3619_v5 }
0x1575   :  { %v3023_v13 = vsel %vm3022_vm3, %v4342_v62, %v3019_v7  ;;  %3459 = vrot.lane.b32.xlu0 %v2972_v2, %s4452_s29 }
0x1576   :  { %v3028_v14 = vsel %vm3025_vm4, %v3027_v8, %v3023_v13 }
0x1577   :  { %v3029_v46 = vmul.f32 %v5284_v21, %v3028_v14 }
0x1579   :  { %4111 = vmatmul.msk.f32.vlgmr.msrb.gmra.mxu3 %vm197_vm1, %v3029_v46  ;;  %3054 = vst.msk [vmem:[%s5570_s17] sm:$0xff] %vm197_vm1, %v3029_v46 }
0x157d   :  { %v3200_v15 = vpop.permute.xlu1 %3199  ;;  %3637 = vrot.lane.b32.xlu0 %v2972_v2, %s4453_s0 }
0x157e   :  { %3220 = vmatpush.msra.mxu3 %v3200_v15 }
0x1580   :  { %3397 = vmatpush.msrb.mxu3 %v2972_v2 }
0x1583   :  { %3548 = vrot.lane.b32.xlu1 %v2972_v2, %s4451_s28 }
0x158b   :  { %3288 = vrot.lane.b32.xlu2 %v5273_v59, %s4453_s0 }
0x15ca   :  { %v3183_v16 = vpop.xlane.xlu1 %3182 }
0x15cb   :  { %4345 = vrcp.f32 %v3183_v16  ;;  %v3193_v25 = vand.u32 2147483647, %v3183_v16  ;;  %v3195_v26 = vand.u32 2147483648, %v3183_v16  ;;  %vm3189_vm9 = vweird.f32 %v3183_v16 }
0x15cc   :  { %v3093_v56 = vpop.xlane.xlu0 %3092 }
0x15cd   :  { %4347 = vrcp.f32 %v3093_v56  ;;  %v3105_v29 = vand.u32 2147483648, %v3093_v56  ;;  %v3196_v35 = vor.u32 1.1754944e-38, %v3195_v26  ;;  %v3103_v1 = vand.u32 2147483647, %v3093_v56 }
0x15ce   :  { %vm3194_vm13 = vcmp.eq.f32.partialorder %v3193_v25, 8.507059e+37  ;;  %vm3099_vm14 = vweird.f32 %v3093_v56 }
0x15cf   :  { %v3106_v6 = vor.u32 1.1754944e-38, %v3105_v29  ;;  %vm3104_vm2 = vcmp.eq.f32.partialorder %v3103_v1, 8.507059e+37 }
0x15d1   :  { %v4346_v60 = vpop.eup %4345 }
0x15d2   :  { %v3185_v18 = vmul.f32 %v4346_v60, %v3183_v16  ;;  %vm3190_vm5 = vweird.f32 %v4346_v60 }
0x15d3   :  { %v4348_v19 = vpop.eup %4347  ;;  %vm3191_vm12 = vmor %vm3189_vm9, %vm3190_vm5 }
0x15d4   :  { %v3186_v21 = vsub.f32 1.0, %v3185_v18  ;;  %v3095_v9 = vmul.f32 %v4348_v19, %v3093_v56  ;;  %v3363_v23 = vpop.xlane.xlu0 %3362  ;;  %vm3100_vm11 = vweird.f32 %v4348_v19 }
0x15d5   :  { %v5333_v27 = vpop.xlane.xlu2 %3271  ;;  %4349 = vrcp.f32 %v3363_v23  ;;  %vm3101_vm15 = vmor %vm3099_vm14, %vm3100_vm11  ;;  %v3375_v53 = vand.u32 2147483648, %v3363_v23  ;;  %v3373_v30 = vand.u32 2147483647, %v3363_v23  ;;  %vm3369_vm4 = vweird.f32 %v3363_v23 }
0x15d6   :  { %v3187_v45 = vmul.f32 %v4346_v60, %v3186_v21  ;;  %v3096_v32 = vsub.f32 1.0, %v3095_v9  ;;  %4351 = vrcp.f32 %v5333_v27  ;;  %v3284_v2 = vand.u32 2147483648, %v5333_v27 }
0x15d7   :  { %v3376_v62 = vor.u32 1.1754944e-38, %v3375_v53  ;;  %vm3374_vm11 = vcmp.eq.f32.partialorder %v3373_v30, 8.507059e+37 }
0x15d8   :  { %v3188_v59 = vadd.f32 %v4346_v60, %v3187_v45  ;;  %v3097_v33 = vmul.f32 %v4348_v19, %v3096_v32  ;;  %v3285_v15 = vor.u32 1.1754944e-38, %v3284_v2 }
0x15da   :  { %v3192_v36 = vsel %vm3191_vm12, %v4346_v60, %v3188_v59  ;;  %v3098_v37 = vadd.f32 %v4348_v19, %v3097_v33  ;;  %vm3278_vm12 = vweird.f32 %v5333_v27  ;;  %v4141_v59 = vld [vmem:[%s5561_s8 + $0x30] sm:$0xff] }
0x15db   :  { %v4350_v39 = vpop.eup %4349  ;;  %v3197_v42 = vsel %vm3194_vm13, %v3196_v35, %v3192_v36 }
0x15dc   :  { %v4352_v43 = vpop.eup %4351  ;;  %v3102_v47 = vsel %vm3101_vm15, %v4348_v19, %v3098_v37  ;;  %v3365_v24 = vmul.f32 %v4350_v39, %v3363_v23  ;;  %v5337_v17 = vmul.f32 %v5293_v3, %v3197_v42  ;;  %vm3370_vm3 = vweird.f32 %v4350_v39 }
0x15dd   :  { %v3274_v38 = vmul.f32 %v4352_v43, %v5333_v27  ;;  %v5340_v50 = vpop.xlane.xlu1 %3441  ;;  %v3107_v49 = vsel %vm3104_vm2, %v3106_v6, %v3102_v47  ;;  %vm3371_vm5 = vmor %vm3369_vm4, %vm3370_vm3  ;;  %vm3279_vm9 = vweird.f32 %v4352_v43 }
0x15de   :  { %v3366_v51 = vsub.f32 1.0, %v3365_v24  ;;  %4353 = vrcp.f32 %v5340_v50  ;;  %v5343_v52 = vpop.xlane.xlu2 %3531  ;;  %4117 = vmatmul.msk.f32.vlgmr.msra.gmra.mxu3 %vm197_vm1, %v5337_v17  ;;  %v5349_v61 = vmul.f32 %v5297_v41, %v3107_v49  ;;  %v3282_v41 = vand.u32 2147483647, %v5333_v27  ;;  %vm3280_vm13 = vmor %vm3278_vm12, %vm3279_vm9 }
0x15df   :  { %v3275_v31 = vsub.f32 1.0, %v3274_v38  ;;  %4355 = vrcp.f32 %v5343_v52  ;;  %v3544_v19 = vand.u32 2147483648, %v5343_v52  ;;  %v3454_v9 = vand.u32 2147483648, %v5340_v50 }
0x15e0   :  { %v3367_v3 = vmul.f32 %v4350_v39, %v3366_v51  ;;  %4114 = vmatmul.msk.f32.vlgmr.msra.gmra.mxu1 %vm197_vm1, %v5349_v61  ;;  %vm3283_vm14 = vcmp.eq.f32.partialorder %v3282_v41, 8.507059e+37  ;;  %vm3538_vm3 = vweird.f32 %v5343_v52  ;;  %v3542_v23 = vand.u32 2147483647, %v5343_v52 }
0x15e1   :  { %v3276_v55 = vmul.f32 %v4352_v43, %v3275_v31  ;;  %vm3448_vm4 = vweird.f32 %v5340_v50  ;;  %v3452_v25 = vand.u32 2147483647, %v5340_v50  ;;  %v3545_v1 = vor.u32 1.1754944e-38, %v3544_v19 }
0x15e2   :  { %v3368_v57 = vadd.f32 %v4350_v39, %v3367_v3  ;;  %v3455_v37 = vor.u32 1.1754944e-38, %v3454_v9 }
0x15e3   :  { %v3277_v0 = vadd.f32 %v4352_v43, %v3276_v55  ;;  %vm3453_vm12 = vcmp.eq.f32.partialorder %v3452_v25, 8.507059e+37 }
0x15e4   :  { %v4354_v63 = vpop.eup %4353  ;;  %v3372_v10 = vsel %vm3371_vm5, %v4350_v39, %v3368_v57 }
0x15e5   :  { %v4356_v20 = vpop.eup %4355  ;;  %v3377_v4 = vsel %vm3374_vm11, %v3376_v62, %v3372_v10  ;;  %v3444_v58 = vmul.f32 %v4354_v63, %v5340_v50  ;;  %v3281_v14 = vsel %vm3280_vm13, %v4352_v43, %v3277_v0  ;;  %vm3449_vm2 = vweird.f32 %v4354_v63  ;;  %v3678_v62 = vld [vmem:[#allocation6 + $0xf8] sm:$0xff]  ;;  %v3676_v0 = vld [vmem:[#allocation6 + $0xe8] sm:$0xff]  ;;  %v3675_v10 = vld [vmem:[#allocation6 + $0xe0] sm:$0xff] }
0x15e6   :  { %v3534_v5 = vmul.f32 %v4356_v20, %v5343_v52  ;;  %v3621_v22 = vpop.xlane.xlu2 %3620  ;;  %v3378_v7 = vmul.f32 %v5301_v28, %v3377_v4  ;;  %v3286_v60 = vsel %vm3283_vm14, %v3285_v15, %v3281_v14  ;;  %vm3539_vm15 = vweird.f32 %v4356_v20  ;;  %vm5377_vm9 = vmor %vm3448_vm4, %vm3449_vm2  ;;  %3702 = vmatpush.msra.mxu2 %v3678_v62 }
0x15e7   :  { %v3445_v8 = vsub.f32 1.0, %v3444_v58  ;;  %4357 = vrcp.f32 %v3621_v22  ;;  %v3460_v13 = vpop.permute.xlu0 %3459  ;;  %vm5370_vm5 = vmor %vm3538_vm3, %vm3539_vm15  ;;  %v5375_v32 = vmul.f32 %v5303_v44, %v3286_v60  ;;  %vm3543_vm11 = vcmp.eq.f32.partialorder %v3542_v23, 8.507059e+37 }
0x15e8   :  { %v3535_v46 = vsub.f32 1.0, %v3534_v5  ;;  %4124 = vmatmul.msk.f32.vlgmr.msrb.gmra.mxu3 %vm197_vm1, %v3378_v7  ;;  %3403 = vst.msk [vmem:[%s5570_s17 + $0x8] sm:$0xff] %vm197_vm1, %v3378_v7  ;;  %v3633_v47 = vand.u32 2147483648, %v3621_v22  ;;  %vm3627_vm14 = vweird.f32 %v3621_v22  ;;  %v3631_v38 = vand.u32 2147483647, %v3621_v22 }
0x15e9   :  { %v3446_v16 = vmul.f32 %v4354_v63, %v3445_v8  ;;  %v4205_v8 = vld [vmem:[%s5560_s7 + $0x7] ss:$0 sm:$0xff] }
0x15ea   :  { %v3536_v56 = vmul.f32 %v4356_v20, %v3535_v46  ;;  %v3634_v51 = vor.u32 1.1754944e-38, %v3633_v47  ;;  %vm3632_vm2 = vcmp.eq.f32.partialorder %v3631_v38, 8.507059e+37  ;;  %v4206_v38 = vld [vmem:[%s5565_s12 + $0x4] ss:$0 sm:$0xff] }
0x15eb   :  { %v3447_v28 = vadd.f32 %v4354_v63, %v3446_v16 }
0x15ec   :  { %v3537_v18 = vadd.f32 %v4356_v20, %v3536_v56 }
0x15ed   :  { %v4358_v21 = vpop.eup %4357  ;;  %v3451_v35 = vsel %vm5377_vm9, %v4354_v63, %v3447_v28  ;;  %v3677_v63 = vld [vmem:[#allocation6 + $0xf0] sm:$0xff] }
0x15ee   :  { %v3623_v27 = vmul.f32 %v4358_v21, %v3621_v22  ;;  %v3289_v45 = vpop.permute.xlu2 %3288  ;;  %v3541_v33 = vsel %vm5370_vm5, %v4356_v20, %v3537_v18  ;;  %v3456_v42 = vsel %vm3453_vm12, %v3455_v37, %v3451_v35  ;;  %vm3628_vm13 = vweird.f32 %v4358_v21  ;;  %3703 = vmatpush.msra.mxu2 %v3677_v63 }
0x15ef   :  { %3309 = vmatpush.msrb.mxu1 %v3289_v45  ;;  %v3638_v29 = vpop.permute.xlu0 %3637  ;;  %v3546_v44 = vsel %vm3543_vm11, %v3545_v1, %v3541_v33  ;;  %v3457_v50 = vmul.f32 %v5309_v54, %v3456_v42  ;;  %vm3629_vm15 = vmor %vm3627_vm14, %vm3628_vm13  ;;  %v4140_v33 = vld [vmem:[%s5561_s8 + $0x28] sm:$0xff]  ;;  %vm3954_vm14 = vcmask 130048  }
0x15f0   :  { %v3624_v36 = vsub.f32 1.0, %v3623_v27  ;;  %4120 = vmatmul.msk.f32.vlgmr.msrb.gmra.mxu1 %vm197_vm1, %v5375_v32  ;;  %v5388_v24 = vmul.f32 %v5311_v48, %v3546_v44  ;;  %3704 = vmatpush.msra.mxu2 %v3676_v0 }
0x15f1   :  { %3480 = vmatpush.msra.mxu1 %v3460_v13 }
0x15f2   :  { %v3625_v39 = vmul.f32 %v4358_v21, %v3624_v36  ;;  %3705 = vmatpush.msra.mxu2 %v3675_v10 }
0x15f3   :  { %3658 = vmatpush.msrb.mxu1 %v3638_v29  ;;  %v4139_v29 = vld [vmem:[%s5561_s8 + $0x20] sm:$0xff] }
0x15f4   :  { %v3626_v43 = vadd.f32 %v4358_v21, %v3625_v39 }
0x15f5   :  { %v3549_v6 = vpop.permute.xlu1 %3548 }
0x15f6   :  { %3569 = vmatpush.msra.mxu3 %v3549_v6  ;;  %v3630_v49 = vsel %vm3629_vm15, %v4358_v21, %v3626_v43 }
0x15f7   :  { %4130 = vmatmul.msk.f32.vlgmr.msra.gmra.mxu3 %vm197_vm1, %v5388_v24  ;;  %v3635_v52 = vsel %vm3632_vm2, %v3634_v51, %v3630_v49  ;;  %v4153_v49 = vld [vmem:[%s5563_s10 + $0x78] sm:$0xff]  ;;  %v4152_v51 = vld [vmem:[%s5563_s10 + $0x70] sm:$0xff] }
0x15f8   :  { %4127 = vmatmul.msk.f32.vlgmr.msra.gmra.mxu1 %vm197_vm1, %v3457_v50  ;;  %v3636_v48 = vmul.f32 %v5317_v40, %v3635_v52  ;;  %v4207_v52 = vld [vmem:[%s5566_s13 + $0x4] ss:$0 sm:$0xff]  ;;  %3842 = vmatpush.msrb.mxu0 %v4153_v49 }
0x15fa   :  { %3843 = vmatpush.msrb.mxu0 %v4152_v51 }
0x15fc   :  { %v3050_v31 = vpop.f32.mrf.mxu3 }
0x15fd   :  { %3053 = vst.msk [vmem:[#allocation2] sm:$0xff] %vm197_vm1, %v3050_v31 }
0x1600   :  { %4133 = vmatmul.msk.f32.vlgmr.msrb.gmra.mxu1 %vm197_vm1, %v3636_v48 }
0x165d   :  { %v3133_v53 = vpop.f32.mrf.mxu1 }
0x165e   :  { %3137 = vrot.lane.b32.xlu1 %v3133_v53, %s4449_s19 }
0x1661   :  { %v3222_v54 = vpop.f32.mrf.mxu3 }
0x1662   :  { %3226 = vrot.lane.b32.xlu0 %v3222_v54, %s4454_s22 }
0x166b   :  { %v3399_v3 = vpop.f32.mrf.mxu3 }
0x166c   :  { %3402 = vst.msk [vmem:[#allocation2 + $0x8] sm:$0xff] %vm197_vm1, %v3399_v3 }
0x166d   :  { %v3311_v30 = vpop.f32.mrf.mxu1 }
0x166e   :  { %3315 = vrot.lane.b32.xlu2 %v3311_v30, %s4455_s23  ;;  %v4150_v30 = vld [vmem:[%s5563_s10 + $0x60] sm:$0xff] }
0x1675   :  { %v3482_v55 = vpop.f32.mrf.mxu1 }
0x1676   :  { %3486 = vrot.lane.b32.xlu1 %v3482_v55, %s4449_s19 }
0x167a   :  { %v3571_v57 = vpop.f32.mrf.mxu3 }
0x167b   :  { %3575 = vrot.lane.b32.xlu0 %v3571_v57, %s4454_s22 }
0x167d   :  { %v3660_v40 = vpop.f32.mrf.mxu1 }
0x167e   :  { %3664 = vrot.lane.b32.xlu2 %v3660_v40, %s4455_s23  ;;  %v4149_v40 = vld [vmem:[%s5563_s10 + $0x58] sm:$0xff] }
0x16c8   :  { %v3316_v4 = vpop.permute.xlu2 %3315 }
0x16d0   :  { %v3138_v20 = vpop.permute.xlu1 %3137 }
0x16d1   :  { %3140 = vst.msk [vmem:[#allocation2] sm:$0xff] %vm359_vm6, %v3138_v20 }
0x16d4   :  { %v3227_v2 = vpop.permute.xlu0 %3226 }
0x16d5   :  { %3229 = vst.msk [vmem:[#allocation2] sm:$0xff] %vm445_vm7, %v3227_v2 }
0x16d6   :  { %3318 = vst.msk [vmem:[#allocation2] sm:$0xff] %vm531_vm8, %v3316_v4 }
0x16d8   :  { %v3665_v22 = vpop.permute.xlu2 %3664 }
0x16dd   :  { %v3672_v58 = vld [vmem:[#allocation2] sm:$0xff] }
0x16de   :  { %4135 = vmatmul.msk.f32.vlgmr.msra.gmra.mxu2 %vm100_vm0, %v3672_v58 }
0x16e8   :  { %v3487_v41 = vpop.permute.xlu1 %3486 }
0x16e9   :  { %3489 = vst.msk [vmem:[#allocation2 + $0x8] sm:$0xff] %vm359_vm6, %v3487_v41 }
0x16ed   :  { %v3576_v5 = vpop.permute.xlu0 %3575 }
0x16ee   :  { %3578 = vst.msk [vmem:[#allocation2 + $0x8] sm:$0xff] %vm445_vm7, %v3576_v5 }
0x16ef   :  { %3667 = vst.msk [vmem:[#allocation2 + $0x8] sm:$0xff] %vm531_vm8, %v3665_v22 }
0x16f6   :  { %v3673_v7 = vld [vmem:[#allocation2 + $0x8] sm:$0xff] }
0x16f7   :  { %4136 = vmatmul.msk.f32.gmra.mxu2 %vm100_vm0, %v3673_v7  ;;  %v4148_v7 = vld [vmem:[%s5563_s10 + $0x50] sm:$0xff] }
0x1761   :  { %v3707_v13 = vpop.f32.mrf.mxu2 }
0x1762   :  { %v3708_v14 = vadd.f32 %v4205_v8, %v3707_v13  ;;  %v4146_v13 = vld [vmem:[%s5563_s10 + $0x40] sm:$0xff] }
0x1764   :  { %v3717_v46 = vadd.f32 %v3708_v14, %v5223_v11  ;;  %v4208_v14 = vld [vmem:[%s5562_s9 + $0x1] ss:$0 sm:$0xff] }
0x1766   :  { %v3719_v15 = vsel %vm100_vm0, %v3717_v46, 0.0 }
0x1767   :  { %3720 = vadd.xlane.f32.xlu1 %v3719_v15 }
0x177a   :  { %v3710_v16 = vpop.f32.mrf.mxu2 }
0x177b   :  { %v3711_v56 = vadd.f32 %v4205_v8, %v3710_v16  ;;  %v4147_v8 = vld [vmem:[%s5563_s10 + $0x48] sm:$0xff] }
0x177d   :  { %v3718_v60 = vadd.f32 %v3711_v56, %v5227_v34 }
0x177f   :  { %v3722_v28 = vsel %vm100_vm0, %v3718_v60, 0.0 }
0x1780   :  { %3723 = vadd.xlane.f32.xlu0 %v3722_v28 }
0x1794   :  { %3141 = vrot.lane.b32.xlu0 %v5349_v61, %s4449_s19 }
0x179c   :  { %3490 = vrot.lane.b32.xlu0 %v3457_v50, %s4449_s19 }
0x17a4   :  { %3668 = vrot.lane.b32.xlu0 %v3636_v48, %s4455_s23  ;;  %v4151_v48 = vld [vmem:[%s5563_s10 + $0x68] sm:$0xff] }
0x17a5   :  { %3844 = vmatpush.msrb.mxu0 %v4151_v48  ;;  %v4211_v48 = vld [vmem:[%s5566_s13 + $0x5] ss:$0 sm:$0xff] }
0x17a7   :  { %3845 = vmatpush.msrb.mxu0 %v4150_v30 }
0x17a9   :  { %3846 = vmatpush.msrb.mxu0 %v4149_v40 }
0x17ab   :  { %3847 = vmatpush.msrb.mxu0 %v4148_v7 }
0x17ad   :  { %3848 = vmatpush.msrb.mxu0 %v4147_v8 }
0x17af   :  { %3849 = vmatpush.msrb.mxu0 %v4146_v13 }
0x17da   :  { %v3721_v18 = vpop.xlane.xlu1 %3720 }
0x17db   :  { %v3725_v11 = vmul.f32 %v3721_v18, %v4755_v12  ;;  %v4209_v18 = vld [vmem:[%s5564_s11 + $0x1] ss:$0 sm:$0xff] }
0x17dd   :  { %v3727_v19 = vsub.f32 %v3717_v46, %v3725_v11 }
0x17df   :  { %v3729_v21 = vmul.f32 %v3727_v19, %v3727_v19 }
0x17e1   :  { %v3731_v9 = vsel %vm100_vm0, %v3729_v21, 0.0 }
0x17e2   :  { %3732 = vadd.xlane.f32.xlu2 %v3731_v9 }
0x17f3   :  { %v3724_v23 = vpop.xlane.xlu0 %3723 }
0x17f4   :  { %v3726_v34 = vmul.f32 %v3724_v23, %v4755_v12 }
0x17f6   :  { %v5426_v25 = vsub.f32 %v3718_v60, %v3726_v34 }
0x17f8   :  { %v3730_v61 = vmul.f32 %v5426_v25, %v5426_v25 }
0x17fa   :  { %3230 = vrot.lane.b32.xlu2 %v5337_v17, %s4454_s22  ;;  %v3734_v26 = vsel %vm100_vm0, %v3730_v61, 0.0  ;;  %v4142_v17 = vld [vmem:[%s5561_s8 + $0x38] sm:$0xff] }
0x17fb   :  { %3735 = vadd.xlane.f32.xlu1 %v3734_v26  ;;  %3801 = vmatpush.msrb.mxu3 %v4142_v17 }
0x17fd   :  { %3802 = vmatpush.msrb.mxu3 %v4141_v59 }
0x17ff   :  { %3803 = vmatpush.msrb.mxu3 %v4140_v33 }
0x1801   :  { %3804 = vmatpush.msrb.mxu3 %v4139_v29 }
0x1802   :  { %3579 = vrot.lane.b32.xlu2 %v5388_v24, %s4454_s22 }
0x1806   :  { %v3142_v27 = vpop.permute.xlu0 %3141 }
0x1807   :  { %3144 = vst.msk [vmem:[%s5570_s17] sm:$0xff] %vm359_vm6, %v3142_v27 }
0x180e   :  { %v3491_v45 = vpop.permute.xlu0 %3490 }
0x180f   :  { %3493 = vst.msk [vmem:[%s5570_s17 + $0x8] sm:$0xff] %vm359_vm6, %v3491_v45 }
0x1814   :  { %3319 = vrot.lane.b32.xlu1 %v5375_v32, %s4455_s23  ;;  %s3961_s23 = sshll.u32 %s4457_s24, 4  ;;  %s3962_s23 = int_to_ptr.vmem [resolvable:$true] %s3961_s23 }
0x1816   :  { %v3669_v47 = vpop.permute.xlu0 %3668 }
0x1855   :  { %v3733_v32 = vpop.xlane.xlu2 %3732 }
0x1856   :  { %v3737_v35 = vmul.f32 %v3733_v32, %v4755_v12 }
0x1858   :  { %v3739_v1 = vadd.f32 1e-05, %v3737_v35 }
0x185a   :  { %4359 = vrsqrt.f32 %v3739_v1  ;;  %vm3747_vm6 = vweird.f32 %v3739_v1 }
0x185d   :  { %v3231_v36 = vpop.permute.xlu2 %3230 }
0x185e   :  { %3233 = vst.msk [vmem:[%s5570_s17] sm:$0xff] %vm445_vm7, %v3231_v36  ;;  %v3920_v36 = vld [vmem:[%s5567_s14 + $0x18] sm:$0xff] }
0x185f   :  { %3943 = vmatpush.msra.mxu1 %v3920_v36 }
0x1860   :  { %v4360_v37 = vpop.eup %4359 }
0x1861   :  { %v3742_v44 = vmul.f32 %v4360_v37, %v3739_v1  ;;  %vm3748_vm1 = vweird.f32 %v4360_v37 }
0x1862   :  { %vm3749_vm3 = vmor %vm3747_vm6, %vm3748_vm1 }
0x1863   :  { %v3743_v39 = vmul.f32 %v4360_v37, %v3742_v44  ;;  %v3918_v44 = vld [vmem:[%s5567_s14 + $0x8] sm:$0xff] }
0x1865   :  { %v3744_v42 = vmul.f32 0.5, %v3743_v39  ;;  %v3580_v43 = vpop.permute.xlu2 %3579  ;;  %v3917_v39 = vld [vmem:[%s5567_s14] sm:$0xff] }
0x1866   :  { %3582 = vst.msk [vmem:[%s5570_s17 + $0x8] sm:$0xff] %vm445_vm7, %v3580_v43 }
0x1867   :  { %v3745_v6 = vsub.f32 1.5, %v3744_v42  ;;  %3671 = vst.msk [vmem:[%s5570_s17 + $0x8] sm:$0xff] %vm531_vm8, %v3669_v47 }
0x1869   :  { %v3746_v24 = vmul.f32 %v4360_v37, %v3745_v6 }
0x186b   :  { %v3750_v50 = vsel %vm3749_vm3, %v4360_v37, %v3746_v24  ;;  %v3919_v37 = vld [vmem:[%s5567_s14 + $0x10] sm:$0xff] }
0x186c   :  { %v3761_v31 = vmul.f32 %v3750_v50, %v3727_v19  ;;  %3944 = vmatpush.msra.mxu1 %v3919_v37 }
0x186e   :  { %v3766_v53 = vmul.f32 %v4206_v38, %v3761_v31  ;;  %v3736_v54 = vpop.xlane.xlu1 %3735  ;;  %3945 = vmatpush.msra.mxu1 %v3918_v44 }
0x186f   :  { %v3738_v3 = vmul.f32 %v3736_v54, %v4755_v12 }
0x1870   :  { %v3771_v55 = vadd.f32 %v4207_v52, %v3766_v53  ;;  %3946 = vmatpush.msra.mxu1 %v3917_v39 }
0x1871   :  { %v3740_v57 = vadd.f32 1e-05, %v3738_v3 }
0x1872   :  { %4144 = vmatmul.msk.f32.vlgmr.msrb.gmra.mxu3 %vm100_vm0, %v3771_v55 }
0x1873   :  { %4361 = vrsqrt.f32 %v3740_v57  ;;  %vm3757_vm4 = vweird.f32 %v3740_v57 }
0x1879   :  { %v4362_v62 = vpop.eup %4361 }
0x187a   :  { %v3752_v63 = vmul.f32 %v4362_v62, %v3740_v57  ;;  %vm3758_vm7 = vweird.f32 %v4362_v62 }
0x187b   :  { %vm3759_vm5 = vmor %vm3757_vm4, %vm3758_vm7 }
0x187c   :  { %v3753_v0 = vmul.f32 %v4362_v62, %v3752_v63 }
0x187e   :  { %v3754_v10 = vmul.f32 0.5, %v3753_v0 }
0x1880   :  { %v3755_v20 = vsub.f32 1.5, %v3754_v10 }
0x1882   :  { %v3756_v2 = vmul.f32 %v4362_v62, %v3755_v20 }
0x1884   :  { %v3760_v4 = vsel %vm3759_vm5, %v4362_v62, %v3756_v2 }
0x1885   :  { %v3762_v58 = vmul.f32 %v3760_v4, %v5426_v25 }
0x1886   :  { %v3320_v41 = vpop.permute.xlu1 %3319 }
0x1887   :  { %3322 = vst.msk [vmem:[%s5570_s17] sm:$0xff] %vm531_vm8, %v3320_v41  ;;  %v3767_v5 = vmul.f32 %v4206_v38, %v3762_v58 }
0x1889   :  { %v3772_v22 = vadd.f32 %v4207_v52, %v3767_v5  ;;  %v4210_v52 = vld [vmem:[%s5565_s12 + $0x5] ss:$0 sm:$0xff] }
0x188b   :  { %4145 = vmatmul.msk.f32.gmra.mxu3 %vm100_vm0, %v3772_v22 }
0x18f5   :  { %v3806_v46 = vpop.f32.mrf.mxu3 }
0x18f6   :  { %v3807_v15 = vadd.f32 %v4208_v14, %v3806_v46 }
0x18f8   :  { %v3812_v16 = vmax.f32 %v3807_v15, 0.0 }
0x18fa   :  { %4155 = vmatmul.msk.f32.vlgmr.msrb.gmra.mxu0 %vm1907_vm10, %v3812_v16 }
0x190e   :  { %v3809_v56 = vpop.f32.mrf.mxu3 }
0x190f   :  { %v3810_v60 = vadd.f32 %v4208_v14, %v3809_v56 }
0x1911   :  { %v3813_v28 = vmax.f32 %v3810_v60, 0.0 }
0x1913   :  { %4156 = vmatmul.msk.f32.gmra.mxu0 %vm1907_vm10, %v3813_v28 }
0x1977   :  { %v3851_v11 = vpop.f32.mrf.mxu0 }
0x1978   :  { %v3852_v19 = vadd.f32 %v4209_v18, %v3851_v11 }
0x197a   :  { %v3861_v21 = vadd.f32 %v3852_v19, %v3771_v55 }
0x197c   :  { %v3863_v9 = vsel %vm100_vm0, %v3861_v21, 0.0 }
0x197d   :  { %3864 = vadd.xlane.f32.xlu1 %v3863_v9 }
0x1990   :  { %v3854_v23 = vpop.f32.mrf.mxu0 }
0x1991   :  { %v3855_v34 = vadd.f32 %v4209_v18, %v3854_v23 }
0x1993   :  { %v3862_v25 = vadd.f32 %v3855_v34, %v3772_v22 }
0x1995   :  { %v3866_v61 = vsel %vm100_vm0, %v3862_v25, 0.0 }
0x1996   :  { %3867 = vadd.xlane.f32.xlu2 %v3866_v61 }
0x19f0   :  { %v3865_v26 = vpop.xlane.xlu1 %3864 }
0x19f1   :  { %v3869_v27 = vmul.f32 %v3865_v26, %v4755_v12 }
0x19f3   :  { %v3871_v45 = vsub.f32 %v3861_v21, %v3869_v27 }
0x19f5   :  { %v3873_v17 = vmul.f32 %v3871_v45, %v3871_v45 }
0x19f7   :  { %v3875_v59 = vsel %vm100_vm0, %v3873_v17, 0.0 }
0x19f8   :  { %3876 = vadd.xlane.f32.xlu0 %v3875_v59 }
0x1a09   :  { %v3868_v33 = vpop.xlane.xlu2 %3867 }
0x1a0a   :  { %v3870_v29 = vmul.f32 %v3868_v33, %v4755_v12 }
0x1a0c   :  { %v3872_v32 = vsub.f32 %v3862_v25, %v3870_v29 }
0x1a0e   :  { %v3874_v35 = vmul.f32 %v3872_v32, %v3872_v32 }
0x1a10   :  { %v3878_v1 = vsel %vm100_vm0, %v3874_v35, 0.0 }
0x1a11   :  { %3879 = vadd.xlane.f32.xlu2 %v3878_v1 }
0x1a6b   :  { %v3877_v42 = vpop.xlane.xlu0 %3876 }
0x1a6c   :  { %v3881_v43 = vmul.f32 %v3877_v42, %v4755_v12 }
0x1a6e   :  { %v3883_v47 = vadd.f32 1e-05, %v3881_v43 }
0x1a70   :  { %4363 = vrsqrt.f32 %v3883_v47  ;;  %vm3891_vm10 = vweird.f32 %v3883_v47 }
0x1a76   :  { %v4364_v6 = vpop.eup %4363 }
0x1a77   :  { %v3886_v24 = vmul.f32 %v4364_v6, %v3883_v47  ;;  %vm3892_vm8 = vweird.f32 %v4364_v6 }
0x1a78   :  { %vm3893_vm9 = vmor %vm3891_vm10, %vm3892_vm8 }
0x1a79   :  { %v3887_v38 = vmul.f32 %v4364_v6, %v3886_v24 }
0x1a7b   :  { %v3888_v50 = vmul.f32 0.5, %v3887_v38 }
0x1a7d   :  { %v3889_v49 = vsub.f32 1.5, %v3888_v50 }
0x1a7f   :  { %v3890_v51 = vmul.f32 %v4364_v6, %v3889_v49 }
0x1a81   :  { %v3894_v31 = vsel %vm3893_vm9, %v4364_v6, %v3890_v51 }
0x1a82   :  { %v3905_v53 = vmul.f32 %v3894_v31, %v3871_v45 }
0x1a84   :  { %v3910_v54 = vmul.f32 %v4210_v52, %v3905_v53  ;;  %v3880_v3 = vpop.xlane.xlu2 %3879 }
0x1a85   :  { %v3882_v30 = vmul.f32 %v3880_v3, %v4755_v12  ;;  %v4212_v12 = vld [vmem:[%s5568_s15] ss:$0 sm:$0xff] }
0x1a86   :  { %v3915_v55 = vadd.f32 %v4211_v48, %v3910_v54 }
0x1a87   :  { %v3884_v57 = vadd.f32 1e-05, %v3882_v30 }
0x1a88   :  { %4159 = vmatmul.msk.f32.vlgmr.msra.gmra.mxu1 %vm100_vm0, %v3915_v55 }
0x1a89   :  { %4365 = vrsqrt.f32 %v3884_v57  ;;  %vm3901_vm12 = vweird.f32 %v3884_v57 }
0x1a8f   :  { %v4366_v40 = vpop.eup %4365 }
0x1a90   :  { %v3896_v62 = vmul.f32 %v4366_v40, %v3884_v57  ;;  %vm3902_vm11 = vweird.f32 %v4366_v40 }
0x1a91   :  { %vm3903_vm13 = vmor %vm3901_vm12, %vm3902_vm11 }
0x1a92   :  { %v3897_v63 = vmul.f32 %v4366_v40, %v3896_v62 }
0x1a94   :  { %v3898_v0 = vmul.f32 0.5, %v3897_v63 }
0x1a96   :  { %v3899_v10 = vsub.f32 1.5, %v3898_v0 }
0x1a98   :  { %v3900_v20 = vmul.f32 %v4366_v40, %v3899_v10 }
0x1a9a   :  { %v3904_v2 = vsel %vm3903_vm13, %v4366_v40, %v3900_v20 }
0x1a9b   :  { %v3906_v4 = vmul.f32 %v3904_v2, %v3872_v32 }
0x1a9d   :  { %v3911_v58 = vmul.f32 %v4210_v52, %v3906_v4 }
0x1a9f   :  { %v3916_v41 = vadd.f32 %v4211_v48, %v3911_v58 }
0x1aa1   :  { %4160 = vmatmul.msk.f32.gmra.mxu1 %vm100_vm0, %v3916_v41 }
0x1b05   :  { %v3948_v5 = vpop.f32.mrf.mxu1 }
0x1b06   :  { %v3949_v22 = vadd.f32 %v4212_v12, %v3948_v5 }
0x1b08   :  { %3955 = vst.msk [vmem:[#allocation8] sm:$0xff] %vm3954_vm14, %v3949_v22 }
0x1b1e   :  { %v3951_v7 = vpop.f32.mrf.mxu1 }
0x1b1f   :  { %v3952_v8 = vadd.f32 %v4212_v12, %v3951_v7 }
0x1b21   :  { %3956 = vst.msk [vmem:[#allocation8 + $0x8] sm:$0xff] %vm3954_vm14, %v3952_v8 }
0x1b22   :  { %3969 = dma.vmem_to_hbm [thread:$0]  %s3962_s23, 256, %s3964_s25, [#allocation5], %s4448_s18, %s4448_s18, %s4449_s19  }
0x1b23   :  { %4445 = dma.done.wait [#allocation5], 256  }
0x1b24   :  { %4446 = vsyncadd [#allocation5], 4294967040 }
0x1b25   :  { %3978 = vsyncpa [#allocation4], 1 }
0x1b26   :  { %3979 = vsyncpa [#allocation7], 1 }
0x1b27   :  { %3980 = vsyncpa [#allocation5], 1 }

</bundles_post_ra>
